<compile_context>
chip_gen: v7x
topology: tpu7x:2x2x1
jax: 0.10.0
libtpu: 0.0.40
codegen_flags: <defaults>
</compile_context>

<pallas_src>
import math
import functools

import numpy as np
import jax
import jax.numpy as jnp
from jax.experimental import pallas as pl
from jax.experimental.pallas import tpu as pltpu


# ----------------------------------------------------------------------------
# Small stand-in configuration (original: hidden=768, WD=100, FT=1000).
# ----------------------------------------------------------------------------
HIDDEN = 64           # base_model.config.hidden_size
MAX_LEN = 16          # max_lengths
QUERY_LEN = 7 + 1     # query_lengths + 1
PROMPT_LEN = 7 + 1    # prompt_lengths + 1
WD = 10               # atW/afW/btW/bfW/ctW/cfW output dim   (100 in original)
FT = 32               # aftW/bftW/cftW output dim            (1000 in original)
NUM_CLASSES = 4

LA = MAX_LEN + QUERY_LEN    # padded mrc-token length
LB = MAX_LEN                # padded context-token length
LC = MAX_LEN + PROMPT_LEN   # padded prompt-token length


def _round_up(x, m):
    return ((x + m - 1) // m) * m


FT_PAD = _round_up(FT, 128)            # lane-dense FT projection output
NC_PAD = _round_up(NUM_CLASSES, 128)   # lane-dense classifier logits


# ----------------------------------------------------------------------------
# In-kernel matmul / softmax helpers
# ----------------------------------------------------------------------------
def _mm(a, b):       # a @ b
    return jax.lax.dot_general(a, b, (((1,), (0,)), ((), ())),
                               preferred_element_type=jnp.float32)


def _mm_nt(a, b):    # a @ b.T
    return jax.lax.dot_general(a, b, (((1,), (1,)), ((), ())),
                               preferred_element_type=jnp.float32)


def _mm_tn(a, b):    # a.T @ b
    return jax.lax.dot_general(a, b, (((0,), (0,)), ((), ())),
                               preferred_element_type=jnp.float32)


def _softmax_last(s):
    m = jnp.max(s, axis=-1, keepdims=True)
    p = jnp.exp(s - m)
    return p * pl.reciprocal(jnp.sum(p, axis=-1, keepdims=True), approx=True)


# ----------------------------------------------------------------------------
# Pallas kernel: one TFWA branch (token self-attn + feature self-attn + fusion)
# Grid is (B,) — one program per batch element; all tiles fit in VMEM.
# ----------------------------------------------------------------------------
def tfwa_branch_kernel(x_ref,
                       wk_ref, wq_ref, wv_ref, bk_ref, bq_ref, bv_ref,
                       wfk_ref, wfq_ref, wfv_ref, bfk_ref, bfq_ref, bfv_ref,
                       wt_ref, bt_ref, wf_ref, bf_ref,
                       tsa_ref, fsat_ref, att_ref, attn_ref, tfsaw_ref,
                       *, inv_sqrt_h, inv_sqrt_l):
    xb = x_ref[0]                                       # (L, H) bf16

    # --- token self-attention: bf16 operands, f32 MXU accumulation ---------
    K = _mm(xb, wk_ref[...]) + bk_ref[...]              # (L, H) f32
    Q = _mm(xb, wq_ref[...]) + bq_ref[...]
    V = _mm(xb, wv_ref[...]) + bv_ref[...]
    att = _softmax_last(_mm_nt(Q, K) * inv_sqrt_h)      # (L, L)
    tsa = _mm(att, V)                                   # (L, H)

    # --- feature self-attention: transpose x once, then plain matmuls ------
    xt = xb.astype(jnp.float32).T                       # (H, L)
    Kn = _mm(xt, wfk_ref[...]) + bfk_ref[...]           # (H, L)
    Qn = _mm(xt, wfq_ref[...]) + bfq_ref[...]
    Vn = _mm(xt, wfv_ref[...]) + bfv_ref[...]
    attn = _softmax_last(_mm_nt(Qn, Kn) * inv_sqrt_l)   # (H, H)
    fsa_t = _mm(attn, Vn)                               # (H, L) == FSA^T

    # --- token/feature fusion (WD x WD); WD*WD -> FT Linear is hoisted out --
    tsa_w = _mm(tsa, wt_ref[...]) + bt_ref[...]         # (L, WD)
    fsa_w = _mm_tn(fsa_t, wf_ref[...]) + bf_ref[...]    # (L, WD) == FSA @ wf
    tfsaw_ref[0] = _mm_tn(tsa_w, fsa_w)                 # (WD, WD)

    tsa_ref[0] = tsa
    fsat_ref[0] = fsa_t
    att_ref[0] = att
    attn_ref[0] = attn


def tfwa_branch(x, params):
    """Run one TFWA branch for every batch element.  x: (B, L, H) float32."""
    B, L, H = x.shape
    (wk, bk, wq, bq, wv, bv, wfk, bfk, wfq, bfq, wfv, bfv,
     wt, bt, wf, bf) = params

    # bf16 at the boundary for the per-token operand and the HxH weights.
    bfp = jnp.bfloat16
    args = (x.astype(bfp),
            wk.astype(bfp), wq.astype(bfp), wv.astype(bfp), bk, bq, bv,
            wfk, wfq, wfv, bfk, bfq, bfv,
            wt, bt, wf, bf)

    kernel = functools.partial(tfwa_branch_kernel,
                               inv_sqrt_h=1.0 / math.sqrt(H),
                               inv_sqrt_l=1.0 / math.sqrt(L))

    def full_spec(a):
        return pl.BlockSpec(a.shape, lambda b, _nd=a.ndim: (0,) * _nd)

    in_specs = [pl.BlockSpec((1, L, H), lambda b: (b, 0, 0))]
    in_specs += [full_spec(a) for a in args[1:]]

    out_shape = (
        jax.ShapeDtypeStruct((B, L, H), jnp.float32),    # TSA
        jax.ShapeDtypeStruct((B, H, L), jnp.float32),    # FSA^T
        jax.ShapeDtypeStruct((B, L, L), jnp.float32),    # attention
        jax.ShapeDtypeStruct((B, H, H), jnp.float32),    # attention_N
        jax.ShapeDtypeStruct((B, WD, WD), jnp.float32),  # TFSA_W (pre-FT)
    )
    out_specs = (
        pl.BlockSpec((1, L, H), lambda b: (b, 0, 0)),
        pl.BlockSpec((1, H, L), lambda b: (b, 0, 0)),
        pl.BlockSpec((1, L, L), lambda b: (b, 0, 0)),
        pl.BlockSpec((1, H, H), lambda b: (b, 0, 0)),
        pl.BlockSpec((1, WD, WD), lambda b: (b, 0, 0)),
    )
    tsa, fsa_t, att, attn, tfsa_w = pl.pallas_call(
        kernel,
        grid=(B,),
        in_specs=in_specs,
        out_specs=out_specs,
        out_shape=out_shape,
        compiler_params=pltpu.CompilerParams(dimension_semantics=("parallel",)),
    )(*args)
    fsa = jnp.swapaxes(fsa_t, 1, 2)      # (B, L, H): cheap transpose in XLA
    return tsa, fsa, att, attn, tfsa_w


# ----------------------------------------------------------------------------
# Pallas kernel: K-tiled (B, WD*WD) @ (WD*WD, FT) projection for all 3 branches
# in one launch.  The weight is streamed per K-tile so the full WD*WD x FT
# matrix is never resident in VMEM (required at production sizes / v7x).
# ----------------------------------------------------------------------------
def tfsa_project_kernel(x_ref, w_ref, b_ref, o_ref, acc_ref):
    k = pl.program_id(1)

    @pl.when(k == 0)
    def _():
        acc_ref[...] = jnp.zeros_like(acc_ref)

    acc_ref[...] += _mm(x_ref[0], w_ref[0])

    @pl.when(k == pl.num_programs(1) - 1)
    def _():
        o_ref[0] = acc_ref[...] + b_ref[0]


def tfsa_project(tfsa_flat, wft_all, bft_all):
    """tfsa_flat: (3, B, WD*WD); wft_all: (3, WD*WD, FT_PAD); bft: (3,1,FT_PAD)."""
    G, B, K = tfsa_flat.shape
    FTP = wft_all.shape[-1]
    TK = 512 if (K % 512 == 0) else K          # toy sizes: single K tile
    KB = K // TK
    out = pl.pallas_call(
        tfsa_project_kernel,
        grid=(G, KB),
        in_specs=[
            pl.BlockSpec((1, B, TK), lambda g, k: (g, 0, k)),
            pl.BlockSpec((1, TK, FTP), lambda g, k: (g, k, 0)),
            pl.BlockSpec((1, 1, FTP), lambda g, k: (g, 0, 0)),
        ],
        out_specs=pl.BlockSpec((1, B, FTP), lambda g, k: (g, 0, 0)),
        out_shape=jax.ShapeDtypeStruct((G, B, FTP), jnp.float32),
        scratch_shapes=[pltpu.VMEM((B, FTP), jnp.float32)],
        compiler_params=pltpu.CompilerParams(
            dimension_semantics=("parallel", "arbitrary")),
    )(tfsa_flat, wft_all, bft_all)
    return out[:, :, :FT]                      # drop lane padding


# ----------------------------------------------------------------------------
# Pallas kernel: final classifier  fnn = Dropout(eval) -> Linear -> Linear
# on the pre-concatenated (B, 3H + 3FT) activation slab.
# ----------------------------------------------------------------------------
def fnn_kernel(cat_ref, w1_ref, b1_ref, w2_ref, b2_ref, out_ref):
    h = _mm(cat_ref[...], w1_ref[...]) + b1_ref[...]
    out_ref[...] = _mm(h, w2_ref[...]) + b2_ref[...]


def fnn(cat, w1, b1, w2, b2):
    B = cat.shape[0]
    w2p = jnp.pad(w2, ((0, 0), (0, NC_PAD - NUM_CLASSES)))   # lane-dense store
    b2p = jnp.pad(b2, ((0, 0), (0, NC_PAD - NUM_CLASSES)))
    out = pl.pallas_call(
        fnn_kernel,
        out_shape=jax.ShapeDtypeStruct((B, NC_PAD), jnp.float32),
    )(cat, w1, b1, w2p, b2p)
    return out[:, :NUM_CLASSES]


# ----------------------------------------------------------------------------
# Parameter init (deterministic) and model glue
# ----------------------------------------------------------------------------
def init_linear(key, fan_in, fan_out):
    kw, kb = jax.random.split(key)
    bound = 1.0 / math.sqrt(fan_in)
    w = jax.random.uniform(kw, (fan_in, fan_out), jnp.float32, -bound, bound)
    b = jax.random.uniform(kb, (1, fan_out), jnp.float32, -bound, bound)
    return w, b


def init_branch_params(key, L):
    keys = jax.random.split(key, 9)
    wk, bk = init_linear(keys[0], HIDDEN, HIDDEN)
    wq, bq = init_linear(keys[1], HIDDEN, HIDDEN)
    wv, bv = init_linear(keys[2], HIDDEN, HIDDEN)
    wfk, bfk = init_linear(keys[3], L, L)
    wfq, bfq = init_linear(keys[4], L, L)
    wfv, bfv = init_linear(keys[5], L, L)
    wt, bt = init_linear(keys[6], HIDDEN, WD)
    wf, bf = init_linear(keys[7], HIDDEN, WD)
    wft, bft = init_linear(keys[8], WD * WD, FT)
    branch = (wk, bk, wq, bq, wv, bv, wfk, bfk, wfq, bfq, wfv, bfv,
              wt, bt, wf, bf)
    return branch, wft, bft


def _pad_seq(tok, target_len):
    body = tok[:, 1:, :]                 # drop CLS token
    pad = target_len - body.shape[1]
    return jnp.pad(body, ((0, 0), (0, pad), (0, 0)))


def mp_tfwa_forward(mrc_tokens, context_tokens, pl_tokens, mask_index, params):
    (pa, pb, pc, wft_all, bft_all, w1, b1, w2, b2) = params
    B = mrc_tokens.shape[0]

    mrc_cls = mrc_tokens[:, 0, :]
    ctx_cls = context_tokens[:, 0, :]
    mask_vec = pl_tokens[jnp.arange(B), mask_index[:, 1], :]   # MASK gather (XLA)

    tokens_padding = _pad_seq(mrc_tokens, LA)
    cls_padding = _pad_seq(context_tokens, LB)
    prompt_padding = _pad_seq(pl_tokens, LC)

    a_tsa, a_fsa, a_att, a_attn, a_tfw = tfwa_branch(tokens_padding, pa)
    b_tsa, b_fsa, b_att, b_attn, b_tfw = tfwa_branch(cls_padding, pb)
    c_tsa, c_fsa, c_att, c_attn, c_tfw = tfwa_branch(prompt_padding, pc)

    # (3, B, WD*WD) row-major flattening, matching torch.reshape of TFSA_W.
    tfsa_flat = jnp.stack([a_tfw, b_tfw, c_tfw], axis=0).reshape(3, B, WD * WD)
    tfsa_all = tfsa_project(tfsa_flat, wft_all, bft_all)       # (3, B, FT)

    cat = jnp.concatenate([mrc_cls, ctx_cls, mask_vec,
                           tfsa_all[0], tfsa_all[1], tfsa_all[2]], axis=1)
    predicts = fnn(cat, w1, b1, w2, b2)

    return (predicts, a_tsa, a_fsa, mrc_tokens, mrc_cls,
            b_tsa, b_fsa, context_tokens, ctx_cls,
            c_tsa, c_fsa, pl_tokens, mask_vec,
            a_att, a_attn, b_att, b_attn, c_att, c_attn)


# ----------------------------------------------------------------------------
# Pure-JAX reference (sanity check only) — mirrors the boundary bf16 casts.
# ----------------------------------------------------------------------------
def _mirror_bf16(a):
    return a.astype(jnp.bfloat16).astype(jnp.float32)


def branch_ref(x, p, wft, bft):
    (wk, bk, wq, bq, wv, bv, wfk, bfk, wfq, bfq, wfv, bfv,
     wt, bt, wf, bf) = p
    x = _mirror_bf16(x)
    wk, wq, wv = (_mirror_bf16(w) for w in (wk, wq, wv))
    B, L, H = x.shape
    K = x @ wk + bk
    Q = x @ wq + bq
    V = x @ wv + bv
    att = jax.nn.softmax(jnp.einsum('bld,bmd->blm', Q, K) / math.sqrt(H), axis=-1)
    tsa = jnp.einsum('blm,bmd->bld', att, V)
    xt = jnp.swapaxes(x, 1, 2)
    Kn = xt @ wfk + bfk
    Qn = xt @ wfq + bfq
    Vn = xt @ wfv + bfv
    attn = jax.nn.softmax(jnp.einsum('bhl,bgl->bhg', Qn, Kn) / math.sqrt(L), axis=-1)
    fsa = jnp.swapaxes(jnp.einsum('bhg,bgl->bhl', attn, Vn), 1, 2)
    tsa_w = tsa @ wt + bt
    fsa_w = fsa @ wf + bf
    tfsa_w = jnp.einsum('blw,blv->bwv', tsa_w, fsa_w)
    tfsa = tfsa_w.reshape(B, WD * WD) @ wft + bft
    return tsa, fsa, att, attn, tfsa


if __name__ == "__main__":
    key = jax.random.PRNGKey(0)
    k_in, k_pa, k_pb, k_pc, k_f1, k_f2, k_mask = jax.random.split(key, 7)

    B = 2
    S_MRC, S_CTX, S_PL = 20, 14, 18     # raw sequence lengths from the backbones

    k1, k2, k3 = jax.random.split(k_in, 3)
    mrc_tokens = jax.random.normal(k1, (B, S_MRC, HIDDEN), jnp.float32)
    context_tokens = jax.random.normal(k2, (B, S_CTX, HIDDEN), jnp.float32)
    pl_tokens = jax.random.normal(k3, (B, S_PL, HIDDEN), jnp.float32)
    mask_index = jnp.stack(
        [jnp.zeros((B,), jnp.int32),
         jax.random.randint(k_mask, (B,), 1, S_PL, jnp.int32)], axis=1)

    pa, wft_a, bft_a = init_branch_params(k_pa, LA)
    pb, wft_b, bft_b = init_branch_params(k_pb, LB)
    pc, wft_c, bft_c = init_branch_params(k_pc, LC)

    wft_all = jnp.stack([jnp.pad(w, ((0, 0), (0, FT_PAD - FT)))
                         for w in (wft_a, wft_b, wft_c)], axis=0)
    bft_all = jnp.stack([jnp.pad(b, ((0, 0), (0, FT_PAD - FT)))
                         for b in (bft_a, bft_b, bft_c)], axis=0)

    w1, b1 = init_linear(k_f1, 3 * HIDDEN + 3 * FT, HIDDEN)
    w2, b2 = init_linear(k_f2, HIDDEN, NUM_CLASSES)
    params = (pa, pb, pc, wft_all, bft_all, w1, b1, w2, b2)

    fwd = jax.jit(mp_tfwa_forward)
    outs = fwd(mrc_tokens, context_tokens, pl_tokens, mask_index, params)
    outs = jax.block_until_ready(outs)

    # ---- sanity check vs. pure-JAX reference (loose tol: MXU / approx rcp) --
    ra = branch_ref(_pad_seq(mrc_tokens, LA), pa, wft_a, bft_a)
    rb = branch_ref(_pad_seq(context_tokens, LB), pb, wft_b, bft_b)
    rc = branch_ref(_pad_seq(pl_tokens, LC), pc, wft_c, bft_c)
    mrc_cls = mrc_tokens[:, 0, :]
    ctx_cls = context_tokens[:, 0, :]
    mask_vec = pl_tokens[jnp.arange(B), mask_index[:, 1], :]
    cat = jnp.concatenate([mrc_cls, ctx_cls, mask_vec, ra[4], rb[4], rc[4]],
                          axis=1)
    pred_ref = (cat @ w1 + b1) @ w2 + b2

    np.testing.assert_allclose(np.asarray(outs[0]), np.asarray(pred_ref),
                               rtol=2e-2, atol=2e-2)      # predicts
    np.testing.assert_allclose(np.asarray(outs[1]), np.asarray(ra[0]),
                               rtol=2e-2, atol=2e-2)      # aTSA
    np.testing.assert_allclose(np.asarray(outs[2]), np.asarray(ra[1]),
                               rtol=2e-2, atol=2e-2)      # aFSA
    np.testing.assert_allclose(np.asarray(outs[13]), np.asarray(ra[2]),
                               rtol=2e-2, atol=2e-2)      # aattention
    np.testing.assert_allclose(np.asarray(outs[16]), np.asarray(rb[3]),
                               rtol=2e-2, atol=2e-2)      # battention_N
    np.testing.assert_allclose(np.asarray(outs[9]), np.asarray(rc[0]),
                               rtol=2e-2, atol=2e-2)      # cTSA

    print("KERNEL_OK")
</pallas_src>

<mosaic_0001>
module attributes {stable_mosaic.version = 11 : i64} {
  func.func @tfwa_branch_kernel(%arg0: i32, %arg1: memref<1x16x64xbf16, #tpu.memory_space<vmem>>, %arg2: memref<64x64xbf16, #tpu.memory_space<vmem>>, %arg3: memref<64x64xbf16, #tpu.memory_space<vmem>>, %arg4: memref<64x64xbf16, #tpu.memory_space<vmem>>, %arg5: memref<1x64xf32, #tpu.memory_space<vmem>>, %arg6: memref<1x64xf32, #tpu.memory_space<vmem>>, %arg7: memref<1x64xf32, #tpu.memory_space<vmem>>, %arg8: memref<16x16xf32, #tpu.memory_space<vmem>>, %arg9: memref<16x16xf32, #tpu.memory_space<vmem>>, %arg10: memref<16x16xf32, #tpu.memory_space<vmem>>, %arg11: memref<1x16xf32, #tpu.memory_space<vmem>>, %arg12: memref<1x16xf32, #tpu.memory_space<vmem>>, %arg13: memref<1x16xf32, #tpu.memory_space<vmem>>, %arg14: memref<64x10xf32, #tpu.memory_space<vmem>>, %arg15: memref<1x10xf32, #tpu.memory_space<vmem>>, %arg16: memref<64x10xf32, #tpu.memory_space<vmem>>, %arg17: memref<1x10xf32, #tpu.memory_space<vmem>>, %arg18: memref<1x16x64xf32, #tpu.memory_space<vmem>>, %arg19: memref<1x64x16xf32, #tpu.memory_space<vmem>>, %arg20: memref<1x16x16xf32, #tpu.memory_space<vmem>>, %arg21: memref<1x64x64xf32, #tpu.memory_space<vmem>>, %arg22: memref<1x10x10xf32, #tpu.memory_space<vmem>>) attributes {dimension_semantics = [#tpu.dimension_semantics<parallel>], iteration_bounds = array<i64: 2>, scalar_prefetch = 0 : i64, scratch_operands = 0 : i64, tpu.core_type = #tpu.core_type<tc>, window_params = [{transform_indices = @transform_0, window_bounds = array<i64: 1, 16, 64>}, {pipeline_mode = #tpu.pipeline_mode<synchronous>, transform_indices = @transform_1, window_bounds = array<i64: 64, 64>}, {pipeline_mode = #tpu.pipeline_mode<synchronous>, transform_indices = @transform_2, window_bounds = array<i64: 64, 64>}, {pipeline_mode = #tpu.pipeline_mode<synchronous>, transform_indices = @transform_3, window_bounds = array<i64: 64, 64>}, {pipeline_mode = #tpu.pipeline_mode<synchronous>, transform_indices = @transform_4, window_bounds = array<i64: 1, 64>}, {pipeline_mode = #tpu.pipeline_mode<synchronous>, transform_indices = @transform_5, window_bounds = array<i64: 1, 64>}, {pipeline_mode = #tpu.pipeline_mode<synchronous>, transform_indices = @transform_6, window_bounds = array<i64: 1, 64>}, {pipeline_mode = #tpu.pipeline_mode<synchronous>, transform_indices = @transform_7, window_bounds = array<i64: 16, 16>}, {pipeline_mode = #tpu.pipeline_mode<synchronous>, transform_indices = @transform_8, window_bounds = array<i64: 16, 16>}, {pipeline_mode = #tpu.pipeline_mode<synchronous>, transform_indices = @transform_9, window_bounds = array<i64: 16, 16>}, {pipeline_mode = #tpu.pipeline_mode<synchronous>, transform_indices = @transform_10, window_bounds = array<i64: 1, 16>}, {pipeline_mode = #tpu.pipeline_mode<synchronous>, transform_indices = @transform_11, window_bounds = array<i64: 1, 16>}, {pipeline_mode = #tpu.pipeline_mode<synchronous>, transform_indices = @transform_12, window_bounds = array<i64: 1, 16>}, {pipeline_mode = #tpu.pipeline_mode<synchronous>, transform_indices = @transform_13, window_bounds = array<i64: 64, 10>}, {pipeline_mode = #tpu.pipeline_mode<synchronous>, transform_indices = @transform_14, window_bounds = array<i64: 1, 10>}, {pipeline_mode = #tpu.pipeline_mode<synchronous>, transform_indices = @transform_15, window_bounds = array<i64: 64, 10>}, {pipeline_mode = #tpu.pipeline_mode<synchronous>, transform_indices = @transform_16, window_bounds = array<i64: 1, 10>}, {transform_indices = @transform_17, window_bounds = array<i64: 1, 16, 64>}, {transform_indices = @transform_18, window_bounds = array<i64: 1, 64, 16>}, {transform_indices = @transform_19, window_bounds = array<i64: 1, 16, 16>}, {transform_indices = @transform_20, window_bounds = array<i64: 1, 64, 64>}, {transform_indices = @transform_21, window_bounds = array<i64: 1, 10, 10>}]} {
    %c0 = arith.constant 0 : index
    %c0_0 = arith.constant 0 : index
    %c0_1 = arith.constant 0 : index
    %0 = vector.load %arg1[%c0, %c0_0, %c0_1] : memref<1x16x64xbf16, #tpu.memory_space<vmem>>, vector<1x16x64xbf16>
    %1 = vector.shape_cast %0 : vector<1x16x64xbf16> to vector<16x64xbf16>
    %c0_2 = arith.constant 0 : index
    %c0_3 = arith.constant 0 : index
    %2 = vector.load %arg2[%c0_2, %c0_3] : memref<64x64xbf16, #tpu.memory_space<vmem>>, vector<64x64xbf16>
    %cst = arith.constant dense<0.000000e+00> : vector<16x64xf32>
    %3 = tpu.matmul %1, %2, %cst {dimension_numbers = #tpu.dot_dimension_numbers<[1], [0], [0], [1], [0, 0, 1, 1], [], []>} : vector<16x64xbf16>, vector<64x64xbf16>, vector<16x64xf32> -> vector<16x64xf32>
    %c0_4 = arith.constant 0 : index
    %c0_5 = arith.constant 0 : index
    %4 = vector.load %arg5[%c0_4, %c0_5] : memref<1x64xf32, #tpu.memory_space<vmem>>, vector<1x64xf32>
    %5 = vector.broadcast %4 : vector<1x64xf32> to vector<16x64xf32>
    %6 = arith.addf %3, %5 : vector<16x64xf32>
    %c0_6 = arith.constant 0 : index
    %c0_7 = arith.constant 0 : index
    %7 = vector.load %arg3[%c0_6, %c0_7] : memref<64x64xbf16, #tpu.memory_space<vmem>>, vector<64x64xbf16>
    %cst_8 = arith.constant dense<0.000000e+00> : vector<16x64xf32>
    %8 = tpu.matmul %1, %7, %cst_8 {dimension_numbers = #tpu.dot_dimension_numbers<[1], [0], [0], [1], [0, 0, 1, 1], [], []>} : vector<16x64xbf16>, vector<64x64xbf16>, vector<16x64xf32> -> vector<16x64xf32>
    %c0_9 = arith.constant 0 : index
    %c0_10 = arith.constant 0 : index
    %9 = vector.load %arg6[%c0_9, %c0_10] : memref<1x64xf32, #tpu.memory_space<vmem>>, vector<1x64xf32>
    %10 = vector.broadcast %9 : vector<1x64xf32> to vector<16x64xf32>
    %11 = arith.addf %8, %10 : vector<16x64xf32>
    %c0_11 = arith.constant 0 : index
    %c0_12 = arith.constant 0 : index
    %12 = vector.load %arg4[%c0_11, %c0_12] : memref<64x64xbf16, #tpu.memory_space<vmem>>, vector<64x64xbf16>
    %cst_13 = arith.constant dense<0.000000e+00> : vector<16x64xf32>
    %13 = tpu.matmul %1, %12, %cst_13 {dimension_numbers = #tpu.dot_dimension_numbers<[1], [0], [0], [1], [0, 0, 1, 1], [], []>} : vector<16x64xbf16>, vector<64x64xbf16>, vector<16x64xf32> -> vector<16x64xf32>
    %c0_14 = arith.constant 0 : index
    %c0_15 = arith.constant 0 : index
    %14 = vector.load %arg7[%c0_14, %c0_15] : memref<1x64xf32, #tpu.memory_space<vmem>>, vector<1x64xf32>
    %15 = vector.broadcast %14 : vector<1x64xf32> to vector<16x64xf32>
    %16 = arith.addf %13, %15 : vector<16x64xf32>
    %cst_16 = arith.constant dense<0.000000e+00> : vector<16x16xf32>
    %17 = tpu.matmul %11, %6, %cst_16 {dimension_numbers = #tpu.dot_dimension_numbers<[1], [1], [0], [0], [0, 0, 1, 0], [], []>} : vector<16x64xf32>, vector<16x64xf32>, vector<16x16xf32> -> vector<16x16xf32>
    %cst_17 = arith.constant 1.250000e-01 : f32
    %18 = vector.broadcast %cst_17 : f32 to vector<16x16xf32>
    %19 = arith.mulf %17, %18 : vector<16x16xf32>
    %cst_18 = arith.constant dense<0xFF800000> : vector<16xf32>
    %20 = vector.multi_reduction <maximumf>, %19, %cst_18 [1] : vector<16x16xf32> to vector<16xf32>
    %21 = vector.shape_cast %20 : vector<16xf32> to vector<16x1xf32>
    %22 = vector.broadcast %21 : vector<16x1xf32> to vector<16x16xf32>
    %23 = arith.subf %19, %22 : vector<16x16xf32>
    %24 = math.exp %23 : vector<16x16xf32>
    %cst_19 = arith.constant dense<0.000000e+00> : vector<16xf32>
    %25 = vector.multi_reduction <add>, %24, %cst_19 [1] : vector<16x16xf32> to vector<16xf32>
    %26 = vector.shape_cast %25 : vector<16xf32> to vector<16x1xf32>
    %27 = tpu.reciprocal %26 {approx = true} : vector<16x1xf32> -> vector<16x1xf32>
    %28 = vector.broadcast %27 : vector<16x1xf32> to vector<16x16xf32>
    %29 = arith.mulf %24, %28 : vector<16x16xf32>
    %cst_20 = arith.constant dense<0.000000e+00> : vector<16x64xf32>
    %30 = tpu.matmul %29, %16, %cst_20 {dimension_numbers = #tpu.dot_dimension_numbers<[1], [0], [0], [1], [0, 0, 1, 1], [], []>} : vector<16x16xf32>, vector<16x64xf32>, vector<16x64xf32> -> vector<16x64xf32>
    %31 = arith.extf %1 : vector<16x64xbf16> to vector<16x64xf32>
    %32 = tpu.transpose %31, [1, 0] : vector<16x64xf32> -> vector<64x16xf32>
    %c0_21 = arith.constant 0 : index
    %c0_22 = arith.constant 0 : index
    %33 = vector.load %arg8[%c0_21, %c0_22] : memref<16x16xf32, #tpu.memory_space<vmem>>, vector<16x16xf32>
    %cst_23 = arith.constant dense<0.000000e+00> : vector<64x16xf32>
    %34 = tpu.matmul %32, %33, %cst_23 {dimension_numbers = #tpu.dot_dimension_numbers<[1], [0], [0], [1], [0, 0, 1, 1], [], []>} : vector<64x16xf32>, vector<16x16xf32>, vector<64x16xf32> -> vector<64x16xf32>
    %c0_24 = arith.constant 0 : index
    %c0_25 = arith.constant 0 : index
    %35 = vector.load %arg11[%c0_24, %c0_25] : memref<1x16xf32, #tpu.memory_space<vmem>>, vector<1x16xf32>
    %36 = vector.broadcast %35 : vector<1x16xf32> to vector<64x16xf32>
    %37 = arith.addf %34, %36 : vector<64x16xf32>
    %c0_26 = arith.constant 0 : index
    %c0_27 = arith.constant 0 : index
    %38 = vector.load %arg9[%c0_26, %c0_27] : memref<16x16xf32, #tpu.memory_space<vmem>>, vector<16x16xf32>
    %cst_28 = arith.constant dense<0.000000e+00> : vector<64x16xf32>
    %39 = tpu.matmul %32, %38, %cst_28 {dimension_numbers = #tpu.dot_dimension_numbers<[1], [0], [0], [1], [0, 0, 1, 1], [], []>} : vector<64x16xf32>, vector<16x16xf32>, vector<64x16xf32> -> vector<64x16xf32>
    %c0_29 = arith.constant 0 : index
    %c0_30 = arith.constant 0 : index
    %40 = vector.load %arg12[%c0_29, %c0_30] : memref<1x16xf32, #tpu.memory_space<vmem>>, vector<1x16xf32>
    %41 = vector.broadcast %40 : vector<1x16xf32> to vector<64x16xf32>
    %42 = arith.addf %39, %41 : vector<64x16xf32>
    %c0_31 = arith.constant 0 : index
    %c0_32 = arith.constant 0 : index
    %43 = vector.load %arg10[%c0_31, %c0_32] : memref<16x16xf32, #tpu.memory_space<vmem>>, vector<16x16xf32>
    %cst_33 = arith.constant dense<0.000000e+00> : vector<64x16xf32>
    %44 = tpu.matmul %32, %43, %cst_33 {dimension_numbers = #tpu.dot_dimension_numbers<[1], [0], [0], [1], [0, 0, 1, 1], [], []>} : vector<64x16xf32>, vector<16x16xf32>, vector<64x16xf32> -> vector<64x16xf32>
    %c0_34 = arith.constant 0 : index
    %c0_35 = arith.constant 0 : index
    %45 = vector.load %arg13[%c0_34, %c0_35] : memref<1x16xf32, #tpu.memory_space<vmem>>, vector<1x16xf32>
    %46 = vector.broadcast %45 : vector<1x16xf32> to vector<64x16xf32>
    %47 = arith.addf %44, %46 : vector<64x16xf32>
    %cst_36 = arith.constant dense<0.000000e+00> : vector<64x64xf32>
    %48 = tpu.matmul %42, %37, %cst_36 {dimension_numbers = #tpu.dot_dimension_numbers<[1], [1], [0], [0], [0, 0, 1, 0], [], []>} : vector<64x16xf32>, vector<64x16xf32>, vector<64x64xf32> -> vector<64x64xf32>
    %cst_37 = arith.constant 2.500000e-01 : f32
    %49 = vector.broadcast %cst_37 : f32 to vector<64x64xf32>
    %50 = arith.mulf %48, %49 : vector<64x64xf32>
    %cst_38 = arith.constant dense<0xFF800000> : vector<64xf32>
    %51 = vector.multi_reduction <maximumf>, %50, %cst_38 [1] : vector<64x64xf32> to vector<64xf32>
    %52 = vector.shape_cast %51 : vector<64xf32> to vector<64x1xf32>
    %53 = vector.broadcast %52 : vector<64x1xf32> to vector<64x64xf32>
    %54 = arith.subf %50, %53 : vector<64x64xf32>
    %55 = math.exp %54 : vector<64x64xf32>
    %cst_39 = arith.constant dense<0.000000e+00> : vector<64xf32>
    %56 = vector.multi_reduction <add>, %55, %cst_39 [1] : vector<64x64xf32> to vector<64xf32>
    %57 = vector.shape_cast %56 : vector<64xf32> to vector<64x1xf32>
    %58 = tpu.reciprocal %57 {approx = true} : vector<64x1xf32> -> vector<64x1xf32>
    %59 = vector.broadcast %58 : vector<64x1xf32> to vector<64x64xf32>
    %60 = arith.mulf %55, %59 : vector<64x64xf32>
    %cst_40 = arith.constant dense<0.000000e+00> : vector<64x16xf32>
    %61 = tpu.matmul %60, %47, %cst_40 {dimension_numbers = #tpu.dot_dimension_numbers<[1], [0], [0], [1], [0, 0, 1, 1], [], []>} : vector<64x64xf32>, vector<64x16xf32>, vector<64x16xf32> -> vector<64x16xf32>
    %c0_41 = arith.constant 0 : index
    %c0_42 = arith.constant 0 : index
    %62 = vector.load %arg14[%c0_41, %c0_42] : memref<64x10xf32, #tpu.memory_space<vmem>>, vector<64x10xf32>
    %cst_43 = arith.constant dense<0.000000e+00> : vector<16x10xf32>
    %63 = tpu.matmul %30, %62, %cst_43 {dimension_numbers = #tpu.dot_dimension_numbers<[1], [0], [0], [1], [0, 0, 1, 1], [], []>} : vector<16x64xf32>, vector<64x10xf32>, vector<16x10xf32> -> vector<16x10xf32>
    %c0_44 = arith.constant 0 : index
    %c0_45 = arith.constant 0 : index
    %64 = vector.load %arg15[%c0_44, %c0_45] : memref<1x10xf32, #tpu.memory_space<vmem>>, vector<1x10xf32>
    %65 = vector.broadcast %64 : vector<1x10xf32> to vector<16x10xf32>
    %66 = arith.addf %63, %65 : vector<16x10xf32>
    %c0_46 = arith.constant 0 : index
    %c0_47 = arith.constant 0 : index
    %67 = vector.load %arg16[%c0_46, %c0_47] : memref<64x10xf32, #tpu.memory_space<vmem>>, vector<64x10xf32>
    %cst_48 = arith.constant dense<0.000000e+00> : vector<16x10xf32>
    %68 = tpu.matmul %61, %67, %cst_48 {dimension_numbers = #tpu.dot_dimension_numbers<[0], [0], [1], [1], [0, 1, 1, 1], [], []>} : vector<64x16xf32>, vector<64x10xf32>, vector<16x10xf32> -> vector<16x10xf32>
    %c0_49 = arith.constant 0 : index
    %c0_50 = arith.constant 0 : index
    %69 = vector.load %arg17[%c0_49, %c0_50] : memref<1x10xf32, #tpu.memory_space<vmem>>, vector<1x10xf32>
    %70 = vector.broadcast %69 : vector<1x10xf32> to vector<16x10xf32>
    %71 = arith.addf %68, %70 : vector<16x10xf32>
    %cst_51 = arith.constant dense<0.000000e+00> : vector<10x10xf32>
    %72 = tpu.matmul %66, %71, %cst_51 {dimension_numbers = #tpu.dot_dimension_numbers<[0], [0], [1], [1], [0, 1, 1, 1], [], []>} : vector<16x10xf32>, vector<16x10xf32>, vector<10x10xf32> -> vector<10x10xf32>
    %c0_52 = arith.constant 0 : index
    %c0_53 = arith.constant 0 : index
    %c0_54 = arith.constant 0 : index
    %73 = vector.load %arg22[%c0_52, %c0_53, %c0_54] : memref<1x10x10xf32, #tpu.memory_space<vmem>>, vector<1x10x10xf32>
    %74 = vector.shape_cast %73 : vector<1x10x10xf32> to vector<10x10xf32>
    %75 = vector.shape_cast %72 : vector<10x10xf32> to vector<1x10x10xf32>
    tpu.vector_store %arg22[%c0_52, %c0_53, %c0_54], %75 {strides = array<i32>} : memref<1x10x10xf32, #tpu.memory_space<vmem>>, vector<1x10x10xf32>,
    %c0_55 = arith.constant 0 : index
    %c0_56 = arith.constant 0 : index
    %c0_57 = arith.constant 0 : index
    %76 = vector.load %arg18[%c0_55, %c0_56, %c0_57] : memref<1x16x64xf32, #tpu.memory_space<vmem>>, vector<1x16x64xf32>
    %77 = vector.shape_cast %76 : vector<1x16x64xf32> to vector<16x64xf32>
    %78 = vector.shape_cast %30 : vector<16x64xf32> to vector<1x16x64xf32>
    tpu.vector_store %arg18[%c0_55, %c0_56, %c0_57], %78 {strides = array<i32>} : memref<1x16x64xf32, #tpu.memory_space<vmem>>, vector<1x16x64xf32>,
    %c0_58 = arith.constant 0 : index
    %c0_59 = arith.constant 0 : index
    %c0_60 = arith.constant 0 : index
    %79 = vector.load %arg19[%c0_58, %c0_59, %c0_60] : memref<1x64x16xf32, #tpu.memory_space<vmem>>, vector<1x64x16xf32>
    %80 = vector.shape_cast %79 : vector<1x64x16xf32> to vector<64x16xf32>
    %81 = vector.shape_cast %61 : vector<64x16xf32> to vector<1x64x16xf32>
    tpu.vector_store %arg19[%c0_58, %c0_59, %c0_60], %81 {strides = array<i32>} : memref<1x64x16xf32, #tpu.memory_space<vmem>>, vector<1x64x16xf32>,
    %c0_61 = arith.constant 0 : index
    %c0_62 = arith.constant 0 : index
    %c0_63 = arith.constant 0 : index
    %82 = vector.load %arg20[%c0_61, %c0_62, %c0_63] : memref<1x16x16xf32, #tpu.memory_space<vmem>>, vector<1x16x16xf32>
    %83 = vector.shape_cast %82 : vector<1x16x16xf32> to vector<16x16xf32>
    %84 = vector.shape_cast %29 : vector<16x16xf32> to vector<1x16x16xf32>
    tpu.vector_store %arg20[%c0_61, %c0_62, %c0_63], %84 {strides = array<i32>} : memref<1x16x16xf32, #tpu.memory_space<vmem>>, vector<1x16x16xf32>,
    %c0_64 = arith.constant 0 : index
    %c0_65 = arith.constant 0 : index
    %c0_66 = arith.constant 0 : index
    %85 = vector.load %arg21[%c0_64, %c0_65, %c0_66] : memref<1x64x64xf32, #tpu.memory_space<vmem>>, vector<1x64x64xf32>
    %86 = vector.shape_cast %85 : vector<1x64x64xf32> to vector<64x64xf32>
    %87 = vector.shape_cast %60 : vector<64x64xf32> to vector<1x64x64xf32>
    tpu.vector_store %arg21[%c0_64, %c0_65, %c0_66], %87 {strides = array<i32>} : memref<1x64x64xf32, #tpu.memory_space<vmem>>, vector<1x64x64xf32>,
    return
  }
  func.func @transform_0(%arg0: i32) -> (i32, i32, i32) {
    %c0_i32 = arith.constant 0 : i32
    %c0_i32_0 = arith.constant 0 : i32
    %c0_i32_1 = arith.constant 0 : i32
    return %arg0, %c0_i32, %c0_i32_0 : i32, i32, i32
  }
  func.func @transform_1(%arg0: i32) -> (i32, i32) {
    %c0_i32 = arith.constant 0 : i32
    %c0_i32_0 = arith.constant 0 : i32
    %c0_i32_1 = arith.constant 0 : i32
    return %c0_i32, %c0_i32_0 : i32, i32
  }
  func.func @transform_2(%arg0: i32) -> (i32, i32) {
    %c0_i32 = arith.constant 0 : i32
    %c0_i32_0 = arith.constant 0 : i32
    %c0_i32_1 = arith.constant 0 : i32
    return %c0_i32, %c0_i32_0 : i32, i32
  }
  func.func @transform_3(%arg0: i32) -> (i32, i32) {
    %c0_i32 = arith.constant 0 : i32
    %c0_i32_0 = arith.constant 0 : i32
    %c0_i32_1 = arith.constant 0 : i32
    return %c0_i32, %c0_i32_0 : i32, i32
  }
  func.func @transform_4(%arg0: i32) -> (i32, i32) {
    %c0_i32 = arith.constant 0 : i32
    %c0_i32_0 = arith.constant 0 : i32
    %c0_i32_1 = arith.constant 0 : i32
    return %c0_i32, %c0_i32_0 : i32, i32
  }
  func.func @transform_5(%arg0: i32) -> (i32, i32) {
    %c0_i32 = arith.constant 0 : i32
    %c0_i32_0 = arith.constant 0 : i32
    %c0_i32_1 = arith.constant 0 : i32
    return %c0_i32, %c0_i32_0 : i32, i32
  }
  func.func @transform_6(%arg0: i32) -> (i32, i32) {
    %c0_i32 = arith.constant 0 : i32
    %c0_i32_0 = arith.constant 0 : i32
    %c0_i32_1 = arith.constant 0 : i32
    return %c0_i32, %c0_i32_0 : i32, i32
  }
  func.func @transform_7(%arg0: i32) -> (i32, i32) {
    %c0_i32 = arith.constant 0 : i32
    %c0_i32_0 = arith.constant 0 : i32
    %c0_i32_1 = arith.constant 0 : i32
    return %c0_i32, %c0_i32_0 : i32, i32
  }
  func.func @transform_8(%arg0: i32) -> (i32, i32) {
    %c0_i32 = arith.constant 0 : i32
    %c0_i32_0 = arith.constant 0 : i32
    %c0_i32_1 = arith.constant 0 : i32
    return %c0_i32, %c0_i32_0 : i32, i32
  }
  func.func @transform_9(%arg0: i32) -> (i32, i32) {
    %c0_i32 = arith.constant 0 : i32
    %c0_i32_0 = arith.constant 0 : i32
    %c0_i32_1 = arith.constant 0 : i32
    return %c0_i32, %c0_i32_0 : i32, i32
  }
  func.func @transform_10(%arg0: i32) -> (i32, i32) {
    %c0_i32 = arith.constant 0 : i32
    %c0_i32_0 = arith.constant 0 : i32
    %c0_i32_1 = arith.constant 0 : i32
    return %c0_i32, %c0_i32_0 : i32, i32
  }
  func.func @transform_11(%arg0: i32) -> (i32, i32) {
    %c0_i32 = arith.constant 0 : i32
    %c0_i32_0 = arith.constant 0 : i32
    %c0_i32_1 = arith.constant 0 : i32
    return %c0_i32, %c0_i32_0 : i32, i32
  }
  func.func @transform_12(%arg0: i32) -> (i32, i32) {
    %c0_i32 = arith.constant 0 : i32
    %c0_i32_0 = arith.constant 0 : i32
    %c0_i32_1 = arith.constant 0 : i32
    return %c0_i32, %c0_i32_0 : i32, i32
  }
  func.func @transform_13(%arg0: i32) -> (i32, i32) {
    %c0_i32 = arith.constant 0 : i32
    %c0_i32_0 = arith.constant 0 : i32
    %c0_i32_1 = arith.constant 0 : i32
    return %c0_i32, %c0_i32_0 : i32, i32
  }
  func.func @transform_14(%arg0: i32) -> (i32, i32) {
    %c0_i32 = arith.constant 0 : i32
    %c0_i32_0 = arith.constant 0 : i32
    %c0_i32_1 = arith.constant 0 : i32
    return %c0_i32, %c0_i32_0 : i32, i32
  }
  func.func @transform_15(%arg0: i32) -> (i32, i32) {
    %c0_i32 = arith.constant 0 : i32
    %c0_i32_0 = arith.constant 0 : i32
    %c0_i32_1 = arith.constant 0 : i32
    return %c0_i32, %c0_i32_0 : i32, i32
  }
  func.func @transform_16(%arg0: i32) -> (i32, i32) {
    %c0_i32 = arith.constant 0 : i32
    %c0_i32_0 = arith.constant 0 : i32
    %c0_i32_1 = arith.constant 0 : i32
    return %c0_i32, %c0_i32_0 : i32, i32
  }
  func.func @transform_17(%arg0: i32) -> (i32, i32, i32) {
    %c0_i32 = arith.constant 0 : i32
    %c0_i32_0 = arith.constant 0 : i32
    %c0_i32_1 = arith.constant 0 : i32
    return %arg0, %c0_i32, %c0_i32_0 : i32, i32, i32
  }
  func.func @transform_18(%arg0: i32) -> (i32, i32, i32) {
    %c0_i32 = arith.constant 0 : i32
    %c0_i32_0 = arith.constant 0 : i32
    %c0_i32_1 = arith.constant 0 : i32
    return %arg0, %c0_i32, %c0_i32_0 : i32, i32, i32
  }
  func.func @transform_19(%arg0: i32) -> (i32, i32, i32) {
    %c0_i32 = arith.constant 0 : i32
    %c0_i32_0 = arith.constant 0 : i32
    %c0_i32_1 = arith.constant 0 : i32
    return %arg0, %c0_i32, %c0_i32_0 : i32, i32, i32
  }
  func.func @transform_20(%arg0: i32) -> (i32, i32, i32) {
    %c0_i32 = arith.constant 0 : i32
    %c0_i32_0 = arith.constant 0 : i32
    %c0_i32_1 = arith.constant 0 : i32
    return %arg0, %c0_i32, %c0_i32_0 : i32, i32, i32
  }
  func.func @transform_21(%arg0: i32) -> (i32, i32, i32) {
    %c0_i32 = arith.constant 0 : i32
    %c0_i32_0 = arith.constant 0 : i32
    %c0_i32_1 = arith.constant 0 : i32
    return %arg0, %c0_i32, %c0_i32_0 : i32, i32, i32
  }
}

module attributes {stable_mosaic.version = 11 : i64} {
  func.func @tfwa_branch_kernel(%arg0: i32, %arg1: memref<1x24x64xbf16, #tpu.memory_space<vmem>>, %arg2: memref<64x64xbf16, #tpu.memory_space<vmem>>, %arg3: memref<64x64xbf16, #tpu.memory_space<vmem>>, %arg4: memref<64x64xbf16, #tpu.memory_space<vmem>>, %arg5: memref<1x64xf32, #tpu.memory_space<vmem>>, %arg6: memref<1x64xf32, #tpu.memory_space<vmem>>, %arg7: memref<1x64xf32, #tpu.memory_space<vmem>>, %arg8: memref<24x24xf32, #tpu.memory_space<vmem>>, %arg9: memref<24x24xf32, #tpu.memory_space<vmem>>, %arg10: memref<24x24xf32, #tpu.memory_space<vmem>>, %arg11: memref<1x24xf32, #tpu.memory_space<vmem>>, %arg12: memref<1x24xf32, #tpu.memory_space<vmem>>, %arg13: memref<1x24xf32, #tpu.memory_space<vmem>>, %arg14: memref<64x10xf32, #tpu.memory_space<vmem>>, %arg15: memref<1x10xf32, #tpu.memory_space<vmem>>, %arg16: memref<64x10xf32, #tpu.memory_space<vmem>>, %arg17: memref<1x10xf32, #tpu.memory_space<vmem>>, %arg18: memref<1x24x64xf32, #tpu.memory_space<vmem>>, %arg19: memref<1x64x24xf32, #tpu.memory_space<vmem>>, %arg20: memref<1x24x24xf32, #tpu.memory_space<vmem>>, %arg21: memref<1x64x64xf32, #tpu.memory_space<vmem>>, %arg22: memref<1x10x10xf32, #tpu.memory_space<vmem>>) attributes {dimension_semantics = [#tpu.dimension_semantics<parallel>], iteration_bounds = array<i64: 2>, scalar_prefetch = 0 : i64, scratch_operands = 0 : i64, tpu.core_type = #tpu.core_type<tc>, window_params = [{transform_indices = @transform_0, window_bounds = array<i64: 1, 24, 64>}, {pipeline_mode = #tpu.pipeline_mode<synchronous>, transform_indices = @transform_1, window_bounds = array<i64: 64, 64>}, {pipeline_mode = #tpu.pipeline_mode<synchronous>, transform_indices = @transform_2, window_bounds = array<i64: 64, 64>}, {pipeline_mode = #tpu.pipeline_mode<synchronous>, transform_indices = @transform_3, window_bounds = array<i64: 64, 64>}, {pipeline_mode = #tpu.pipeline_mode<synchronous>, transform_indices = @transform_4, window_bounds = array<i64: 1, 64>}, {pipeline_mode = #tpu.pipeline_mode<synchronous>, transform_indices = @transform_5, window_bounds = array<i64: 1, 64>}, {pipeline_mode = #tpu.pipeline_mode<synchronous>, transform_indices = @transform_6, window_bounds = array<i64: 1, 64>}, {pipeline_mode = #tpu.pipeline_mode<synchronous>, transform_indices = @transform_7, window_bounds = array<i64: 24, 24>}, {pipeline_mode = #tpu.pipeline_mode<synchronous>, transform_indices = @transform_8, window_bounds = array<i64: 24, 24>}, {pipeline_mode = #tpu.pipeline_mode<synchronous>, transform_indices = @transform_9, window_bounds = array<i64: 24, 24>}, {pipeline_mode = #tpu.pipeline_mode<synchronous>, transform_indices = @transform_10, window_bounds = array<i64: 1, 24>}, {pipeline_mode = #tpu.pipeline_mode<synchronous>, transform_indices = @transform_11, window_bounds = array<i64: 1, 24>}, {pipeline_mode = #tpu.pipeline_mode<synchronous>, transform_indices = @transform_12, window_bounds = array<i64: 1, 24>}, {pipeline_mode = #tpu.pipeline_mode<synchronous>, transform_indices = @transform_13, window_bounds = array<i64: 64, 10>}, {pipeline_mode = #tpu.pipeline_mode<synchronous>, transform_indices = @transform_14, window_bounds = array<i64: 1, 10>}, {pipeline_mode = #tpu.pipeline_mode<synchronous>, transform_indices = @transform_15, window_bounds = array<i64: 64, 10>}, {pipeline_mode = #tpu.pipeline_mode<synchronous>, transform_indices = @transform_16, window_bounds = array<i64: 1, 10>}, {transform_indices = @transform_17, window_bounds = array<i64: 1, 24, 64>}, {transform_indices = @transform_18, window_bounds = array<i64: 1, 64, 24>}, {transform_indices = @transform_19, window_bounds = array<i64: 1, 24, 24>}, {transform_indices = @transform_20, window_bounds = array<i64: 1, 64, 64>}, {transform_indices = @transform_21, window_bounds = array<i64: 1, 10, 10>}]} {
    %c0 = arith.constant 0 : index
    %c0_0 = arith.constant 0 : index
    %c0_1 = arith.constant 0 : index
    %0 = vector.load %arg1[%c0, %c0_0, %c0_1] : memref<1x24x64xbf16, #tpu.memory_space<vmem>>, vector<1x24x64xbf16>
    %1 = vector.shape_cast %0 : vector<1x24x64xbf16> to vector<24x64xbf16>
    %c0_2 = arith.constant 0 : index
    %c0_3 = arith.constant 0 : index
    %2 = vector.load %arg2[%c0_2, %c0_3] : memref<64x64xbf16, #tpu.memory_space<vmem>>, vector<64x64xbf16>
    %cst = arith.constant dense<0.000000e+00> : vector<24x64xf32>
    %3 = tpu.matmul %1, %2, %cst {dimension_numbers = #tpu.dot_dimension_numbers<[1], [0], [0], [1], [0, 0, 1, 1], [], []>} : vector<24x64xbf16>, vector<64x64xbf16>, vector<24x64xf32> -> vector<24x64xf32>
    %c0_4 = arith.constant 0 : index
    %c0_5 = arith.constant 0 : index
    %4 = vector.load %arg5[%c0_4, %c0_5] : memref<1x64xf32, #tpu.memory_space<vmem>>, vector<1x64xf32>
    %5 = vector.broadcast %4 : vector<1x64xf32> to vector<24x64xf32>
    %6 = arith.addf %3, %5 : vector<24x64xf32>
    %c0_6 = arith.constant 0 : index
    %c0_7 = arith.constant 0 : index
    %7 = vector.load %arg3[%c0_6, %c0_7] : memref<64x64xbf16, #tpu.memory_space<vmem>>, vector<64x64xbf16>
    %cst_8 = arith.constant dense<0.000000e+00> : vector<24x64xf32>
    %8 = tpu.matmul %1, %7, %cst_8 {dimension_numbers = #tpu.dot_dimension_numbers<[1], [0], [0], [1], [0, 0, 1, 1], [], []>} : vector<24x64xbf16>, vector<64x64xbf16>, vector<24x64xf32> -> vector<24x64xf32>
    %c0_9 = arith.constant 0 : index
    %c0_10 = arith.constant 0 : index
    %9 = vector.load %arg6[%c0_9, %c0_10] : memref<1x64xf32, #tpu.memory_space<vmem>>, vector<1x64xf32>
    %10 = vector.broadcast %9 : vector<1x64xf32> to vector<24x64xf32>
    %11 = arith.addf %8, %10 : vector<24x64xf32>
    %c0_11 = arith.constant 0 : index
    %c0_12 = arith.constant 0 : index
    %12 = vector.load %arg4[%c0_11, %c0_12] : memref<64x64xbf16, #tpu.memory_space<vmem>>, vector<64x64xbf16>
    %cst_13 = arith.constant dense<0.000000e+00> : vector<24x64xf32>
    %13 = tpu.matmul %1, %12, %cst_13 {dimension_numbers = #tpu.dot_dimension_numbers<[1], [0], [0], [1], [0, 0, 1, 1], [], []>} : vector<24x64xbf16>, vector<64x64xbf16>, vector<24x64xf32> -> vector<24x64xf32>
    %c0_14 = arith.constant 0 : index
    %c0_15 = arith.constant 0 : index
    %14 = vector.load %arg7[%c0_14, %c0_15] : memref<1x64xf32, #tpu.memory_space<vmem>>, vector<1x64xf32>
    %15 = vector.broadcast %14 : vector<1x64xf32> to vector<24x64xf32>
    %16 = arith.addf %13, %15 : vector<24x64xf32>
    %cst_16 = arith.constant dense<0.000000e+00> : vector<24x24xf32>
    %17 = tpu.matmul %11, %6, %cst_16 {dimension_numbers = #tpu.dot_dimension_numbers<[1], [1], [0], [0], [0, 0, 1, 0], [], []>} : vector<24x64xf32>, vector<24x64xf32>, vector<24x24xf32> -> vector<24x24xf32>
    %cst_17 = arith.constant 1.250000e-01 : f32
    %18 = vector.broadcast %cst_17 : f32 to vector<24x24xf32>
    %19 = arith.mulf %17, %18 : vector<24x24xf32>
    %cst_18 = arith.constant dense<0xFF800000> : vector<24xf32>
    %20 = vector.multi_reduction <maximumf>, %19, %cst_18 [1] : vector<24x24xf32> to vector<24xf32>
    %21 = vector.shape_cast %20 : vector<24xf32> to vector<24x1xf32>
    %22 = vector.broadcast %21 : vector<24x1xf32> to vector<24x24xf32>
    %23 = arith.subf %19, %22 : vector<24x24xf32>
    %24 = math.exp %23 : vector<24x24xf32>
    %cst_19 = arith.constant dense<0.000000e+00> : vector<24xf32>
    %25 = vector.multi_reduction <add>, %24, %cst_19 [1] : vector<24x24xf32> to vector<24xf32>
    %26 = vector.shape_cast %25 : vector<24xf32> to vector<24x1xf32>
    %27 = tpu.reciprocal %26 {approx = true} : vector<24x1xf32> -> vector<24x1xf32>
    %28 = vector.broadcast %27 : vector<24x1xf32> to vector<24x24xf32>
    %29 = arith.mulf %24, %28 : vector<24x24xf32>
    %cst_20 = arith.constant dense<0.000000e+00> : vector<24x64xf32>
    %30 = tpu.matmul %29, %16, %cst_20 {dimension_numbers = #tpu.dot_dimension_numbers<[1], [0], [0], [1], [0, 0, 1, 1], [], []>} : vector<24x24xf32>, vector<24x64xf32>, vector<24x64xf32> -> vector<24x64xf32>
    %31 = arith.extf %1 : vector<24x64xbf16> to vector<24x64xf32>
    %32 = tpu.transpose %31, [1, 0] : vector<24x64xf32> -> vector<64x24xf32>
    %c0_21 = arith.constant 0 : index
    %c0_22 = arith.constant 0 : index
    %33 = vector.load %arg8[%c0_21, %c0_22] : memref<24x24xf32, #tpu.memory_space<vmem>>, vector<24x24xf32>
    %cst_23 = arith.constant dense<0.000000e+00> : vector<64x24xf32>
    %34 = tpu.matmul %32, %33, %cst_23 {dimension_numbers = #tpu.dot_dimension_numbers<[1], [0], [0], [1], [0, 0, 1, 1], [], []>} : vector<64x24xf32>, vector<24x24xf32>, vector<64x24xf32> -> vector<64x24xf32>
    %c0_24 = arith.constant 0 : index
    %c0_25 = arith.constant 0 : index
    %35 = vector.load %arg11[%c0_24, %c0_25] : memref<1x24xf32, #tpu.memory_space<vmem>>, vector<1x24xf32>
    %36 = vector.broadcast %35 : vector<1x24xf32> to vector<64x24xf32>
    %37 = arith.addf %34, %36 : vector<64x24xf32>
    %c0_26 = arith.constant 0 : index
    %c0_27 = arith.constant 0 : index
    %38 = vector.load %arg9[%c0_26, %c0_27] : memref<24x24xf32, #tpu.memory_space<vmem>>, vector<24x24xf32>
    %cst_28 = arith.constant dense<0.000000e+00> : vector<64x24xf32>
    %39 = tpu.matmul %32, %38, %cst_28 {dimension_numbers = #tpu.dot_dimension_numbers<[1], [0], [0], [1], [0, 0, 1, 1], [], []>} : vector<64x24xf32>, vector<24x24xf32>, vector<64x24xf32> -> vector<64x24xf32>
    %c0_29 = arith.constant 0 : index
    %c0_30 = arith.constant 0 : index
    %40 = vector.load %arg12[%c0_29, %c0_30] : memref<1x24xf32, #tpu.memory_space<vmem>>, vector<1x24xf32>
    %41 = vector.broadcast %40 : vector<1x24xf32> to vector<64x24xf32>
    %42 = arith.addf %39, %41 : vector<64x24xf32>
    %c0_31 = arith.constant 0 : index
    %c0_32 = arith.constant 0 : index
    %43 = vector.load %arg10[%c0_31, %c0_32] : memref<24x24xf32, #tpu.memory_space<vmem>>, vector<24x24xf32>
    %cst_33 = arith.constant dense<0.000000e+00> : vector<64x24xf32>
    %44 = tpu.matmul %32, %43, %cst_33 {dimension_numbers = #tpu.dot_dimension_numbers<[1], [0], [0], [1], [0, 0, 1, 1], [], []>} : vector<64x24xf32>, vector<24x24xf32>, vector<64x24xf32> -> vector<64x24xf32>
    %c0_34 = arith.constant 0 : index
    %c0_35 = arith.constant 0 : index
    %45 = vector.load %arg13[%c0_34, %c0_35] : memref<1x24xf32, #tpu.memory_space<vmem>>, vector<1x24xf32>
    %46 = vector.broadcast %45 : vector<1x24xf32> to vector<64x24xf32>
    %47 = arith.addf %44, %46 : vector<64x24xf32>
    %cst_36 = arith.constant dense<0.000000e+00> : vector<64x64xf32>
    %48 = tpu.matmul %42, %37, %cst_36 {dimension_numbers = #tpu.dot_dimension_numbers<[1], [1], [0], [0], [0, 0, 1, 0], [], []>} : vector<64x24xf32>, vector<64x24xf32>, vector<64x64xf32> -> vector<64x64xf32>
    %cst_37 = arith.constant 0.204124153 : f32
    %49 = vector.broadcast %cst_37 : f32 to vector<64x64xf32>
    %50 = arith.mulf %48, %49 : vector<64x64xf32>
    %cst_38 = arith.constant dense<0xFF800000> : vector<64xf32>
    %51 = vector.multi_reduction <maximumf>, %50, %cst_38 [1] : vector<64x64xf32> to vector<64xf32>
    %52 = vector.shape_cast %51 : vector<64xf32> to vector<64x1xf32>
    %53 = vector.broadcast %52 : vector<64x1xf32> to vector<64x64xf32>
    %54 = arith.subf %50, %53 : vector<64x64xf32>
    %55 = math.exp %54 : vector<64x64xf32>
    %cst_39 = arith.constant dense<0.000000e+00> : vector<64xf32>
    %56 = vector.multi_reduction <add>, %55, %cst_39 [1] : vector<64x64xf32> to vector<64xf32>
    %57 = vector.shape_cast %56 : vector<64xf32> to vector<64x1xf32>
    %58 = tpu.reciprocal %57 {approx = true} : vector<64x1xf32> -> vector<64x1xf32>
    %59 = vector.broadcast %58 : vector<64x1xf32> to vector<64x64xf32>
    %60 = arith.mulf %55, %59 : vector<64x64xf32>
    %cst_40 = arith.constant dense<0.000000e+00> : vector<64x24xf32>
    %61 = tpu.matmul %60, %47, %cst_40 {dimension_numbers = #tpu.dot_dimension_numbers<[1], [0], [0], [1], [0, 0, 1, 1], [], []>} : vector<64x64xf32>, vector<64x24xf32>, vector<64x24xf32> -> vector<64x24xf32>
    %c0_41 = arith.constant 0 : index
    %c0_42 = arith.constant 0 : index
    %62 = vector.load %arg14[%c0_41, %c0_42] : memref<64x10xf32, #tpu.memory_space<vmem>>, vector<64x10xf32>
    %cst_43 = arith.constant dense<0.000000e+00> : vector<24x10xf32>
    %63 = tpu.matmul %30, %62, %cst_43 {dimension_numbers = #tpu.dot_dimension_numbers<[1], [0], [0], [1], [0, 0, 1, 1], [], []>} : vector<24x64xf32>, vector<64x10xf32>, vector<24x10xf32> -> vector<24x10xf32>
    %c0_44 = arith.constant 0 : index
    %c0_45 = arith.constant 0 : index
    %64 = vector.load %arg15[%c0_44, %c0_45] : memref<1x10xf32, #tpu.memory_space<vmem>>, vector<1x10xf32>
    %65 = vector.broadcast %64 : vector<1x10xf32> to vector<24x10xf32>
    %66 = arith.addf %63, %65 : vector<24x10xf32>
    %c0_46 = arith.constant 0 : index
    %c0_47 = arith.constant 0 : index
    %67 = vector.load %arg16[%c0_46, %c0_47] : memref<64x10xf32, #tpu.memory_space<vmem>>, vector<64x10xf32>
    %cst_48 = arith.constant dense<0.000000e+00> : vector<24x10xf32>
    %68 = tpu.matmul %61, %67, %cst_48 {dimension_numbers = #tpu.dot_dimension_numbers<[0], [0], [1], [1], [0, 1, 1, 1], [], []>} : vector<64x24xf32>, vector<64x10xf32>, vector<24x10xf32> -> vector<24x10xf32>
    %c0_49 = arith.constant 0 : index
    %c0_50 = arith.constant 0 : index
    %69 = vector.load %arg17[%c0_49, %c0_50] : memref<1x10xf32, #tpu.memory_space<vmem>>, vector<1x10xf32>
    %70 = vector.broadcast %69 : vector<1x10xf32> to vector<24x10xf32>
    %71 = arith.addf %68, %70 : vector<24x10xf32>
    %cst_51 = arith.constant dense<0.000000e+00> : vector<10x10xf32>
    %72 = tpu.matmul %66, %71, %cst_51 {dimension_numbers = #tpu.dot_dimension_numbers<[0], [0], [1], [1], [0, 1, 1, 1], [], []>} : vector<24x10xf32>, vector<24x10xf32>, vector<10x10xf32> -> vector<10x10xf32>
    %c0_52 = arith.constant 0 : index
    %c0_53 = arith.constant 0 : index
    %c0_54 = arith.constant 0 : index
    %73 = vector.load %arg22[%c0_52, %c0_53, %c0_54] : memref<1x10x10xf32, #tpu.memory_space<vmem>>, vector<1x10x10xf32>
    %74 = vector.shape_cast %73 : vector<1x10x10xf32> to vector<10x10xf32>
    %75 = vector.shape_cast %72 : vector<10x10xf32> to vector<1x10x10xf32>
    tpu.vector_store %arg22[%c0_52, %c0_53, %c0_54], %75 {strides = array<i32>} : memref<1x10x10xf32, #tpu.memory_space<vmem>>, vector<1x10x10xf32>,
    %c0_55 = arith.constant 0 : index
    %c0_56 = arith.constant 0 : index
    %c0_57 = arith.constant 0 : index
    %76 = vector.load %arg18[%c0_55, %c0_56, %c0_57] : memref<1x24x64xf32, #tpu.memory_space<vmem>>, vector<1x24x64xf32>
    %77 = vector.shape_cast %76 : vector<1x24x64xf32> to vector<24x64xf32>
    %78 = vector.shape_cast %30 : vector<24x64xf32> to vector<1x24x64xf32>
    tpu.vector_store %arg18[%c0_55, %c0_56, %c0_57], %78 {strides = array<i32>} : memref<1x24x64xf32, #tpu.memory_space<vmem>>, vector<1x24x64xf32>,
    %c0_58 = arith.constant 0 : index
    %c0_59 = arith.constant 0 : index
    %c0_60 = arith.constant 0 : index
    %79 = vector.load %arg19[%c0_58, %c0_59, %c0_60] : memref<1x64x24xf32, #tpu.memory_space<vmem>>, vector<1x64x24xf32>
    %80 = vector.shape_cast %79 : vector<1x64x24xf32> to vector<64x24xf32>
    %81 = vector.shape_cast %61 : vector<64x24xf32> to vector<1x64x24xf32>
    tpu.vector_store %arg19[%c0_58, %c0_59, %c0_60], %81 {strides = array<i32>} : memref<1x64x24xf32, #tpu.memory_space<vmem>>, vector<1x64x24xf32>,
    %c0_61 = arith.constant 0 : index
    %c0_62 = arith.constant 0 : index
    %c0_63 = arith.constant 0 : index
    %82 = vector.load %arg20[%c0_61, %c0_62, %c0_63] : memref<1x24x24xf32, #tpu.memory_space<vmem>>, vector<1x24x24xf32>
    %83 = vector.shape_cast %82 : vector<1x24x24xf32> to vector<24x24xf32>
    %84 = vector.shape_cast %29 : vector<24x24xf32> to vector<1x24x24xf32>
    tpu.vector_store %arg20[%c0_61, %c0_62, %c0_63], %84 {strides = array<i32>} : memref<1x24x24xf32, #tpu.memory_space<vmem>>, vector<1x24x24xf32>,
    %c0_64 = arith.constant 0 : index
    %c0_65 = arith.constant 0 : index
    %c0_66 = arith.constant 0 : index
    %85 = vector.load %arg21[%c0_64, %c0_65, %c0_66] : memref<1x64x64xf32, #tpu.memory_space<vmem>>, vector<1x64x64xf32>
    %86 = vector.shape_cast %85 : vector<1x64x64xf32> to vector<64x64xf32>
    %87 = vector.shape_cast %60 : vector<64x64xf32> to vector<1x64x64xf32>
    tpu.vector_store %arg21[%c0_64, %c0_65, %c0_66], %87 {strides = array<i32>} : memref<1x64x64xf32, #tpu.memory_space<vmem>>, vector<1x64x64xf32>,
    return
  }
  func.func @transform_0(%arg0: i32) -> (i32, i32, i32) {
    %c0_i32 = arith.constant 0 : i32
    %c0_i32_0 = arith.constant 0 : i32
    %c0_i32_1 = arith.constant 0 : i32
    return %arg0, %c0_i32, %c0_i32_0 : i32, i32, i32
  }
  func.func @transform_1(%arg0: i32) -> (i32, i32) {
    %c0_i32 = arith.constant 0 : i32
    %c0_i32_0 = arith.constant 0 : i32
    %c0_i32_1 = arith.constant 0 : i32
    return %c0_i32, %c0_i32_0 : i32, i32
  }
  func.func @transform_2(%arg0: i32) -> (i32, i32) {
    %c0_i32 = arith.constant 0 : i32
    %c0_i32_0 = arith.constant 0 : i32
    %c0_i32_1 = arith.constant 0 : i32
    return %c0_i32, %c0_i32_0 : i32, i32
  }
  func.func @transform_3(%arg0: i32) -> (i32, i32) {
    %c0_i32 = arith.constant 0 : i32
    %c0_i32_0 = arith.constant 0 : i32
    %c0_i32_1 = arith.constant 0 : i32
    return %c0_i32, %c0_i32_0 : i32, i32
  }
  func.func @transform_4(%arg0: i32) -> (i32, i32) {
    %c0_i32 = arith.constant 0 : i32
    %c0_i32_0 = arith.constant 0 : i32
    %c0_i32_1 = arith.constant 0 : i32
    return %c0_i32, %c0_i32_0 : i32, i32
  }
  func.func @transform_5(%arg0: i32) -> (i32, i32) {
    %c0_i32 = arith.constant 0 : i32
    %c0_i32_0 = arith.constant 0 : i32
    %c0_i32_1 = arith.constant 0 : i32
    return %c0_i32, %c0_i32_0 : i32, i32
  }
  func.func @transform_6(%arg0: i32) -> (i32, i32) {
    %c0_i32 = arith.constant 0 : i32
    %c0_i32_0 = arith.constant 0 : i32
    %c0_i32_1 = arith.constant 0 : i32
    return %c0_i32, %c0_i32_0 : i32, i32
  }
  func.func @transform_7(%arg0: i32) -> (i32, i32) {
    %c0_i32 = arith.constant 0 : i32
    %c0_i32_0 = arith.constant 0 : i32
    %c0_i32_1 = arith.constant 0 : i32
    return %c0_i32, %c0_i32_0 : i32, i32
  }
  func.func @transform_8(%arg0: i32) -> (i32, i32) {
    %c0_i32 = arith.constant 0 : i32
    %c0_i32_0 = arith.constant 0 : i32
    %c0_i32_1 = arith.constant 0 : i32
    return %c0_i32, %c0_i32_0 : i32, i32
  }
  func.func @transform_9(%arg0: i32) -> (i32, i32) {
    %c0_i32 = arith.constant 0 : i32
    %c0_i32_0 = arith.constant 0 : i32
    %c0_i32_1 = arith.constant 0 : i32
    return %c0_i32, %c0_i32_0 : i32, i32
  }
  func.func @transform_10(%arg0: i32) -> (i32, i32) {
    %c0_i32 = arith.constant 0 : i32
    %c0_i32_0 = arith.constant 0 : i32
    %c0_i32_1 = arith.constant 0 : i32
    return %c0_i32, %c0_i32_0 : i32, i32
  }
  func.func @transform_11(%arg0: i32) -> (i32, i32) {
    %c0_i32 = arith.constant 0 : i32
    %c0_i32_0 = arith.constant 0 : i32
    %c0_i32_1 = arith.constant 0 : i32
    return %c0_i32, %c0_i32_0 : i32, i32
  }
  func.func @transform_12(%arg0: i32) -> (i32, i32) {
    %c0_i32 = arith.constant 0 : i32
    %c0_i32_0 = arith.constant 0 : i32
    %c0_i32_1 = arith.constant 0 : i32
    return %c0_i32, %c0_i32_0 : i32, i32
  }
  func.func @transform_13(%arg0: i32) -> (i32, i32) {
    %c0_i32 = arith.constant 0 : i32
    %c0_i32_0 = arith.constant 0 : i32
    %c0_i32_1 = arith.constant 0 : i32
    return %c0_i32, %c0_i32_0 : i32, i32
  }
  func.func @transform_14(%arg0: i32) -> (i32, i32) {
    %c0_i32 = arith.constant 0 : i32
    %c0_i32_0 = arith.constant 0 : i32
    %c0_i32_1 = arith.constant 0 : i32
    return %c0_i32, %c0_i32_0 : i32, i32
  }
  func.func @transform_15(%arg0: i32) -> (i32, i32) {
    %c0_i32 = arith.constant 0 : i32
    %c0_i32_0 = arith.constant 0 : i32
    %c0_i32_1 = arith.constant 0 : i32
    return %c0_i32, %c0_i32_0 : i32, i32
  }
  func.func @transform_16(%arg0: i32) -> (i32, i32) {
    %c0_i32 = arith.constant 0 : i32
    %c0_i32_0 = arith.constant 0 : i32
    %c0_i32_1 = arith.constant 0 : i32
    return %c0_i32, %c0_i32_0 : i32, i32
  }
  func.func @transform_17(%arg0: i32) -> (i32, i32, i32) {
    %c0_i32 = arith.constant 0 : i32
    %c0_i32_0 = arith.constant 0 : i32
    %c0_i32_1 = arith.constant 0 : i32
    return %arg0, %c0_i32, %c0_i32_0 : i32, i32, i32
  }
  func.func @transform_18(%arg0: i32) -> (i32, i32, i32) {
    %c0_i32 = arith.constant 0 : i32
    %c0_i32_0 = arith.constant 0 : i32
    %c0_i32_1 = arith.constant 0 : i32
    return %arg0, %c0_i32, %c0_i32_0 : i32, i32, i32
  }
  func.func @transform_19(%arg0: i32) -> (i32, i32, i32) {
    %c0_i32 = arith.constant 0 : i32
    %c0_i32_0 = arith.constant 0 : i32
    %c0_i32_1 = arith.constant 0 : i32
    return %arg0, %c0_i32, %c0_i32_0 : i32, i32, i32
  }
  func.func @transform_20(%arg0: i32) -> (i32, i32, i32) {
    %c0_i32 = arith.constant 0 : i32
    %c0_i32_0 = arith.constant 0 : i32
    %c0_i32_1 = arith.constant 0 : i32
    return %arg0, %c0_i32, %c0_i32_0 : i32, i32, i32
  }
  func.func @transform_21(%arg0: i32) -> (i32, i32, i32) {
    %c0_i32 = arith.constant 0 : i32
    %c0_i32_0 = arith.constant 0 : i32
    %c0_i32_1 = arith.constant 0 : i32
    return %arg0, %c0_i32, %c0_i32_0 : i32, i32, i32
  }
}

module attributes {stable_mosaic.version = 11 : i64} {
  func.func @tfsa_project_kernel(%arg0: i32, %arg1: i32, %arg2: memref<1x2x100xf32, #tpu.memory_space<vmem>>, %arg3: memref<1x100x128xf32, #tpu.memory_space<vmem>>, %arg4: memref<1x1x128xf32, #tpu.memory_space<vmem>>, %arg5: memref<1x2x128xf32, #tpu.memory_space<vmem>>, %arg6: memref<2x128xf32, #tpu.memory_space<vmem>>) attributes {dimension_semantics = [#tpu.dimension_semantics<parallel>, #tpu.dimension_semantics<arbitrary>], iteration_bounds = array<i64: 3, 1>, scalar_prefetch = 0 : i64, scratch_operands = 1 : i64, tpu.core_type = #tpu.core_type<tc>, window_params = [{transform_indices = @transform_0, window_bounds = array<i64: 1, 2, 100>}, {transform_indices = @transform_1, window_bounds = array<i64: 1, 100, 128>}, {transform_indices = @transform_2, window_bounds = array<i64: 1, 1, 128>}, {transform_indices = @transform_3, window_bounds = array<i64: 1, 2, 128>}]} {
    %c0_i32 = arith.constant 0 : i32
    %0 = arith.cmpi eq, %arg1, %c0_i32 : i32
    %1 = arith.extui %0 : i1 to i32
    %c0_i32_0 = arith.constant 0 : i32
    %2 = arith.cmpi ne, %1, %c0_i32_0 : i32
    scf.if %2 {
      %cst_12 = arith.constant 0.000000e+00 : f32
      %14 = vector.broadcast %cst_12 : f32 to vector<2x128xf32>
      %c0_13 = arith.constant 0 : index
      %c0_14 = arith.constant 0 : index
      %15 = vector.load %arg6[%c0_13, %c0_14] : memref<2x128xf32, #tpu.memory_space<vmem>>, vector<2x128xf32>
      tpu.vector_store %arg6[%c0_13, %c0_14], %14 {strides = array<i32>} : memref<2x128xf32, #tpu.memory_space<vmem>>, vector<2x128xf32>,
    } else {
    }
    %c0 = arith.constant 0 : index
    %c0_1 = arith.constant 0 : index
    %3 = vector.load %arg6[%c0, %c0_1] : memref<2x128xf32, #tpu.memory_space<vmem>>, vector<2x128xf32>
    %c0_2 = arith.constant 0 : index
    %c0_3 = arith.constant 0 : index
    %c0_4 = arith.constant 0 : index
    %4 = vector.load %arg2[%c0_2, %c0_3, %c0_4] : memref<1x2x100xf32, #tpu.memory_space<vmem>>, vector<1x2x100xf32>
    %5 = vector.shape_cast %4 : vector<1x2x100xf32> to vector<2x100xf32>
    %c0_5 = arith.constant 0 : index
    %c0_6 = arith.constant 0 : index
    %c0_7 = arith.constant 0 : index
    %6 = vector.load %arg3[%c0_5, %c0_6, %c0_7] : memref<1x100x128xf32, #tpu.memory_space<vmem>>, vector<1x100x128xf32>
    %7 = vector.shape_cast %6 : vector<1x100x128xf32> to vector<100x128xf32>
    %cst = arith.constant dense<0.000000e+00> : vector<2x128xf32>
    %8 = tpu.matmul %5, %7, %cst {dimension_numbers = #tpu.dot_dimension_numbers<[1], [0], [0], [1], [0, 0, 1, 1], [], []>} : vector<2x100xf32>, vector<100x128xf32>, vector<2x128xf32> -> vector<2x128xf32>
    %9 = arith.addf %3, %8 : vector<2x128xf32>
    %c0_8 = arith.constant 0 : index
    %c0_9 = arith.constant 0 : index
    %10 = vector.load %arg6[%c0_8, %c0_9] : memref<2x128xf32, #tpu.memory_space<vmem>>, vector<2x128xf32>
    tpu.vector_store %arg6[%c0_8, %c0_9], %9 {strides = array<i32>} : memref<2x128xf32, #tpu.memory_space<vmem>>, vector<2x128xf32>,
    %c0_i32_10 = arith.constant 0 : i32
    %11 = arith.cmpi eq, %arg1, %c0_i32_10 : i32
    %12 = arith.extui %11 : i1 to i32
    %c0_i32_11 = arith.constant 0 : i32
    %13 = arith.cmpi ne, %12, %c0_i32_11 : i32
    scf.if %13 {
      %c0_12 = arith.constant 0 : index
      %c0_13 = arith.constant 0 : index
      %14 = vector.load %arg6[%c0_12, %c0_13] : memref<2x128xf32, #tpu.memory_space<vmem>>, vector<2x128xf32>
      %c0_14 = arith.constant 0 : index
      %c0_15 = arith.constant 0 : index
      %c0_16 = arith.constant 0 : index
      %15 = vector.load %arg4[%c0_14, %c0_15, %c0_16] : memref<1x1x128xf32, #tpu.memory_space<vmem>>, vector<1x1x128xf32>
      %16 = vector.shape_cast %15 : vector<1x1x128xf32> to vector<1x128xf32>
      %17 = vector.broadcast %16 : vector<1x128xf32> to vector<2x128xf32>
      %18 = arith.addf %14, %17 : vector<2x128xf32>
      %c0_17 = arith.constant 0 : index
      %c0_18 = arith.constant 0 : index
      %c0_19 = arith.constant 0 : index
      %19 = vector.load %arg5[%c0_17, %c0_18, %c0_19] : memref<1x2x128xf32, #tpu.memory_space<vmem>>, vector<1x2x128xf32>
      %20 = vector.shape_cast %19 : vector<1x2x128xf32> to vector<2x128xf32>
      %21 = vector.shape_cast %18 : vector<2x128xf32> to vector<1x2x128xf32>
      tpu.vector_store %arg5[%c0_17, %c0_18, %c0_19], %21 {strides = array<i32>} : memref<1x2x128xf32, #tpu.memory_space<vmem>>, vector<1x2x128xf32>,
    } else {
    }
    return
  }
  func.func @transform_0(%arg0: i32, %arg1: i32) -> (i32, i32, i32) {
    %c0_i32 = arith.constant 0 : i32
    %c0_i32_0 = arith.constant 0 : i32
    return %arg0, %c0_i32, %arg1 : i32, i32, i32
  }
  func.func @transform_1(%arg0: i32, %arg1: i32) -> (i32, i32, i32) {
    %c0_i32 = arith.constant 0 : i32
    %c0_i32_0 = arith.constant 0 : i32
    return %arg0, %arg1, %c0_i32 : i32, i32, i32
  }
  func.func @transform_2(%arg0: i32, %arg1: i32) -> (i32, i32, i32) {
    %c0_i32 = arith.constant 0 : i32
    %c0_i32_0 = arith.constant 0 : i32
    %c0_i32_1 = arith.constant 0 : i32
    return %arg0, %c0_i32, %c0_i32_0 : i32, i32, i32
  }
  func.func @transform_3(%arg0: i32, %arg1: i32) -> (i32, i32, i32) {
    %c0_i32 = arith.constant 0 : i32
    %c0_i32_0 = arith.constant 0 : i32
    %c0_i32_1 = arith.constant 0 : i32
    return %arg0, %c0_i32, %c0_i32_0 : i32, i32, i32
  }
}

module attributes {stable_mosaic.version = 11 : i64} {
  func.func @fnn_kernel(%arg0: memref<2x288xf32, #tpu.memory_space<vmem>>, %arg1: memref<288x64xf32, #tpu.memory_space<vmem>>, %arg2: memref<1x64xf32, #tpu.memory_space<vmem>>, %arg3: memref<64x128xf32, #tpu.memory_space<vmem>>, %arg4: memref<1x128xf32, #tpu.memory_space<vmem>>, %arg5: memref<2x128xf32, #tpu.memory_space<vmem>>) attributes {dimension_semantics = [], scalar_prefetch = 0 : i64, scratch_operands = 0 : i64, tpu.core_type = #tpu.core_type<tc>} {
    %c0 = arith.constant 0 : index
    %c0_0 = arith.constant 0 : index
    %0 = vector.load %arg0[%c0, %c0_0] : memref<2x288xf32, #tpu.memory_space<vmem>>, vector<2x288xf32>
    %c0_1 = arith.constant 0 : index
    %c0_2 = arith.constant 0 : index
    %1 = vector.load %arg1[%c0_1, %c0_2] : memref<288x64xf32, #tpu.memory_space<vmem>>, vector<288x64xf32>
    %cst = arith.constant dense<0.000000e+00> : vector<2x64xf32>
    %2 = tpu.matmul %0, %1, %cst {dimension_numbers = #tpu.dot_dimension_numbers<[1], [0], [0], [1], [0, 0, 1, 1], [], []>} : vector<2x288xf32>, vector<288x64xf32>, vector<2x64xf32> -> vector<2x64xf32>
    %c0_3 = arith.constant 0 : index
    %c0_4 = arith.constant 0 : index
    %3 = vector.load %arg2[%c0_3, %c0_4] : memref<1x64xf32, #tpu.memory_space<vmem>>, vector<1x64xf32>
    %4 = vector.broadcast %3 : vector<1x64xf32> to vector<2x64xf32>
    %5 = arith.addf %2, %4 : vector<2x64xf32>
    %c0_5 = arith.constant 0 : index
    %c0_6 = arith.constant 0 : index
    %6 = vector.load %arg3[%c0_5, %c0_6] : memref<64x128xf32, #tpu.memory_space<vmem>>, vector<64x128xf32>
    %cst_7 = arith.constant dense<0.000000e+00> : vector<2x128xf32>
    %7 = tpu.matmul %5, %6, %cst_7 {dimension_numbers = #tpu.dot_dimension_numbers<[1], [0], [0], [1], [0, 0, 1, 1], [], []>} : vector<2x64xf32>, vector<64x128xf32>, vector<2x128xf32> -> vector<2x128xf32>
    %c0_8 = arith.constant 0 : index
    %c0_9 = arith.constant 0 : index
    %8 = vector.load %arg4[%c0_8, %c0_9] : memref<1x128xf32, #tpu.memory_space<vmem>>, vector<1x128xf32>
    %9 = vector.broadcast %8 : vector<1x128xf32> to vector<2x128xf32>
    %10 = arith.addf %7, %9 : vector<2x128xf32>
    %c0_10 = arith.constant 0 : index
    %c0_11 = arith.constant 0 : index
    %11 = vector.load %arg5[%c0_10, %c0_11] : memref<2x128xf32, #tpu.memory_space<vmem>>, vector<2x128xf32>
    tpu.vector_store %arg5[%c0_10, %c0_11], %10 {strides = array<i32>} : memref<2x128xf32, #tpu.memory_space<vmem>>, vector<2x128xf32>,
    return
  }
}

</mosaic_0001>

<bundles_post_ra>
// kernel: mp_tfwa_forward.8
= control target key start
LH: loop header
LB: loop body
LE: loop exit
PB: predicated region body
PF: predicated region fallthrough
CT: control target
= control target key end

     0   :  { %s592_s12 = smov 0   ;;  %s594_s13 = smov 0   ;;  %s651_s0 = inlined_call_operand.vmem [shape: f32[3,2,100], index: 0, kind: input, shape index: {}]   ;;  %s652_s1 = inlined_call_operand.vmem [shape: f32[3,100,128], index: 1, kind: input, shape index: {}]   ;;  %s653_s2 = inlined_call_operand.vmem [shape: f32[3,1,128], index: 2, kind: input, shape index: {}]   ;;  %s654_s3 = inlined_call_operand.vmem [shape: f32[3,2,128], index: 3, kind: output, shape index: {}]  }
   0x1   :  { %s596_s14 = smov 0  }
   0x2 LB: > { %s25_s15 = sadd.s32 1, %s563_s13  ;;  %p447_p0 = scmp.ge.s32.totalorder %s567_s14, 1  ;;  %s567_s14 = sphi %s596_s14, %s13_s14   ;;  %s563_s13 = sphi %s594_s13, %s656_s13   ;;  %s559_s12 = sphi %s592_s12, %s655_s12  }
   0x3   : > { %p27_p1 = scmp.ge.s32.totalorder %s25_s15, 3  ;;  %p178_p2 = scmp.lt.s32.totalorder %s567_s14, 4 }
   0x5   : > { %s658_s15 = smov (%p27_p1, %s25_s15), 0  ;;  %p179_p3 = pnand %p447_p0, %p178_p2 }
   0x6   : > { %p215_p4 = scmp.lt.s32.totalorder (!%p179_p3), %s559_s12, 2  ;;  %v569_v0 = vmov (!%p179_p3), 0.0|0.0   ;;  %v570_v1 = vmov (!%p179_p3), 0.0   ;;  %vm571_vm0 = vmmov (!%p179_p3), 0   ;;  %vm263_vm1 = vcmask (!%p179_p3), 1043456  }
   0x7   : > { %182 = sbr.rel (%p179_p3) target bundleno = 271 (0x10f), region = 32  ;;  %499 = vmatprep.subr.bf16.mxu0 (!%p179_p3), %v569_v0  ;;  %243 = vst [vmem:[#allocation2] sm:$0x3] (!%p179_p3), %v570_v1  ;;  %496 = vmatprep.mubr.msk.f32.mxu0 (!%p179_p3), %vm571_vm0, %v570_v1  ;;  %vm259_vm2 = vcmask (!%p179_p3), 818176  }
   0xe   : > { %s660_s12 = smov (!%p215_p4, %s559_s12), 2  ;;  %v244_v22 = vld [vmem:[#allocation2] sm:$0x3] }
   0xf   : > { %s517_s16 = smul.u32 104, %s660_s12  ;;  %s448_s20 = sshll.u32 %s660_s12, 1 }
  0x10   : > { %s221_s23 = scalar_lea.vmem %s651_s0, %s448_s20  ;;  %s234_s26 = scalar_lea.vmem %s653_s2, %s660_s12 }
  0x11   : > { %s616_s19 = scalar_lea.vmem %s652_s1, %s517_s16  ;;  %v245_v21 = vld [vmem:[%s221_s23] sm:$0x3]  ;;  %s238_s29 = scalar_lea.vmem %s654_s3, %s448_s20 }
  0x12   : > { %v246_v2 = vld [vmem:[%s616_s19] sm:$0xff]  ;;  %v247_v3 = vld [vmem:[%s616_s19 + $0x8] sm:$0xff]  ;;  %v248_v4 = vld [vmem:[%s616_s19 + $0x10] sm:$0xff] }
  0x13   : > { %v500_v5 = vpack.c.bf16 %v247_v3, %v246_v2  ;;  %v249_v6 = vld [vmem:[%s616_s19 + $0x18] sm:$0xff]  ;;  %v250_v8 = vld [vmem:[%s616_s19 + $0x20] sm:$0xff]  ;;  %v251_v9 = vld [vmem:[%s616_s19 + $0x28] sm:$0xff] }
  0x14   : > { %v503_v7 = vpack.c.bf16 %v249_v6, %v248_v4  ;;  %v506_v10 = vpack.c.bf16 %v251_v9, %v250_v8  ;;  %v252_v11 = vld [vmem:[%s616_s19 + $0x30] sm:$0xff]  ;;  %v253_v12 = vld [vmem:[%s616_s19 + $0x38] sm:$0xff]  ;;  %v254_v14 = vld [vmem:[%s616_s19 + $0x40] sm:$0xff] }
  0x15   : > { %501 = vmatpush3.bf16.msra.mxu0 %v500_v5  ;;  %v509_v13 = vpack.c.bf16 %v253_v12, %v252_v11  ;;  %v255_v15 = vld [vmem:[%s616_s19 + $0x48] sm:$0xff]  ;;  %v256_v17 = vld [vmem:[%s616_s19 + $0x50] sm:$0xff]  ;;  %v257_v18 = vld [vmem:[%s616_s19 + $0x58] sm:$0xff] }
  0x16   : > { %502 = vmatprep.subr.bf16.mxu0 %v569_v0  ;;  %v512_v16 = vpack.c.bf16 %v255_v15, %v254_v14  ;;  %v515_v19 = vpack.c.bf16 %v257_v18, %v256_v17  ;;  %v258_v20 = vld [vmem:[%s616_s19 + $0x60] sm:$0xf] }
  0x17   : > { %v453_v26 = vld [vmem:[%s234_s26] ss:$0 sm:$0xff] }
  0x19   : > { %504 = vmatpush3.bf16.msra.mxu0 %v503_v7 }
  0x1a   : > { %505 = vmatprep.subr.bf16.mxu0 %v569_v0 }
  0x1d   : > { %507 = vmatpush3.bf16.msra.mxu0 %v506_v10 }
  0x1e   : > { %508 = vmatprep.subr.bf16.mxu0 %v569_v0 }
  0x21   : > { %510 = vmatpush3.bf16.msra.mxu0 %v509_v13 }
  0x22   : > { %511 = vmatprep.subr.bf16.mxu0 %v569_v0 }
  0x25   : > { %513 = vmatpush3.bf16.msra.mxu0 %v512_v16 }
  0x26   : > { %514 = vmatprep.subr.bf16.mxu0 %v569_v0 }
  0x29   : > { %516 = vmatpush3.bf16.msra.mxu0 %v515_v19 }
  0x2a   : > { %494 = vmatprep.subr.mxu0 %v570_v1 }
  0x2d   : > { %495 = vmatpush3.msk.msra.mxu0 %vm263_vm1, %v258_v20 }
  0x2e   : > { %497 = vmatmul.mubr.msk.f32.vlgmr.msra.gmra.mrb[0].mxu0 %vm259_vm2, %v245_v21 }
 0x101   : > { %v333_v23 = vpop.f32.mrb[0].mxu0 }
 0x102   : > { %v337_v24 = vadd.f32 %v333_v23, %v244_v22  ;;  %v498_v25 = vpop.f32.mrb[1].mxu0 }
 0x104   : > { %338 = vst [vmem:[#allocation2] sm:$0x3] %v337_v24 }
 0x10b   : > { %v342_v27 = vld [vmem:[#allocation2] sm:$0x3] }
 0x10c   : > { %v350_v28 = vadd.f32 %v453_v26, %v342_v27 }
 0x10e   : > { %351 = vst [vmem:[%s238_s29] sm:$0x3] %v350_v28 }
 0x10f PF: > { %s13_s14 = sadd.s32 1, %s567_s14   ;;  %s655_s12 = smov %s563_s13 }
 0x110   : > { %p10_p5 = scmp.ge.s32.totalorder %s13_s14, 5   ;;  %s656_s13 = smov %s658_s15 }
 0x112   :  { %12 = sbr.rel (!%p10_p5) target bundleno = 2 (0x2), region = 76 }

// kernel: mp_tfwa_forward.9
= control target key start
LH: loop header
LB: loop body
LE: loop exit
PB: predicated region body
PF: predicated region fallthrough
CT: control target
= control target key end

     0   :  { %v70_v3 = vlaneseq  ;;  %v494_v8 = vmov 0.0|0.0   ;;  %v495_v9 = vmov 1983009808   ;;  %vm496_vm0 = vmmov 0   ;;  %s692_s0 = inlined_call_operand.vmem [shape: f32[2,288], index: 0, kind: input, shape index: {}]   ;;  %s693_s1 = inlined_call_operand.vmem [shape: f32[288,64], index: 1, kind: input, shape index: {}]   ;;  %s694_s2 = inlined_call_operand.vmem [shape: f32[1,64], index: 2, kind: input, shape index: {}]   ;;  %s695_s3 = inlined_call_operand.vmem [shape: f32[64,128], index: 3, kind: input, shape index: {}]   ;;  %s696_s4 = inlined_call_operand.vmem [shape: f32[1,128], index: 4, kind: input, shape index: {}]   ;;  %s697_s5 = inlined_call_operand.hbm [shape: f32[2,128], index: 5, kind: output, shape index: {}]  }
   0x1   :  { %v38_v0 = vld [vmem:[%s693_s1 + $0x80] sm:$0xff]  ;;  %v39_v1 = vld [vmem:[%s693_s1 + $0x88] sm:$0xff]  ;;  %v40_v6 = vld [vmem:[%s693_s1 + $0x90] sm:$0xff]  ;;  %446 = vmatprep.subr.bf16.mxu1 %v494_v8  ;;  %v68_v10 = vunpack.c.l.s4 %v495_v9  ;;  %v497_v16 = vmov 0.0  }
   0x2   :  { %v22_v2 = vld [vmem:[%s693_s1] sm:$0xff]  ;;  %v414_v4 = vpack.c.bf16 %v39_v1, %v38_v0  ;;  %v23_v5 = vld [vmem:[%s693_s1 + $0x8] sm:$0xff]  ;;  %v41_v7 = vld [vmem:[%s693_s1 + $0x98] sm:$0xff]  ;;  %392 = vmatprep.mubr.msk.f32.mxu1 %vm496_vm0, %v497_v16  ;;  %v71_v20 = vshrl.u32 %v70_v3, 7 }
   0x3   :  { %v416_v11 = vpack.c.bf16 %v23_v5, %v22_v2  ;;  %v418_v12 = vpack.c.bf16 %v41_v7, %v40_v6  ;;  %v24_v13 = vld [vmem:[%s693_s1 + $0x10] sm:$0xff]  ;;  %v25_v14 = vld [vmem:[%s693_s1 + $0x18] sm:$0xff]  ;;  %v42_v15 = vld [vmem:[%s693_s1 + $0xa0] sm:$0xff]  ;;  %v69_v19 = vunpack.c.0.s8 %v68_v10 }
   0x4   :  { %415 = vmatprep.subr.bf16.mxu0 %v414_v4  ;;  %v43_v17 = vld [vmem:[%s693_s1 + $0xa8] sm:$0xff]  ;;  %v420_v18 = vpack.c.bf16 %v25_v14, %v24_v13  ;;  %v26_v22 = vld [vmem:[%s693_s1 + $0x20] sm:$0xff]  ;;  %v44_v24 = vld [vmem:[%s693_s1 + $0xb0] sm:$0xff] }
   0x5   :  { %417 = vmatpush3.bf16.msra.mxu0 %v416_v11  ;;  %v422_v21 = vpack.c.bf16 %v43_v17, %v42_v15  ;;  %v27_v23 = vld [vmem:[%s693_s1 + $0x28] sm:$0xff]  ;;  %v45_v25 = vld [vmem:[%s693_s1 + $0xb8] sm:$0xff]  ;;  %v72_v27 = vsub.s32 %v69_v19, %v71_v20  ;;  %v28_v29 = vld [vmem:[%s693_s1 + $0x30] sm:$0xff] }
   0x6   :  { %419 = vmatprep.subr.bf16.mxu0 %v418_v12  ;;  %v424_v26 = vpack.c.bf16 %v27_v23, %v26_v22  ;;  %v426_v28 = vpack.c.bf16 %v45_v25, %v44_v24  ;;  %v29_v30 = vld [vmem:[%s693_s1 + $0x38] sm:$0xff]  ;;  %v46_v31 = vld [vmem:[%s693_s1 + $0xc0] sm:$0xff]  ;;  %v47_v32 = vld [vmem:[%s693_s1 + $0xc8] sm:$0xff] }
   0x7   :  { %v54_v33 = vld [vmem:[%s693_s1 + $0x100] sm:$0xff]  ;;  %v55_v34 = vld [vmem:[%s693_s1 + $0x108] sm:$0xff]  ;;  %v56_v36 = vld [vmem:[%s693_s1 + $0x110] sm:$0xff]  ;;  %v428_v37 = vpack.c.bf16 %v29_v30, %v28_v29  ;;  %v430_v41 = vpack.c.bf16 %v47_v32, %v46_v31 }
   0x8   :  { %v21_v35 = vld [vmem:[%s692_s0] sm:$0x3f]  ;;  %v447_v38 = vpack.c.bf16 %v55_v34, %v54_v33  ;;  %v57_v40 = vld [vmem:[%s693_s1 + $0x118] sm:$0xff]  ;;  %v31_v43 = vld [vmem:[%s693_s1 + $0x48] sm:$0xff] }
   0x9   :  { %421 = vmatpush3.bf16.msra.mxu0 %v420_v18  ;;  %v73_v39 = vrot.slane %v21_v35, %v72_v27  ;;  %v30_v42 = vld [vmem:[%s693_s1 + $0x40] sm:$0xff]  ;;  %v66_v44 = vcombine.high %v21_v35, %v21_v35 }
   0xa   :  { %423 = vmatprep.subr.bf16.mxu0 %v422_v21 }
   0xd   :  { %425 = vmatpush3.bf16.msra.mxu0 %v424_v26 }
   0xe   :  { %427 = vmatprep.subr.bf16.mxu0 %v426_v28 }
   0xf   :  { %10 = vsyncpa [#allocation3], 0  ;;  %v48_v45 = vld [vmem:[%s693_s1 + $0xd0] sm:$0xff]  ;;  %v49_v46 = vld [vmem:[%s693_s1 + $0xd8] sm:$0xff]  ;;  %448 = vmatpush3.bf16.msra.mxu1 %v447_v38  ;;  %v81_v47 = vcombine.high %v73_v39, %v73_v39  ;;  %v450_v48 = vpack.c.bf16 %v57_v40, %v56_v36  ;;  %v432_v51 = vpack.c.bf16 %v31_v43, %v30_v42  ;;  %v80_v55 = vrot.slane %v66_v44, %v72_v27 }
  0x10   :  { %449 = vmatprep.subr.bf16.mxu1 %v494_v8  ;;  %v227_v49 = vld [vmem:[%s695_s3] sm:$0xff]  ;;  %v228_v50 = vld [vmem:[%s695_s3 + $0x8] sm:$0xff]  ;;  %v434_v52 = vpack.c.bf16 %v49_v46, %v48_v45  ;;  %v32_v53 = vld [vmem:[%s693_s1 + $0x50] sm:$0xff]  ;;  %vm84_vm1 = vcmask 261120   ;;  %vm242_vm2 = vcmask 523264  }
  0x11   :  { %429 = vmatpush3.bf16.msra.mxu0 %v428_v37  ;;  %151 = vmatprep.mubr.f32.mxu0 %v81_v47  ;;  %v33_v54 = vld [vmem:[%s693_s1 + $0x58] sm:$0xff]  ;;  %v50_v56 = vld [vmem:[%s693_s1 + $0xe0] sm:$0xff]  ;;  %v51_v57 = vld [vmem:[%s693_s1 + $0xe8] sm:$0xff]  ;;  %v453_v58 = vpack.c.bf16 %v228_v50, %v227_v49 }
  0x12   :  { %431 = vmatprep.subr.bf16.mxu0 %v430_v41  ;;  %v229_v59 = vld [vmem:[%s695_s3 + $0x10] sm:$0xff]  ;;  %v230_v60 = vld [vmem:[%s695_s3 + $0x18] sm:$0xff]  ;;  %v436_v61 = vpack.c.bf16 %v33_v54, %v32_v53  ;;  %v438_v62 = vpack.c.bf16 %v51_v57, %v50_v56  ;;  %v34_v63 = vld [vmem:[%s693_s1 + $0x60] sm:$0xff] }
  0x13   :  { %451 = vmatpush3.bf16.msra.mxu1 %v450_v48  ;;  %v35_v0 = vld [vmem:[%s693_s1 + $0x68] sm:$0xff]  ;;  %v52_v1 = vld [vmem:[%s693_s1 + $0xf0] sm:$0xff]  ;;  %v53_v2 = vld [vmem:[%s693_s1 + $0xf8] sm:$0xff]  ;;  %v456_v3 = vpack.c.bf16 %v230_v60, %v229_v59 }
  0x14   :  { %452 = vmatprep.subr.bf16.mxu1 %v494_v8  ;;  %v440_v4 = vpack.c.bf16 %v35_v0, %v34_v63  ;;  %v442_v5 = vpack.c.bf16 %v53_v2, %v52_v1  ;;  %v36_v6 = vld [vmem:[%s693_s1 + $0x70] sm:$0xff]  ;;  %v37_v7 = vld [vmem:[%s693_s1 + $0x78] sm:$0xff]  ;;  %v231_v10 = vld [vmem:[%s695_s3 + $0x20] sm:$0xff] }
  0x15   :  { %433 = vmatpush3.bf16.msra.mxu0 %v432_v51  ;;  %v444_v9 = vpack.c.bf16 %v37_v7, %v36_v6  ;;  %v232_v11 = vld [vmem:[%s695_s3 + $0x28] sm:$0xff]  ;;  %v233_v13 = vld [vmem:[%s695_s3 + $0x30] sm:$0xff]  ;;  %v234_v14 = vld [vmem:[%s695_s3 + $0x38] sm:$0xff]  ;;  %s498_s3 = smov [#allocation2]  }
  0x16   :  { %435 = vmatprep.subr.bf16.mxu0 %v434_v52  ;;  %393 = vmatmul.mubr.msk.f32.vlgmr.msra.gmra.mrb[0].mxu1 %vm84_vm1, %v80_v55  ;;  %v459_v12 = vpack.c.bf16 %v232_v11, %v231_v10  ;;  %v462_v15 = vpack.c.bf16 %v234_v14, %v233_v13  ;;  %v331_v20 = vld [vmem:[%s694_s2] ss:$0 sm:$0xff]  ;;  %s323_s9 = sshll.u32 %s498_s3, 4  ;;  %s324_s9 = int_to_ptr.vmem [resolvable:$true] %s323_s9 }
  0x17   :  { %454 = vmatpush3.bf16.msra.mxu1 %v453_v58  ;;  %411 = vmatprep.mubr.msk.f32.mxu1 %vm496_vm0, %v497_v16  ;;  %v333_v23 = vld [vmem:[%s696_s4] ss:$0 sm:$0xff]  ;;  %s470_s10 = scalar_lea.vmem %s324_s9, 32  ;;  %p475_p1 = scmp.lt.s32.totalorder %s324_s9, %s324_s9 }
  0x18   :  { %455 = vmatprep.subr.bf16.mxu1 %v494_v8  ;;  %p471_p0 = scmp.ne.s32.totalorder %s324_s9, %s470_s10  ;;  %p476_p2 = scmp.lt.s32.totalorder %s470_s10, %s470_s10 }
  0x19   :  { %437 = vmatpush3.bf16.msra.mxu0 %v436_v61 }
  0x1a   :  { %439 = vmatprep.subr.bf16.mxu0 %v438_v62  ;;  %p477_p3 = por %p476_p2, %p475_p1 }
  0x1b   :  { %457 = vmatpush3.bf16.msra.mxu1 %v456_v3 }
  0x1c   :  { %458 = vmatprep.subr.bf16.mxu1 %v494_v8  ;;  %p478_p4 = pnand %p477_p3, %p471_p0 }
  0x1d   :  { %441 = vmatpush3.bf16.msra.mxu0 %v440_v4 }
  0x1e   :  { %443 = vmatprep.subr.bf16.mxu0 %v442_v5 }
  0x1f   :  { %460 = vmatpush3.bf16.msra.mxu1 %v459_v12 }
  0x20   :  { %461 = vmatprep.subr.bf16.mxu1 %v494_v8 }
  0x21   :  { %445 = vmatpush3.bf16.msra.mxu0 %v444_v9 }
  0x23   :  { %463 = vmatpush3.bf16.msra.mxu1 %v462_v15 }
  0x24   :  { %152 = vmatmul.mubr.f32.vlgmr.msra.gmra.mrb[0].mxu0 %v73_v39 }
  0xe9   :  { %v223_v16 = vpop.f32.mrb[0].mxu1 }
  0xea   :  { %v394_v17 = vpop.f32.mrb[1].mxu1 }
  0xf7   :  { %v367_v18 = vpop.f32.mrb[0].mxu0 }
  0xf8   :  { %v368_v19 = vpop.f32.mrb[1].mxu0 }
  0xf9   :  { %v369_v21 = vadd.f32 %v368_v19, %v367_v18 }
  0xfb   :  { %v154_v8 = vadd.f32 %v369_v21, %v331_v20 }
  0xfd   :  { %v224_v22 = vadd.f32 %v223_v16, %v154_v8 }
  0xff   :  { %412 = vmatmul.mubr.msk.f32.vlgmr.msra.gmra.mrb[2].mxu1 %vm242_vm2, %v224_v22 }
 0x1d2   :  { %v312_v24 = vpop.f32.mrb[2].mxu1 }
 0x1d3   :  { %v313_v25 = vadd.f32 %v333_v23, %v312_v24  ;;  %v413_v26 = vpop.f32.mrb[3].mxu1 }
 0x1d5   :  { %316 = vst [vmem:[#allocation2] sm:$0x3] %v313_v25 }
 0x1d6   :  { %481 = shalt.err (!%p478_p4)
}
 0x1d7   :  { %s482_s12 = scalar_lea.hbm %s697_s5, 32 }
 0x1d8   :  { %p483_p5 = scmp.ne.s32.totalorder %s697_s5, %s482_s12  ;;  %p486_p6 = scmp.lt.u32.totalorder %s482_s12, %s697_s5 }
 0x1da   :  { %p488_p7 = pnand %p486_p6, %p483_p5 }
 0x1dc   :  { %491 = shalt.err (!%p488_p7)
}
 0x1dd   :  { %326 = dma.vmem_to_hbm [thread:$0]  %s324_s9, 32, %s697_s5, [#allocation3]  }
 0x1de   :  { %492 = dma.done.wait [#allocation3], 32  }
 0x1df   :  { %493 = vsyncadd [#allocation3], 4294967264 }
 0x1e0   :  { %330 = vsyncpa [#allocation3], 1 }

// kernel: mp_tfwa_forward.6
= control target key start
LH: loop header
LB: loop body
LE: loop exit
PB: predicated region body
PF: predicated region fallthrough
CT: control target
= control target key end

     0   :  { %s3924_s0 = inlined_call_operand.vmem [shape: bf16[2,16,64], index: 0, kind: input, shape index: {}]   ;;  %s3925_s1 = inlined_call_operand.vmem [shape: bf16[64,64], index: 1, kind: input, shape index: {}]   ;;  %s3926_s2 = inlined_call_operand.vmem [shape: bf16[64,64], index: 2, kind: input, shape index: {}]   ;;  %s3927_s3 = inlined_call_operand.vmem [shape: bf16[64,64], index: 3, kind: input, shape index: {}]   ;;  %s3928_s4 = inlined_call_operand.vmem [shape: f32[1,64], index: 4, kind: input, shape index: {}]   ;;  %s3929_s5 = inlined_call_operand.vmem [shape: f32[1,64], index: 5, kind: input, shape index: {}]   ;;  %s3930_s6 = inlined_call_operand.vmem [shape: f32[1,64], index: 6, kind: input, shape index: {}]   ;;  %s3931_s7 = inlined_call_operand.vmem [shape: f32[16,16], index: 7, kind: input, shape index: {}]   ;;  %s3932_s8 = inlined_call_operand.vmem [shape: f32[16,16], index: 8, kind: input, shape index: {}]   ;;  %s3933_s9 = inlined_call_operand.vmem [shape: f32[16,16], index: 9, kind: input, shape index: {}]   ;;  %s3934_s10 = inlined_call_operand.vmem [shape: f32[1,16], index: 10, kind: input, shape index: {}]   ;;  %s3935_s11 = inlined_call_operand.vmem [shape: f32[1,16], index: 11, kind: input, shape index: {}]   ;;  %s3936_s12 = inlined_call_operand.vmem [shape: f32[1,16], index: 12, kind: input, shape index: {}]   ;;  %s3937_s13 = inlined_call_operand.vmem [shape: f32[64,10], index: 13, kind: input, shape index: {}]   ;;  %s3938_s14 = inlined_call_operand.vmem [shape: f32[1,10], index: 14, kind: input, shape index: {}]   ;;  %s3939_s15 = inlined_call_operand.vmem [shape: f32[64,10], index: 15, kind: input, shape index: {}]   ;;  %s3940_s16 = inlined_call_operand.vmem [shape: f32[1,10], index: 16, kind: input, shape index: {}]   ;;  %s3941_s17 = inlined_call_operand.hbm [shape: f32[2,16,64], index: 17, kind: output, shape index: {0}]   ;;  %s3942_s18 = inlined_call_operand.vmem [shape: f32[2,64,16], index: 18, kind: output, shape index: {1}]   ;;  %s3943_s19 = inlined_call_operand.hbm [shape: f32[2,16,16], index: 19, kind: output, shape index: {2}]   ;;  %s3944_s20 = inlined_call_operand.hbm [shape: f32[2,64,64], index: 20, kind: output, shape index: {3}]   ;;  %s3945_s21 = inlined_call_operand.vmem [shape: f32[2,10,10], index: 21, kind: output, shape index: {4}]  }
   0x1   :  { %3960 = sst [smem:[#allocation15_spill]] %s3924_s0 }
   0x2   :  { %3961 = sst [smem:[#allocation16_spill]] %s3925_s1 }
   0x3   :  { %3962 = sst [smem:[#allocation17_spill]] %s3926_s2 }
   0x4   :  { %3963 = sst [smem:[#allocation18_spill]] %s3927_s3 }
   0x5   :  { %3964 = sst [smem:[#allocation19_spill]] %s3928_s4 }
   0x6   :  { %3965 = sst [smem:[#allocation20_spill]] %s3929_s5 }
   0x7   :  { %3966 = sst [smem:[#allocation21_spill]] %s3930_s6 }
   0x8   :  { %3967 = sst [smem:[#allocation22_spill]] %s3931_s7 }
   0x9   :  { %3968 = sst [smem:[#allocation23_spill]] %s3932_s8 }
   0xa   :  { %3969 = sst [smem:[#allocation24_spill]] %s3933_s9 }
   0xb   :  { %3970 = sst [smem:[#allocation25_spill]] %s3934_s10 }
   0xc   :  { %3971 = sst [smem:[#allocation26_spill]] %s3935_s11 }
   0xd   :  { %3972 = sst [smem:[#allocation27_spill]] %s3936_s12 }
   0xe   :  { %3973 = sst [smem:[#allocation28_spill]] %s3944_s20 }
   0xf   :  { %3974 = sst [smem:[#allocation29_spill]] %s3945_s21 }
  0x10   :  { %27 = vsyncpa [#allocation3], 0 }
  0x11   :  { %29 = vsyncpa [#allocation3 + $0x1], 0 }
  0x12   :  { %30 = vsyncpa [#allocation5], 0 }
  0x13   :  { %32 = vsyncpa [#allocation5 + $0x1], 0  ;;  %s3394_s2 = smov 0   ;;  %s3396_s25 = smov 0  }
  0x14   :  { %s3398_s26 = smov 0   ;;  %s3400_s27 = smov 0  }
  0x15 LB: > { %3975 = sst [smem:[#allocation9_spill]] %s3263_s2  ;;  %s3415_s3 = sadd.s32 4294967295, %s3275_s27   ;;  %s3275_s27 = sphi %s3400_s27, %s4006_s27   ;;  %s3271_s26 = sphi %s3398_s26, %s4008_s26   ;;  %s3267_s25 = sphi %s3396_s25, %s4010_s25   ;;  %s3263_s2 = sphi %s3394_s2, %s4009_s2  }
  0x16   : > { %3976 = sst [smem:[#allocation10_spill]] %s3271_s26  ;;  %s3949_s28 = sadd.s32 4294967294, %s3275_s27  }
  0x17   : > { %3977 = sst [smem:[#allocation11_spill]] %s3275_s27  ;;  %s3419_s29 = sadd.s32 1, %s3275_s27  }
  0x18   : > { %3978 = sst [smem:[#allocation12_spill]] %s3419_s29  ;;  %s407_s0 = sadd.s32 1, %s3271_s26 }
  0x19   : > { %s404_s4 = ssub.s32 %s3275_s27, %s3419_s29  ;;  %p417_p0 = scmp.ne.s32.totalorder %s3271_s26, %s3267_s25 }
  0x1a   : > { %p405_p1 = scmp.eq.s32.totalorder %s404_s4, 0  ;;  %p418_p2 = scmp.eq.s32.totalorder %s3415_s3, 1 }
  0x1b   : > { %p423_p3 = scmp.ne.s32.totalorder %s3267_s25, %s3263_s2  ;;  %p424_p4 = scmp.eq.s32.totalorder %s3949_s28, 1 }
  0x1c   : > { %s3432_s30 = scalar_select %p405_p1, %s3271_s26, %s407_s0  }
  0x1d   : > { %p3434_p5 = por %p418_p2, %p417_p0  ;;  %p3438_p6 = por %p424_p4, %p423_p3 }
  0x1e   : > { %3979 = sst [smem:[#allocation13_spill]] %s3432_s30  ;;  %p2529_p7 = scmp.ge.s32.totalorder %s3275_s27, 1 }
  0x1f   : > { %s3981_s22 = scalar_select %p3438_p6, 1, 0 }
  0x20   : > { %p602_p8 = scmp.lt.s32.totalorder %s3275_s27, 3 }
  0x21   : > { %3982 = sst [smem:[#allocation14_spill]] %s3981_s22 }
  0x22   : > { %p603_p9 = pnand %p2529_p7, %p602_p8 }
  0x23   : > { %s3983_s24 = sld [smem:[#allocation16_spill]] (!%p603_p9)  ;;  %v3277_v1 = vmov (!%p603_p9), 0.0   ;;  %s3984_s26 = sld [smem:[#allocation17_spill]] (!%p603_p9)  ;;  %vm3278_vm0 = vmmov (!%p603_p9), 0   ;;  %vm744_vm1 = vcmask (!%p603_p9), 523264   ;;  %vm1038_vm3 = vcmask (!%p603_p9), 130048  }
  0x24   : > { %606 = sbr.rel (%p603_p9) target bundleno = 2383 (0x94f), region = 88  ;;  %2749 = vmatprep.subr.bf16.mxu0 (!%p603_p9), %v3277_v1  ;;  %2761 = vmatprep.subr.bf16.mxu1 (!%p603_p9), %v3277_v1  ;;  %p682_p10 = scmp.lt.s32.totalorder (!%p603_p9), %s3415_s3, 1  ;;  %vm2949_vm2 = vmpackc.low (!%p603_p9), %vm744_vm1, %vm744_vm1 }
  0x25   : > { %2757 = vmatprep.mubr.msk.bf16.mxu0 (!%p603_p9), %vm3278_vm0, %v3277_v1  ;;  %2769 = vmatprep.mubr.msk.bf16.mxu1 (!%p603_p9), %vm3278_vm0, %v3277_v1  ;;  %s3986_s2 = sld [smem:[#allocation15_spill]] (!%p603_p9)  ;;  %s3989_s1 = sld [smem:[#allocation18_spill]] (!%p603_p9)  ;;  %vm3619_vm4 = vmpackc.low (!%p603_p9), %vm1038_vm3, %vm1038_vm3 }
  0x26   : > { %s3990_s6 = sld [smem:[#allocation21_spill]] (!%p603_p9)  ;;  %s3991_s8 = sld [smem:[#allocation23_spill]] (!%p603_p9) }
  0x27   : > { %s3992_s7 = sld [smem:[#allocation22_spill]] (!%p603_p9)  ;;  %s3547_s22 = sand.u32 (!%p603_p9), 1, %s3267_s25  }
  0x28   : > { %s3993_s9 = sld [smem:[#allocation24_spill]] (!%p603_p9)  ;;  %s3994_s11 = sld [smem:[#allocation26_spill]] (!%p603_p9) }
  0x29   : > { %v3099_v0 = vld [vmem:[%s3983_s24] sm:$0xff] (!%p603_p9)   ;;  %v3100_v2 = vld [vmem:[%s3983_s24 + $0x8] sm:$0xff] (!%p603_p9)   ;;  %s3985_s29 = smov (!%p603_p9), %s3984_s26  ;;  %v3102_v5 = vld [vmem:[%s3983_s24 + $0x10] sm:$0xff] (!%p603_p9)   ;;  %s3995_s10 = sld [smem:[#allocation25_spill]] (!%p603_p9) }
  0x2a   : > { %2750 = vmatpush3.bf16.msra.mxu0 (!%p603_p9), %v3099_v0  ;;  %v3101_v3 = vld [vmem:[%s3984_s26] sm:$0xff] (!%p603_p9)   ;;  %v3103_v4 = vld [vmem:[%s3985_s29 + $0x8] sm:$0xff] (!%p603_p9)   ;;  %v3104_v6 = vld [vmem:[%s3983_s24 + $0x18] sm:$0xff] (!%p603_p9)   ;;  %s3998_s12 = sld [smem:[#allocation27_spill]] (!%p603_p9)  ;;  %s2532_s23 = sshll.u32 (!%p603_p9), %s3547_s22, 6 }
  0x2b   : > { %2751 = vmatprep.subr.bf16.mxu0 %v3277_v1  ;;  %2762 = vmatpush3.bf16.msra.mxu1 %v3101_v3  ;;  %s3465_s0 = scalar_select %p682_p10, %s3415_s3, 1  ;;  %v3106_v8 = vld [vmem:[%s3985_s29 + $0x10] sm:$0xff]   ;;  %v3107_v9 = vld [vmem:[%s3985_s29 + $0x18] sm:$0xff]   ;;  %v3108_v25 = vld [vmem:[%s3989_s1] sm:$0xff]  }
  0x2c   : > { %2763 = vmatprep.subr.bf16.mxu1 %v3277_v1  ;;  %v3109_v26 = vld [vmem:[%s3989_s1 + $0x8] sm:$0xff]   ;;  %v3110_v27 = vld [vmem:[%s3989_s1 + $0x10] sm:$0xff]   ;;  %v3111_v28 = vld [vmem:[%s3989_s1 + $0x18] sm:$0xff]  }
  0x2d   : > { %s2634_s30 = sshll.u32 %s3465_s0, 3  ;;  %v2552_v49 = vld [vmem:[%s3990_s6] ss:$0 sm:$0xff]  ;;  %v1315_v59 = vld [vmem:[%s3991_s8 + $0x8] sm:$0xff]  ;;  %s2635_s21 = sshll.u32 %s3465_s0, 6 }
  0x2e   : > { %2752 = vmatpush3.bf16.msra.mxu0 %v3100_v2  ;;  %s686_s27 = scalar_lea.vmem %s3986_s2, %s2634_s30  ;;  %s3987_s2 = sld [smem:[#allocation19_spill]]  ;;  %v1314_v58 = vld [vmem:[%s3991_s8] sm:$0xff]  ;;  %v1177_v62 = vld [vmem:[%s3992_s7 + $0x8] sm:$0xff] }
  0x2f   : > { %2753 = vmatprep.subr.bf16.mxu0 %v3277_v1  ;;  %2764 = vmatpush3.bf16.msra.mxu1 %v3103_v4  ;;  %v698_v7 = vld [vmem:[%s686_s27] sm:$0xff]   ;;  %s3988_s30 = sld [smem:[#allocation20_spill]]  ;;  %v2962_v60 = vpack.c.bf16 %v1315_v59, %v1314_v58  ;;  %s691_s1 = scalar_lea.vmem %s3942_s18, %s2635_s21 }
  0x30   : > { %2765 = vmatprep.subr.bf16.mxu1 %v3277_v1  ;;  %v1142_v35 = vunpack.c.l.bf16 %v698_v7  ;;  %v1143_v36 = vunpack.c.h.bf16 %v698_v7  ;;  %v1176_v61 = vld [vmem:[%s3992_s7] sm:$0xff]  ;;  %s2291_s7 = sand.u32 1, %s3415_s3   ;;  %s3959_s8 = sshll.u32 %s3415_s3, 8 }
  0x31   : > { %v2958_v63 = vpack.c.bf16 %v1177_v62, %v1176_v61  ;;  %s3805_s28 = scalar_lea.hbm %s3943_s19, %s3959_s8 }
  0x32   : > { %2754 = vmatpush3.bf16.msra.mxu0 %v3102_v5 }
  0x33   : > { %2755 = vmatprep.subr.bf16.mxu0 %v3277_v1  ;;  %2766 = vmatpush3.bf16.msra.mxu1 %v3106_v8 }
  0x34   : > { %2767 = vmatprep.subr.bf16.mxu1 %v3277_v1  ;;  %v2539_v10 = vld [vmem:[%s3987_s2] ss:$0 sm:$0xff] }
  0x35   : > { %v2546_v12 = vld [vmem:[%s3988_s30] ss:$0 sm:$0xff]  ;;  %s2530_s30 = sshll.u32 %s3547_s22, 4 }
  0x36   : > { %2756 = vmatpush3.bf16.msra.mxu0 %v3104_v6  ;;  %s3559_s20 = scalar_lea.vmem [#allocation4], %s2530_s30  ;;  %s3604_s27 = scalar_lea.vmem [#allocation2], %s2530_s30 }
  0x37   : > { %2773 = vmatprep.subr.bf16.mxu0 %v3277_v1  ;;  %2768 = vmatpush3.bf16.msra.mxu1 %v3107_v9  ;;  %v1428_v9 = vld [vmem:[%s3993_s9] sm:$0xff]  ;;  %s3691_s30 = scalar_lea.vmem [#allocation6], %s2532_s23  ;;  %s2315_s6 = sshll.u32 %s3604_s27, 4  ;;  %s3792_s6 = int_to_ptr.vmem [resolvable:$true] %s2315_s6 }
  0x38   : > { %s2350_s4 = sshll.u32 %s3691_s30, 4  ;;  %s3796_s4 = int_to_ptr.vmem [resolvable:$true] %s2350_s4 }
  0x39   : > { %2758 = vmatmul.mubr.msk.bf16.vlgmr.msra.gmra.mrb[0].mxu0 %vm744_vm1, %v698_v7 }
  0x3a   : > { %2781 = vmatprep.mubr.msk.bf16.mxu0 %vm3278_vm0, %v3277_v1  ;;  %2770 = vmatmul.mubr.msk.bf16.vlgmr.msra.gmra.mrb[0].mxu1 %vm744_vm1, %v698_v7 }
  0x3b   : > { %2774 = vmatpush3.bf16.msra.mxu0 %v3108_v25 }
  0x3c   : > { %2775 = vmatprep.subr.bf16.mxu0 %v3277_v1 }
  0x3f   : > { %2776 = vmatpush3.bf16.msra.mxu0 %v3109_v26 }
  0x40   : > { %2777 = vmatprep.subr.bf16.mxu0 %v3277_v1 }
  0x43   : > { %2778 = vmatpush3.bf16.msra.mxu0 %v3110_v27 }
  0x44   : > { %2779 = vmatprep.subr.bf16.mxu0 %v3277_v1 }
  0x47   : > { %2780 = vmatpush3.bf16.msra.mxu0 %v3111_v28 }
  0x48   : > { %2963 = vmatprep.subr.bf16.mxu0 %v2962_v60 }
  0x4a   : > { %2782 = vmatmul.mubr.msk.bf16.vlgmr.msra.gmra.mrb[4].mxu0 %vm744_vm1, %v698_v7 }
  0x4b   : > { %2965 = vmatpush3.bf16.msra.mxu0 %v2962_v60 }
 0x10c   : > { %v782_v11 = vpop.f32.mrb[0].mxu0 }
 0x10d   : > { %v2759_v13 = vpop.f32.mrb[1].mxu0  ;;  %v862_v15 = vpop.f32.mrb[0].mxu1  ;;  %v783_v16 = vadd.f32 %v2539_v10, %v782_v11 }
 0x10e   : > { %v785_v14 = vpop.f32.mrb[2].mxu0  ;;  %v863_v19 = vadd.f32 %v2546_v12, %v862_v15  ;;  %v2771_v20 = vpop.f32.mrb[1].mxu1 }
 0x10f   : > { %v786_v17 = vadd.f32 %v2539_v10, %v785_v14  ;;  %v2760_v18 = vpop.f32.mrb[3].mxu0  ;;  %v865_v21 = vpop.f32.mrb[2].mxu1  ;;  %v1429_v10 = vld [vmem:[%s3993_s9 + $0x8] sm:$0xff]  ;;  %v2573_v14 = vld [vmem:[%s3994_s11] ss:$0 sm:$0xff] }
 0x110   : > { %v2772_v23 = vpop.f32.mrb[3].mxu1  ;;  %2789 = vmatprep.mubr.msk.f32.mxu1 %vm744_vm1, %v863_v19  ;;  %v866_v24 = vadd.f32 %v2546_v12, %v865_v21  ;;  %v2966_v13 = vpack.c.bf16 %v1429_v10, %v1428_v9 }
 0x111   : > { %v2948_v22 = vpack.c.bf16 %v786_v17, %v783_v16 }
 0x113   : > { %2950 = vmatprep.subr.msk.bf16.mxu1 %vm2949_vm2, %v2948_v22 }
 0x114   : > { %2953 = vmatpush3.bf16.xpose.msk.msra.mxu1 %vm2949_vm2, %v2948_v22 }
 0x11b   : > { %2790 = vmatmul.mubr.msk.f32.vlgmr.msra.gmra.mrb[4].mxu1 %vm744_vm1, %v866_v24 }
 0x11d   : > { %v942_v47 = vpop.f32.mrb[4].mxu0 }
 0x11e   : > { %v2783_v48 = vpop.f32.mrb[5].mxu0  ;;  %v943_v52 = vadd.f32 %v2552_v49, %v942_v47 }
 0x11f   : > { %v945_v51 = vpop.f32.mrb[6].mxu0 }
 0x120   : > { %v946_v53 = vadd.f32 %v2552_v49, %v945_v51  ;;  %v2784_v54 = vpop.f32.mrb[7].mxu0 }
 0x121   : > { %v2582_v54 = vld [vmem:[%s3998_s12] ss:$0 sm:$0xff] }
 0x122   : > { %v2954_v55 = vpack.c.bf16 %v946_v53, %v943_v52 }
 0x124   : > { %2955 = vmatprep.subr.bf16.mxu1 %v2954_v55 }
 0x125   : > { %2957 = vmatpush3.bf16.msra.mxu1 %v2954_v55 }
 0x126   : > { %2959 = vmatprep.subr.bf16.mxu1 %v2958_v63 }
 0x1ee   : > { %v2791_v29 = vpop.f32.mrb[4].mxu1 }
 0x1ef   : > { %v1027_v30 = vpop.f32.mrb[5].mxu1  ;;  %v1037_v32 = vmul.f32 0.125, %v2791_v29 }
 0x1f0   : > { %v1036_v31 = vmul.f32 0.125, %v1027_v30 }
 0x1f1   : > { %v1042_v34 = vsel %vm1038_vm3, %v1037_v32, -inf }
 0x1f2   : > { %v1039_v33 = vsel %vm1038_vm3, %v1036_v31, -inf }
 0x1f3   : > { %1040 = vmax.xlane.f32.xlu0 %v1039_v33  ;;  %v2564_v33 = vld [vmem:[%s3995_s10] ss:$0 sm:$0xff] }
 0x1f7   : > { %1043 = vmax.xlane.f32.xlu0 %v1042_v34 }
 0x224   : > { %1144 = vxpose.xlu0.b32.start [1/2] (short) (narrow) %v1142_v35, 64 }
 0x228   : > { %1145 = vxpose.xlu0.b32.end [2/2] (short) (narrow) %v1143_v36, 64 }
 0x280   : > { %v1041_v37 = vpop.xlane.xlu0 %1040 }
 0x281   : > { %v1045_v38 = vsub.f32 %v1036_v31, %v1041_v37 }
 0x283   : > { %v1047_v39 = vmul.f32 1.442695, %v1045_v38 }
 0x284   : > { %v1044_v40 = vpop.xlane.xlu0 %1043 }
 0x285   : > { %3113 = vpow2.f32 %v1047_v39  ;;  %v1046_v41 = vsub.f32 %v1037_v32, %v1044_v40 }
 0x287   : > { %v1049_v42 = vmul.f32 1.442695, %v1046_v41 }
 0x289   : > { %3115 = vpow2.f32 %v1049_v42 }
 0x28f   : > { %v3114_v43 = vpop.eup %3113 }
 0x290   : > { %v1051_v44 = vsel %vm1038_vm3, %v3114_v43, 0.0 }
 0x291   : > { %1052 = vadd.xlane.f32.xlu1 %v1051_v44 }
 0x293   : > { %v3116_v45 = vpop.eup %3115 }
 0x294   : > { %v1054_v46 = vsel %vm1038_vm3, %v3116_v45, 0.0 }
 0x295   : > { %1055 = vadd.xlane.f32.xlu1 %v1054_v46 }
 0x2a4   : > { %v1160_v50 = vpop.trf.xlu0 }
 0x2a5   : > { %2819 = vmatprep.mubr.msk.f32.mxu0 %vm1038_vm3, %v1160_v50 }
 0x2a8   : > { %v1161_v56 = vpop.trf.xlu0 }
 0x2a9   : > { %2820 = vmatmul.mubr.msk.f32.vlgmr.msra.gmra.mrb[8].mxu0 %vm1038_vm3, %v1161_v56 }
 0x2ac   : > { %v1162_v57 = vpop.trf.xlu0 }
 0x2ad   : > { %2822 = vmatprep.mubr.msk.f32.mxu0 %vm1038_vm3, %v1162_v57 }
 0x2b0   : > { %v1163_v0 = vpop.trf.xlu0 }
 0x2b1   : > { %2823 = vmatmul.mubr.msk.f32.gmra.mrb[10].mxu0 %vm1038_vm3, %v1163_v0 }
 0x2b4   : > { %v1164_v1 = vpop.trf.xlu0 }
 0x2b5   : > { %2825 = vmatprep.mubr.msk.f32.mxu0 %vm1038_vm3, %v1164_v1 }
 0x2b8   : > { %v1165_v2 = vpop.trf.xlu0 }
 0x2b9   : > { %2826 = vmatmul.mubr.msk.f32.gmra.mrb[12].mxu0 %vm1038_vm3, %v1165_v2 }
 0x2bc   : > { %v1166_v3 = vpop.trf.xlu0 }
 0x2bd   : > { %2828 = vmatprep.mubr.msk.f32.mxu0 %vm1038_vm3, %v1166_v3 }
 0x2c0   : > { %v1167_v4 = vpop.trf.xlu0 }
 0x2c1   : > { %2829 = vmatmul.mubr.msk.f32.gmra.mrb[14].mxu0 %vm1038_vm3, %v1167_v4 }
 0x31e   : > { %v1053_v5 = vpop.xlane.xlu1 %1052 }
 0x31f   : > { %3117 = vrcp.f32 %v1053_v5 }
 0x322   : > { %v1056_v6 = vpop.xlane.xlu1 %1055 }
 0x323   : > { %3119 = vrcp.f32 %v1056_v6 }
 0x329   : > { %v3118_v7 = vpop.eup %3117 }
 0x32a   : > { %v1059_v8 = vmul.f32 %v3118_v7, %v3114_v43 }
 0x32c   : > { %2796 = vmatprep.mubr.msk.f32.mxu1 %vm1038_vm3, %v1059_v8  ;;  %2271 = vst.msk [vmem:[%s3559_s20] sm:$0xff] %vm1038_vm3, %v1059_v8 }
 0x32d   : > { %v3120_v11 = vpop.eup %3119 }
 0x32e   : > { %v1060_v12 = vmul.f32 %v3120_v11, %v3116_v45 }
 0x330   : > { %2797 = vmatmul.mubr.msk.f32.vlgmr.msra.gmra.mrb[6].mxu1 %vm1038_vm3, %v1060_v12  ;;  %2272 = vst.msk [vmem:[%s3559_s20 + $0x8] sm:$0xff] %vm1038_vm3, %v1060_v12 }
 0x331   : > { %2961 = vmatpush3.bf16.msra.mxu1 %v2958_v63  ;;  %2803 = vmatprep.mubr.msk.f32.mxu1 %vm1038_vm3, %v1160_v50 }
 0x332   : > { %2967 = vmatprep.subr.bf16.mxu1 %v2966_v13 }
 0x334   : > { %2804 = vmatmul.mubr.msk.f32.vlgmr.msra.gmra.mrb[8].mxu1 %vm1038_vm3, %v1161_v56 }
 0x335   : > { %2806 = vmatprep.mubr.msk.f32.mxu1 %vm1038_vm3, %v1162_v57  ;;  %2969 = vmatpush3.bf16.msra.mxu1 %v2966_v13 }
 0x338   : > { %2807 = vmatmul.mubr.msk.f32.gmra.mrb[10].mxu1 %vm1038_vm3, %v1163_v0 }
 0x339   : > { %2809 = vmatprep.mubr.msk.f32.mxu1 %vm1038_vm3, %v1164_v1 }
 0x33c   : > { %2810 = vmatmul.mubr.msk.f32.gmra.mrb[12].mxu1 %vm1038_vm3, %v1165_v2 }
 0x33d   : > { %2812 = vmatprep.mubr.msk.f32.mxu1 %vm1038_vm3, %v1166_v3 }
 0x340   : > { %2813 = vmatmul.mubr.msk.f32.gmra.mrb[14].mxu1 %vm1038_vm3, %v1167_v4 }
 0x341   : > { %2835 = vmatprep.mubr.msk.f32.mxu1 %vm1038_vm3, %v1160_v50 }
 0x344   : > { %2836 = vmatmul.mubr.msk.f32.vlgmr.msra.gmra.mrb[16].mxu1 %vm1038_vm3, %v1161_v56 }
 0x345   : > { %2838 = vmatprep.mubr.msk.f32.mxu1 %vm1038_vm3, %v1162_v57 }
 0x348   : > { %2839 = vmatmul.mubr.msk.f32.gmra.mrb[18].mxu1 %vm1038_vm3, %v1163_v0 }
 0x349   : > { %2841 = vmatprep.mubr.msk.f32.mxu1 %vm1038_vm3, %v1164_v1 }
 0x34c   : > { %2842 = vmatmul.mubr.msk.f32.gmra.mrb[20].mxu1 %vm1038_vm3, %v1165_v2 }
 0x34d   : > { %2844 = vmatprep.mubr.msk.f32.mxu1 %vm1038_vm3, %v1166_v3 }
 0x350   : > { %2845 = vmatmul.mubr.msk.f32.gmra.mrb[22].mxu1 %vm1038_vm3, %v1167_v4 }
 0x37c   : > { %v2821_v15 = vpop.f32.mrb[8].mxu0 }
 0x37d   : > { %v3585_v16 = vadd.f32 %v2821_v15, %v2573_v14  ;;  %v1389_v17 = vpop.f32.mrb[9].mxu0 }
 0x37e   : > { %v1390_v18 = vadd.f32 %v2573_v14, %v1389_v17 }
 0x380   : > { %2863 = vmatprep.mubr.msk.f32.mxu0 %vm1038_vm3, %v1390_v18 }
 0x384   : > { %v2824_v19 = vpop.f32.mrb[10].mxu0 }
 0x385   : > { %v3588_v20 = vadd.f32 %v2824_v19, %v2573_v14  ;;  %v1399_v21 = vpop.f32.mrb[11].mxu0 }
 0x386   : > { %v3590_v22 = vadd.f32 %v2573_v14, %v1399_v21 }
 0x38c   : > { %v2827_v23 = vpop.f32.mrb[12].mxu0 }
 0x38d   : > { %v3592_v24 = vadd.f32 %v2827_v23, %v2573_v14  ;;  %v1409_v25 = vpop.f32.mrb[13].mxu0 }
 0x38e   : > { %v3594_v26 = vadd.f32 %v2573_v14, %v1409_v25 }
 0x394   : > { %v2830_v27 = vpop.f32.mrb[14].mxu0 }
 0x395   : > { %v3596_v28 = vadd.f32 %v2830_v27, %v2573_v14  ;;  %v1419_v29 = vpop.f32.mrb[15].mxu0 }
 0x396   : > { %v3598_v30 = vadd.f32 %v2573_v14, %v1419_v29 }
 0x403   : > { %v3600_v31 = vpop.f32.mrb[6].mxu1 }
 0x404   : > { %2262 = vst.msk [vmem:[%s3604_s27 + $0x8] sm:$0xff] %vm744_vm1, %v3600_v31  ;;  %v3609_v32 = vpop.f32.mrb[7].mxu1 }
 0x405   : > { %2261 = vst.msk [vmem:[%s3604_s27] sm:$0xff] %vm744_vm1, %v3609_v32  ;;  %s3807_s27 = scalar_lea.sflag [#allocation5], %s2291_s7 }
 0x407   : > { %v2805_v34 = vpop.f32.mrb[8].mxu1 }
 0x408   : > { %v1281_v35 = vadd.f32 %v2805_v34, %v2564_v33  ;;  %v1275_v36 = vpop.f32.mrb[9].mxu1 }
 0x409   : > { %v1276_v37 = vadd.f32 %v2564_v33, %v1275_v36 }
 0x40b   : > { %v2970_v39 = vpack.c.bf16 %v1281_v35, %v1276_v37  ;;  %v2808_v40 = vpop.f32.mrb[10].mxu1 }
 0x40c   : > { %v1291_v41 = vadd.f32 %v2808_v40, %v2564_v33  ;;  %v1285_v42 = vpop.f32.mrb[11].mxu1 }
 0x40d   : > { %2972 = vmatprep.subr.msk.bf16.mxu0 %vm3619_vm4, %v2970_v39  ;;  %v1286_v43 = vadd.f32 %v2564_v33, %v1285_v42 }
 0x40e   : > { %2975 = vmatpush3.bf16.xpose.msk.msra.mxu0 %vm3619_vm4, %v2970_v39 }
 0x40f   : > { %v2976_v44 = vpack.c.bf16 %v1291_v41, %v1286_v43  ;;  %v2811_v45 = vpop.f32.mrb[12].mxu1 }
 0x410   : > { %v1301_v46 = vadd.f32 %v2811_v45, %v2564_v33  ;;  %v1295_v47 = vpop.f32.mrb[13].mxu1 }
 0x411   : > { %v1296_v48 = vadd.f32 %v2564_v33, %v1295_v47  ;;  %2978 = vmatprep.subr.msk.bf16.mxu0 %vm3619_vm4, %v2976_v44 }
 0x413   : > { %v2982_v49 = vpack.c.bf16 %v1301_v46, %v1296_v48  ;;  %v2814_v50 = vpop.f32.mrb[14].mxu1 }
 0x414   : > { %v1311_v51 = vadd.f32 %v2814_v50, %v2564_v33  ;;  %v1305_v52 = vpop.f32.mrb[15].mxu1 }
 0x415   : > { %v1306_v53 = vadd.f32 %v2564_v33, %v1305_v52 }
 0x416   : > { %2981 = vmatpush3.bf16.xpose.msk.msra.mxu0 %vm3619_vm4, %v2976_v44 }
 0x417   : > { %v2988_v55 = vpack.c.bf16 %v1311_v51, %v1306_v53  ;;  %v2837_v56 = vpop.f32.mrb[16].mxu1  ;;  %2984 = vmatprep.subr.msk.bf16.mxu0 %vm3619_vm4, %v2982_v49 }
 0x418   : > { %v1509_v57 = vadd.f32 %v2837_v56, %v2582_v54  ;;  %v1503_v58 = vpop.f32.mrb[17].mxu1 }
 0x419   : > { %v1504_v59 = vadd.f32 %v2582_v54, %v1503_v58 }
 0x41b   : > { %v2994_v60 = vpack.c.bf16 %v1509_v57, %v1504_v59  ;;  %v2840_v61 = vpop.f32.mrb[18].mxu1 }
 0x41c   : > { %v1519_v62 = vadd.f32 %v2840_v61, %v2582_v54  ;;  %v1513_v63 = vpop.f32.mrb[19].mxu1 }
 0x41d   : > { %v1514_v0 = vadd.f32 %v2582_v54, %v1513_v63  ;;  %2995 = vmatprep.subr.bf16.mxu1 %v2994_v60 }
 0x41e   : > { %2987 = vmatpush3.bf16.xpose.msk.msra.mxu0 %vm3619_vm4, %v2982_v49  ;;  %2997 = vmatpush3.bf16.msra.mxu1 %v2994_v60 }
 0x41f   : > { %v2998_v1 = vpack.c.bf16 %v1519_v62, %v1514_v0  ;;  %v2843_v2 = vpop.f32.mrb[20].mxu1  ;;  %2990 = vmatprep.subr.msk.bf16.mxu0 %vm3619_vm4, %v2988_v55 }
 0x420   : > { %v1529_v3 = vadd.f32 %v2843_v2, %v2582_v54  ;;  %v1523_v4 = vpop.f32.mrb[21].mxu1 }
 0x421   : > { %v1524_v5 = vadd.f32 %v2582_v54, %v1523_v4  ;;  %2999 = vmatprep.subr.bf16.mxu1 %v2998_v1 }
 0x422   : > { %3001 = vmatpush3.bf16.msra.mxu1 %v2998_v1 }
 0x423   : > { %v3002_v6 = vpack.c.bf16 %v1529_v3, %v1524_v5  ;;  %v2846_v7 = vpop.f32.mrb[22].mxu1 }
 0x424   : > { %v1539_v8 = vadd.f32 %v2846_v7, %v2582_v54  ;;  %v1533_v9 = vpop.f32.mrb[23].mxu1 }
 0x425   : > { %v1534_v10 = vadd.f32 %v2582_v54, %v1533_v9  ;;  %3003 = vmatprep.subr.bf16.mxu1 %v3002_v6 }
 0x426   : > { %2993 = vmatpush3.bf16.xpose.msk.msra.mxu0 %vm3619_vm4, %v2988_v55  ;;  %3005 = vmatpush3.bf16.msra.mxu1 %v3002_v6 }
 0x427   : > { %v3006_v11 = vpack.c.bf16 %v1539_v8, %v1534_v10 }
 0x429   : > { %3007 = vmatprep.subr.bf16.mxu1 %v3006_v11 }
 0x42a   : > { %3009 = vmatpush3.bf16.msra.mxu1 %v3006_v11 }
 0x42d   : > { %2864 = vmatmul.mubr.msk.f32.vlgmr.msra.gmra.mrb[16].mxu0 %vm1038_vm3, %v3585_v16 }
 0x42e   : > { %2866 = vmatprep.mubr.msk.f32.mxu0 %vm1038_vm3, %v3590_v22 }
 0x431   : > { %2867 = vmatmul.mubr.msk.f32.gmra.mrb[18].mxu0 %vm1038_vm3, %v3588_v20 }
 0x432   : > { %2869 = vmatprep.mubr.msk.f32.mxu0 %vm1038_vm3, %v3594_v26 }
 0x435   : > { %2870 = vmatmul.mubr.msk.f32.gmra.mrb[20].mxu0 %vm1038_vm3, %v3592_v24 }
 0x436   : > { %2872 = vmatprep.mubr.msk.f32.mxu0 %vm1038_vm3, %v3598_v30 }
 0x439   : > { %2873 = vmatmul.mubr.msk.f32.gmra.mrb[22].mxu0 %vm1038_vm3, %v3596_v28 }
 0x500   : > { %v2865_v12 = vpop.f32.mrb[16].mxu0 }
 0x501   : > { %v1696_v13 = vmul.f32 0.25, %v2865_v12  ;;  %v1656_v14 = vpop.f32.mrb[17].mxu0 }
 0x502   : > { %v1695_v15 = vmul.f32 0.25, %v1656_v14  ;;  %v1920_v14 = vld [vmem:[%s3937_s13] sm:$0xff] }
 0x503   : > { %v1706_v16 = vsel %vm744_vm1, %v1696_v13, -inf }
 0x504   : > { %1707 = vmax.xlane.f32.xlu1 %v1706_v16  ;;  %v2868_v17 = vpop.f32.mrb[18].mxu0  ;;  %v1703_v20 = vsel %vm744_vm1, %v1695_v15, -inf }
 0x505   : > { %v1666_v18 = vpop.f32.mrb[19].mxu0  ;;  %v1698_v19 = vmul.f32 0.25, %v2868_v17 }
 0x506   : > { %v1697_v23 = vmul.f32 0.25, %v1666_v18 }
 0x507   : > { %v1712_v24 = vsel %vm744_vm1, %v1698_v19, -inf }
 0x508   : > { %1704 = vmax.xlane.f32.xlu1 %v1703_v20  ;;  %v2871_v21 = vpop.f32.mrb[20].mxu0  ;;  %v1709_v28 = vsel %vm744_vm1, %v1697_v23, -inf }
 0x509   : > { %v1676_v22 = vpop.f32.mrb[21].mxu0  ;;  %v1700_v27 = vmul.f32 0.25, %v2871_v21 }
 0x50a   : > { %v1699_v29 = vmul.f32 0.25, %v1676_v22 }
 0x50b   : > { %v1718_v30 = vsel %vm744_vm1, %v1700_v27, -inf }
 0x50c   : > { %1713 = vmax.xlane.f32.xlu1 %v1712_v24  ;;  %v2874_v25 = vpop.f32.mrb[22].mxu0  ;;  %v1715_v34 = vsel %vm744_vm1, %v1699_v29, -inf  ;;  %v1923_v24 = vld [vmem:[%s3937_s13 + $0x18] sm:$0xff] }
 0x50d   : > { %v1686_v26 = vpop.f32.mrb[23].mxu0  ;;  %v1702_v35 = vmul.f32 0.25, %v2874_v25 }
 0x50e   : > { %v1701_v33 = vmul.f32 0.25, %v1686_v26 }
 0x50f   : > { %v1724_v37 = vsel %vm744_vm1, %v1702_v35, -inf }
 0x510   : > { %1710 = vmax.xlane.f32.xlu1 %v1709_v28  ;;  %v1721_v36 = vsel %vm744_vm1, %v1701_v33, -inf }
 0x514   : > { %1719 = vmax.xlane.f32.xlu1 %v1718_v30  ;;  %v1925_v30 = vld [vmem:[%s3937_s13 + $0x28] sm:$0xff] }
 0x518   : > { %1716 = vmax.xlane.f32.xlu1 %v1715_v34 }
 0x51c   : > { %1722 = vmax.xlane.f32.xlu1 %v1721_v36 }
 0x520   : > { %1725 = vmax.xlane.f32.xlu1 %v1724_v37  ;;  %v1926_v37 = vld [vmem:[%s3937_s13 + $0x30] sm:$0xff] }
 0x591   : > { %v1708_v38 = vpop.xlane.xlu1 %1707 }
 0x592   : > { %v1728_v39 = vsub.f32 %v1696_v13, %v1708_v38  ;;  %v1927_v38 = vld [vmem:[%s3937_s13 + $0x38] sm:$0xff] }
 0x594   : > { %v1737_v40 = vmul.f32 1.442695, %v1728_v39 }
 0x595   : > { %v1705_v41 = vpop.xlane.xlu1 %1704 }
 0x596   : > { %3121 = vpow2.f32 %v1737_v40  ;;  %v1727_v42 = vsub.f32 %v1695_v15, %v1705_v41  ;;  %v1921_v15 = vld [vmem:[%s3937_s13 + $0x8] sm:$0xff] }
 0x597   : > { %v3010_v16 = vpack.c.bf16 %v1921_v15, %v1920_v14  ;;  %v2618_v14 = vld [vmem:[%s3940_s16] ss:$0 sm:$0xff] }
 0x598   : > { %v1735_v43 = vmul.f32 1.442695, %v1727_v42  ;;  %v3022_v42 = vpack.c.bf16 %v1927_v38, %v1926_v37 }
 0x599   : > { %v1714_v44 = vpop.xlane.xlu1 %1713  ;;  %3011 = vmatprep.subr.bf16.mxu1 %v3010_v16 }
 0x59a   : > { %3123 = vpow2.f32 %v1735_v43  ;;  %v1730_v45 = vsub.f32 %v1698_v19, %v1714_v44 }
 0x59c   : > { %v1741_v46 = vmul.f32 1.442695, %v1730_v45 }
 0x59d   : > { %v1711_v47 = vpop.xlane.xlu1 %1710 }
 0x59e   : > { %3125 = vpow2.f32 %v1741_v46  ;;  %v1729_v48 = vsub.f32 %v1697_v23, %v1711_v47  ;;  %v1922_v23 = vld [vmem:[%s3937_s13 + $0x10] sm:$0xff] }
 0x59f   : > { %v3014_v28 = vpack.c.bf16 %v1923_v24, %v1922_v23 }
 0x5a0   : > { %v3122_v49 = vpop.eup %3121  ;;  %v1739_v50 = vmul.f32 1.442695, %v1729_v48 }
 0x5a1   : > { %v1720_v51 = vpop.xlane.xlu1 %1719  ;;  %v1754_v52 = vsel %vm744_vm1, %v3122_v49, 0.0 }
 0x5a2   : > { %3127 = vpow2.f32 %v1739_v50  ;;  %v1732_v53 = vsub.f32 %v1700_v27, %v1720_v51  ;;  %1755 = vadd.xlane.f32.xlu1 %v1754_v52  ;;  %v2016_v52 = vld [vmem:[%s3939_s15] sm:$0xff] }
 0x5a4   : > { %v3124_v54 = vpop.eup %3123  ;;  %v1745_v55 = vmul.f32 1.442695, %v1732_v53  ;;  %v2017_v53 = vld [vmem:[%s3939_s15 + $0x8] sm:$0xff] }
 0x5a5   : > { %v1717_v56 = vpop.xlane.xlu1 %1716  ;;  %v1751_v57 = vsel %vm744_vm1, %v3124_v54, 0.0 }
 0x5a6   : > { %3129 = vpow2.f32 %v1745_v55  ;;  %v1731_v58 = vsub.f32 %v1699_v29, %v1717_v56  ;;  %1752 = vadd.xlane.f32.xlu1 %v1751_v57  ;;  %v1924_v29 = vld [vmem:[%s3937_s13 + $0x20] sm:$0xff]  ;;  %v3026_v55 = vpack.c.bf16 %v2017_v53, %v2016_v52  ;;  %v2021_v57 = vld [vmem:[%s3939_s15 + $0x28] sm:$0xff] }
 0x5a7   : > { %v3018_v36 = vpack.c.bf16 %v1925_v30, %v1924_v29 }
 0x5a8   : > { %v3126_v59 = vpop.eup %3125  ;;  %v1743_v60 = vmul.f32 1.442695, %v1731_v58  ;;  %3027 = vmatprep.subr.bf16.mxu0 %v3026_v55 }
 0x5a9   : > { %v1723_v61 = vpop.xlane.xlu1 %1722  ;;  %v1760_v62 = vsel %vm744_vm1, %v3126_v59, 0.0  ;;  %3029 = vmatpush3.bf16.msra.mxu0 %v3026_v55 }
 0x5aa   : > { %3131 = vpow2.f32 %v1743_v60  ;;  %v1733_v63 = vsub.f32 %v1701_v33, %v1723_v61  ;;  %1761 = vadd.xlane.f32.xlu1 %v1760_v62  ;;  %v2022_v60 = vld [vmem:[%s3939_s15 + $0x30] sm:$0xff]  ;;  %v2023_v61 = vld [vmem:[%s3939_s15 + $0x38] sm:$0xff] }
 0x5ac   : > { %v3128_v0 = vpop.eup %3127  ;;  %v1747_v1 = vmul.f32 1.442695, %v1733_v63  ;;  %v3038_v63 = vpack.c.bf16 %v2023_v61, %v2022_v60 }
 0x5ad   : > { %v1726_v2 = vpop.xlane.xlu1 %1725  ;;  %v1757_v3 = vsel %vm744_vm1, %v3128_v0, 0.0 }
 0x5ae   : > { %3133 = vpow2.f32 %v1747_v1  ;;  %v1734_v4 = vsub.f32 %v1702_v35, %v1726_v2  ;;  %1758 = vadd.xlane.f32.xlu1 %v1757_v3 }
 0x5b0   : > { %v3668_v5 = vpop.eup %3129  ;;  %v1749_v6 = vmul.f32 1.442695, %v1734_v4 }
 0x5b1   : > { %v1766_v7 = vsel %vm744_vm1, %v3668_v5, 0.0 }
 0x5b2   : > { %3135 = vpow2.f32 %v1749_v6  ;;  %1767 = vadd.xlane.f32.xlu0 %v1766_v7  ;;  %v2615_v6 = vld [vmem:[%s3938_s14] ss:$0 sm:$0xff] }
 0x5b4   : > { %v3672_v8 = vpop.eup %3131 }
 0x5b5   : > { %v1763_v9 = vsel %vm744_vm1, %v3672_v8, 0.0 }
 0x5b6   : > { %1764 = vadd.xlane.f32.xlu1 %v1763_v9 }
 0x5b8   : > { %v3676_v10 = vpop.eup %3133 }
 0x5b9   : > { %v1769_v11 = vsel %vm744_vm1, %v3676_v10, 0.0 }
 0x5ba   : > { %1770 = vadd.xlane.f32.xlu1 %v1769_v11 }
 0x5bc   : > { %v3680_v12 = vpop.eup %3135 }
 0x5bd   : > { %v1772_v13 = vsel %vm744_vm1, %v3680_v12, 0.0 }
 0x5be   : > { %1773 = vadd.xlane.f32.xlu1 %v1772_v13 }
 0x62f   : > { %v1756_v17 = vpop.xlane.xlu1 %1755 }
 0x630   : > { %3137 = vrcp.f32 %v1756_v17 }
 0x633   : > { %v1753_v18 = vpop.xlane.xlu1 %1752 }
 0x634   : > { %3139 = vrcp.f32 %v1753_v18 }
 0x637   : > { %v1762_v19 = vpop.xlane.xlu1 %1761 }
 0x638   : > { %3141 = vrcp.f32 %v1762_v19 }
 0x63a   : > { %v3138_v20 = vpop.eup %3137 }
 0x63b   : > { %v1784_v21 = vmul.f32 %v3138_v20, %v3122_v49  ;;  %v1759_v22 = vpop.xlane.xlu1 %1758 }
 0x63c   : > { %3143 = vrcp.f32 %v1759_v22 }
 0x63d   : > { %2274 = vst.msk [vmem:[%s3691_s30 + $0x8] sm:$0xff] %vm744_vm1, %v1784_v21 }
 0x63e   : > { %v3140_v25 = vpop.eup %3139 }
 0x63f   : > { %v1768_v26 = vpop.xlane.xlu0 %1767  ;;  %v1783_v27 = vmul.f32 %v3140_v25, %v3124_v54  ;;  %v2018_v54 = vld [vmem:[%s3939_s15 + $0x10] sm:$0xff] }
 0x640   : > { %3145 = vrcp.f32 %v1768_v26 }
 0x641   : > { %2891 = vmatprep.mubr.msk.f32.mxu1 %vm744_vm1, %v1783_v27  ;;  %2273 = vst.msk [vmem:[%s3691_s30] sm:$0xff] %vm744_vm1, %v1783_v27 }
 0x642   : > { %v3142_v33 = vpop.eup %3141  ;;  %2892 = vmatmul.mubr.msk.f32.vlgmr.msra.gmra.mrb[24].mxu1 %vm744_vm1, %v1784_v21 }
 0x643   : > { %v1765_v34 = vpop.xlane.xlu1 %1764  ;;  %v1786_v35 = vmul.f32 %v3142_v33, %v3126_v59  ;;  %3013 = vmatpush3.bf16.msra.mxu1 %v3010_v16 }
 0x644   : > { %3147 = vrcp.f32 %v1765_v34  ;;  %3015 = vmatprep.subr.bf16.mxu1 %v3014_v28 }
 0x645   : > { %2276 = vst.msk [vmem:[%s3691_s30 + $0x18] sm:$0xff] %vm744_vm1, %v1786_v35 }
 0x646   : > { %v3144_v39 = vpop.eup %3143 }
 0x647   : > { %v1771_v40 = vpop.xlane.xlu1 %1770  ;;  %v1785_v41 = vmul.f32 %v3144_v39, %v3128_v0  ;;  %3017 = vmatpush3.bf16.msra.mxu1 %v3014_v28 }
 0x648   : > { %3149 = vrcp.f32 %v1771_v40  ;;  %3019 = vmatprep.subr.bf16.mxu1 %v3018_v36 }
 0x649   : > { %2894 = vmatprep.mubr.msk.f32.mxu1 %vm744_vm1, %v1785_v41  ;;  %2275 = vst.msk [vmem:[%s3691_s30 + $0x10] sm:$0xff] %vm744_vm1, %v1785_v41 }
 0x64a   : > { %v3146_v43 = vpop.eup %3145  ;;  %2895 = vmatmul.mubr.msk.f32.gmra.mrb[26].mxu1 %vm744_vm1, %v1786_v35 }
 0x64b   : > { %v1774_v44 = vpop.xlane.xlu1 %1773  ;;  %v1788_v45 = vmul.f32 %v3146_v43, %v3668_v5  ;;  %3021 = vmatpush3.bf16.msra.mxu1 %v3018_v36 }
 0x64c   : > { %3151 = vrcp.f32 %v1774_v44  ;;  %3023 = vmatprep.subr.bf16.mxu1 %v3022_v42 }
 0x64d   : > { %2278 = vst.msk [vmem:[%s3691_s30 + $0x28] sm:$0xff] %vm744_vm1, %v1788_v45 }
 0x64e   : > { %v3148_v46 = vpop.eup %3147 }
 0x64f   : > { %v1787_v47 = vmul.f32 %v3148_v46, %v3672_v8  ;;  %3025 = vmatpush3.bf16.msra.mxu1 %v3022_v42 }
 0x651   : > { %2897 = vmatprep.mubr.msk.f32.mxu1 %vm744_vm1, %v1787_v47  ;;  %2277 = vst.msk [vmem:[%s3691_s30 + $0x20] sm:$0xff] %vm744_vm1, %v1787_v47 }
 0x652   : > { %v3150_v48 = vpop.eup %3149  ;;  %2898 = vmatmul.mubr.msk.f32.gmra.mrb[28].mxu1 %vm744_vm1, %v1788_v45 }
 0x653   : > { %v1789_v49 = vmul.f32 %v3150_v48, %v3676_v10 }
 0x655   : > { %2900 = vmatprep.mubr.msk.f32.mxu1 %vm744_vm1, %v1789_v49  ;;  %2279 = vst.msk [vmem:[%s3691_s30 + $0x30] sm:$0xff] %vm744_vm1, %v1789_v49 }
 0x656   : > { %v3152_v50 = vpop.eup %3151 }
 0x657   : > { %v1790_v51 = vmul.f32 %v3152_v50, %v3680_v12 }
 0x659   : > { %2901 = vmatmul.mubr.msk.f32.gmra.mrb[30].mxu1 %vm744_vm1, %v1790_v51  ;;  %2280 = vst.msk [vmem:[%s3691_s30 + $0x38] sm:$0xff] %vm744_vm1, %v1790_v51  ;;  %s3279_s30 = smov [#allocation4]  }
 0x65a   : > { %2919 = vmatprep.mubr.msk.f32.mxu1 %vm744_vm1, %v3609_v32  ;;  %v2019_v32 = vld [vmem:[%s3939_s15 + $0x18] sm:$0xff]  ;;  %s3157_s21 = sshll.u32 %s3279_s30, 4  ;;  %s3158_s21 = int_to_ptr.vmem [resolvable:$false] %s3157_s21 }
 0x65b   : > { %v3030_v56 = vpack.c.bf16 %v2019_v32, %v2018_v54  ;;  %s3159_s2 = scalar_lea.vmem %s3158_s21, 512 }
 0x65d   : > { %2920 = vmatmul.mubr.msk.f32.vlgmr.msra.gmra.mrb[32].mxu1 %vm744_vm1, %v3600_v31  ;;  %v2020_v31 = vld [vmem:[%s3939_s15 + $0x20] sm:$0xff]  ;;  %3031 = vmatprep.subr.bf16.mxu0 %v3030_v56 }
 0x65e   : > { %v3034_v58 = vpack.c.bf16 %v2021_v57, %v2020_v31  ;;  %3033 = vmatpush3.bf16.msra.mxu0 %v3030_v56 }
 0x660   : > { %3035 = vmatprep.subr.bf16.mxu0 %v3034_v58 }
 0x662   : > { %3037 = vmatpush3.bf16.msra.mxu0 %v3034_v58 }
 0x663   : > { %3039 = vmatprep.subr.bf16.mxu0 %v3038_v63 }
 0x666   : > { %3041 = vmatpush3.bf16.msra.mxu0 %v3038_v63 }
 0x715   : > { %v2893_v59 = vpop.f32.mrb[24].mxu1 }
 0x716   : > { %2264 = vst.msk [vmem:[%s691_s1 + $0x8] sm:$0xff] %vm1038_vm3, %v2893_v59  ;;  %v1881_v62 = vpop.f32.mrb[25].mxu1 }
 0x717   : > { %2263 = vst.msk [vmem:[%s691_s1] sm:$0xff] %vm1038_vm3, %v1881_v62  ;;  %2031 = vxpose.xlu1.b32.start [1/8] (short) (narrow) %v1881_v62, 16 }
 0x71b   : > { %2032 = vxpose.xlu1.b32.cont [2/8] (short) (narrow) %v2893_v59, 16 }
 0x71d   : > { %v2896_v0 = vpop.f32.mrb[26].mxu1 }
 0x71e   : > { %2266 = vst.msk [vmem:[%s691_s1 + $0x18] sm:$0xff] %vm1038_vm3, %v2896_v0  ;;  %v1891_v1 = vpop.f32.mrb[27].mxu1 }
 0x71f   : > { %2265 = vst.msk [vmem:[%s691_s1 + $0x10] sm:$0xff] %vm1038_vm3, %v1891_v1  ;;  %2033 = vxpose.xlu1.b32.cont [3/8] (short) (narrow) %v1891_v1, 16 }
 0x723   : > { %2034 = vxpose.xlu1.b32.cont [4/8] (short) (narrow) %v2896_v0, 16 }
 0x725   : > { %v2899_v2 = vpop.f32.mrb[28].mxu1 }
 0x726   : > { %2268 = vst.msk [vmem:[%s691_s1 + $0x28] sm:$0xff] %vm1038_vm3, %v2899_v2  ;;  %v1901_v3 = vpop.f32.mrb[29].mxu1 }
 0x727   : > { %2267 = vst.msk [vmem:[%s691_s1 + $0x20] sm:$0xff] %vm1038_vm3, %v1901_v3  ;;  %2035 = vxpose.xlu1.b32.cont [5/8] (short) (narrow) %v1901_v3, 16 }
 0x72b   : > { %2036 = vxpose.xlu1.b32.cont [6/8] (short) (narrow) %v2899_v2, 16 }
 0x72c   : > { %v2902_v4 = vpop.f32.mrb[30].mxu1 }
 0x72d   : > { %2270 = vst.msk [vmem:[%s691_s1 + $0x38] sm:$0xff] %vm1038_vm3, %v2902_v4  ;;  %v1911_v5 = vpop.f32.mrb[31].mxu1 }
 0x72e   : > { %2269 = vst.msk [vmem:[%s691_s1 + $0x30] sm:$0xff] %vm1038_vm3, %v1911_v5  ;;  %s2334_s1 = sshll.u32 %s3559_s20, 4  ;;  %s3794_s1 = int_to_ptr.vmem [resolvable:$true] %s2334_s1 }
 0x72f   : > { %2037 = vxpose.xlu1.b32.cont [7/8] (short) (narrow) %v1911_v5, 16  ;;  %s3153_s20 = scalar_lea.vmem %s3794_s1, 256  ;;  %p3160_p0 = scmp.lt.s32.totalorder %s3794_s1, %s3158_s21 }
 0x730   : > { %v2921_v7 = vpop.f32.mrb[32].mxu1  ;;  %p3154_p11 = scmp.ne.s32.totalorder %s3794_s1, %s3153_s20  ;;  %p3161_p1 = scmp.lt.s32.totalorder %s3159_s2, %s3153_s20 }
 0x731   : > { %v2007_v8 = vpop.f32.mrb[33].mxu1  ;;  %v2013_v10 = vadd.f32 %v2921_v7, %v2615_v6 }
 0x732   : > { %v2008_v9 = vadd.f32 %v2615_v6, %v2007_v8  ;;  %p3155_p12 = pnand %p3154_p11, %p3434_p5  ;;  %p3162_p2 = por %p3161_p1, %p3160_p0 }
 0x733   : > { %2038 = vxpose.xlu1.b32.end [8/8] (short) (narrow) %v2902_v4, 16 }
 0x734   : > { %2144 = vxpose.xlu0.b32.start [1/2] (short) (narrow) %v2008_v9, 16  ;;  %p3156_p13 = pneg %p3155_p12 }
 0x736   : > { %p3163_p3 = pnand %p3162_p2, %p3156_p13 }
 0x738   : > { %2145 = vxpose.xlu0.b32.end [2/2] (short) (narrow) %v2013_v10, 16 }
 0x797   : > { %v2047_v11 = vpop.trf.xlu1 }
 0x798   : > { %2938 = vmatprep.mubr.msk.f32.mxu0 %vm744_vm1, %v2047_v11 }
 0x79b   : > { %v2048_v12 = vpop.trf.xlu1 }
 0x79c   : > { %2939 = vmatmul.mubr.msk.f32.vlgmr.msra.gmra.mrb[24].mxu0 %vm744_vm1, %v2048_v12 }
 0x7b4   : > { %v2160_v13 = vpop.trf.xlu0 }
 0x7b5   : > { %2945 = vmatprep.mubr.msk.f32.mxu1 %vm1038_vm3, %v2160_v13 }
 0x7b8   : > { %v2161_v20 = vpop.trf.xlu0 }
 0x86f   : > { %v2940_v15 = vpop.f32.mrb[24].mxu0 }
 0x870   : > { %v2141_v16 = vadd.f32 %v2940_v15, %v2618_v14  ;;  %v2135_v17 = vpop.f32.mrb[25].mxu0 }
 0x871   : > { %v2136_v18 = vadd.f32 %v2618_v14, %v2135_v17 }
 0x873   : > { %v3042_v19 = vpack.c.bf16 %v2141_v16, %v2136_v18 }
 0x875   : > { %3043 = vmatprep.subr.bf16.mxu1 %v3042_v19 }
 0x876   : > { %3045 = vmatpush3.bf16.msra.mxu1 %v3042_v19 }
 0x879   : > { %2946 = vmatmul.mubr.msk.f32.vlgmr.msra.gmra.mrb[34].mxu1 %vm1038_vm3, %v2161_v20 }
 0x87a   : > { %3166 = shalt.err (!%p3163_p3)
}
 0x87b   : > { %s3167_s7 = scalar_lea.hbm %s3805_s28, 256  ;;  %s3171_s30 = scalar_lea.hbm %s3943_s19, 512 }
 0x87c   : > { %p3168_p4 = scmp.ne.s32.totalorder %s3805_s28, %s3167_s7  ;;  %p3172_p9 = scmp.lt.u32.totalorder %s3805_s28, %s3943_s19 }
 0x87d   : > { %p3173_p10 = scmp.lt.u32.totalorder %s3171_s30, %s3167_s7  ;;  %p3175_p12 = scmp.lt.u32.totalorder %s3167_s7, %s3805_s28 }
 0x87e   : > { %p3169_p7 = pnand %p3168_p4, %p3434_p5 }
 0x87f   : > { %p3174_p11 = por %p3173_p10, %p3172_p9 }
 0x880   : > { %p3170_p8 = pneg %p3169_p7 }
 0x881   : > { %p3176_p13 = por %p3175_p12, %p3174_p11 }
 0x883   : > { %p3177_p0 = pnand %p3176_p13, %p3170_p8 }
 0x885   : > { %3180 = shalt.err (!%p3177_p0)
}
 0x886   : > { %s3280_s20 = smov 128   ;;  %s3281_s8 = smov 8  }
 0x887   : > { %3047 = dma.vmem_to_hbm [thread:$0]  (%p3434_p5), %s3794_s1, 256, %s3805_s28, %s3807_s27, %s3280_s20, %s3280_s20, %s3281_s8  }
 0x888   : > { %s3999_s2 = sshll.u32 %s3415_s3, 8  ;;  %s2639_s30 = sshll.u32 %s3415_s3, 10 }
 0x889   : > { %s3839_s26 = scalar_lea.hbm %s3941_s17, %s3999_s2  ;;  %s2282_s21 = scalar_lea.sflag [#allocation3], %s3547_s22 }
 0x88a   : > { %s3181_s9 = scalar_lea.vmem %s3792_s6, 256  ;;  %s3282_s10 = smov [#allocation2]  }
 0x88b   : > { %p3182_p1 = scmp.ne.s32.totalorder %s3792_s6, %s3181_s9  ;;  %s3185_s11 = sshll.u32 %s3282_s10, 4  ;;  %s3186_s11 = int_to_ptr.vmem [resolvable:$false] %s3185_s11 }
 0x88c   : > { %s3187_s12 = scalar_lea.vmem %s3186_s11, 512  ;;  %p3188_p4 = scmp.lt.s32.totalorder %s3792_s6, %s3186_s11 }
 0x88d   : > { %p3183_p2 = pnand %p3182_p1, %p3434_p5  ;;  %p3189_p7 = scmp.lt.s32.totalorder %s3187_s12, %s3181_s9 }
 0x88f   : > { %p3184_p3 = pneg %p3183_p2  ;;  %p3190_p8 = por %p3189_p7, %p3188_p4 }
 0x891   : > { %p3191_p9 = pnand %p3190_p8, %p3184_p3 }
 0x893   : > { %3194 = shalt.err (!%p3191_p9)
}
 0x894   : > { %s3195_s1 = scalar_lea.hbm %s3839_s26, 256  ;;  %s3199_s10 = scalar_lea.hbm %s3941_s17, 512 }
 0x895   : > { %p3196_p10 = scmp.ne.s32.totalorder %s3839_s26, %s3195_s1  ;;  %p3200_p13 = scmp.lt.u32.totalorder %s3839_s26, %s3941_s17 }
 0x896   : > { %p3201_p0 = scmp.lt.u32.totalorder %s3199_s10, %s3195_s1  ;;  %p3203_p2 = scmp.lt.u32.totalorder %s3195_s1, %s3839_s26 }
 0x897   : > { %p3197_p11 = pnand %p3196_p10, %p3434_p5 }
 0x898   : > { %p3202_p1 = por %p3201_p0, %p3200_p13 }
 0x899   : > { %p3198_p12 = pneg %p3197_p11 }
 0x89a   : > { %p3204_p3 = por %p3203_p2, %p3202_p1 }
 0x89c   : > { %p3205_p4 = pnand %p3204_p3, %p3198_p12 }
 0x89e   : > { %3208 = shalt.err (!%p3205_p4)
}
 0x89f   : > { %3046 = dma.vmem_to_hbm [thread:$0]  (%p3434_p5), %s3792_s6, 256, %s3839_s26, %s2282_s21, %s3280_s20, %s3280_s20, %s3281_s8  }
 0x8a0   : > { %s4000_s23 = sld [smem:[#allocation28_spill]]  ;;  %s3209_s28 = scalar_lea.vmem %s3796_s4, 1024 }
 0x8a1   : > { %p3210_p7 = scmp.ne.s32.totalorder %s3796_s4, %s3209_s28  ;;  %s3283_s22 = smov [#allocation6]  }
 0x8a2   : > { %s3213_s2 = sshll.u32 %s3283_s22, 4  ;;  %s3214_s2 = int_to_ptr.vmem [resolvable:$false] %s3213_s2 }
 0x8a3   : > { %p3211_p8 = pnand %p3210_p7, %p3434_p5  ;;  %s3215_s10 = scalar_lea.vmem %s3214_s2, 2048 }
 0x8a4   : > { %p3216_p10 = scmp.lt.s32.totalorder %s3796_s4, %s3214_s2  ;;  %p3217_p11 = scmp.lt.s32.totalorder %s3215_s10, %s3209_s28 }
 0x8a5   : > { %p3212_p9 = pneg %p3211_p8 }
 0x8a6   : > { %s3874_s1 = scalar_lea.hbm %s4000_s23, %s2639_s30  ;;  %p3218_p12 = por %p3217_p11, %p3216_p10 }
 0x8a8   : > { %p3219_p13 = pnand %p3218_p12, %p3212_p9 }
 0x8aa   : > { %3222 = shalt.err (!%p3219_p13)
}
 0x8ab   : > { %s3223_s3 = scalar_lea.hbm %s3874_s1, 1024  ;;  %s3227_s30 = scalar_lea.hbm %s4000_s23, 2048 }
 0x8ac   : > { %p3224_p0 = scmp.ne.s32.totalorder %s3874_s1, %s3223_s3  ;;  %p3228_p3 = scmp.lt.u32.totalorder %s3874_s1, %s4000_s23 }
 0x8ad   : > { %p3229_p4 = scmp.lt.u32.totalorder %s3227_s30, %s3223_s3  ;;  %p3231_p8 = scmp.lt.u32.totalorder %s3223_s3, %s3874_s1 }
 0x8ae   : > { %p3225_p1 = pnand %p3224_p0, %p3434_p5 }
 0x8af   : > { %p3230_p7 = por %p3229_p4, %p3228_p3 }
 0x8b0   : > { %p3226_p2 = pneg %p3225_p1 }
 0x8b1   : > { %p3232_p9 = por %p3231_p8, %p3230_p7 }
 0x8b3   : > { %p3233_p10 = pnand %p3232_p9, %p3226_p2 }
 0x8b5   : > { %3236 = shalt.err (!%p3233_p10)
}
 0x8b6   : > { %3048 = dma.vmem_to_hbm [thread:$0]  (%p3434_p5), %s3796_s4, 1024, %s3874_s1, %s3807_s27, %s3280_s20, %s3280_s20, %s3281_s8   ;;  %vm2259_vm5 = vcmask 74752   ;;  %vm2257_vm6 = vcmask 80896  }
 0x8b7   : > { %s2636_s11 = sshll.u32 %s3465_s0, 4  ;;  %s4001_s28 = sld [smem:[#allocation29_spill]] }
 0x8bd   : > { %s696_s22 = scalar_lea.vmem %s4001_s28, %s2636_s11 }
 0x94c   : > { %v2947_v21 = vpop.f32.mrb[34].mxu1 }
 0x94d   : > { %2260 = vst.msk [vmem:[%s696_s22 + $0x8] sm:$0x3] %vm2259_vm5, %v2947_v21  ;;  %v2248_v22 = vpop.f32.mrb[35].mxu1 }
 0x94e   : > { %2258 = vst.msk [vmem:[%s696_s22] sm:$0xff] %vm2257_vm6, %v2248_v22 }
 0x94f PF: > { %s4002_s5 = sld [smem:[#allocation11_spill]]  ;;  %s4003_s2 = sld [smem:[#allocation9_spill]] }
 0x955   : > { %p3062_p11 = scmp.ge.s32.totalorder %s4002_s5, 2  ;;  %s2368_s3 = sand.u32 1, %s4003_s2  }
 0x956   : > { %s2369_s4 = scalar_lea.sflag [#allocation3], %s2368_s3 }
 0x957   : > { %p3053_p12 = pnand %p3062_p11, %p3438_p6 }
 0x959   : > { %3254 = dma.done.wait (!%p3053_p12), %s2369_s4, 256  }
 0x95a   : > { %3256 = vsyncadd (!%p3053_p12), %s2369_s4, 4294967040  ;;  %s4005_s0 = sadd.s32 4294967294, %s4002_s5  }
 0x95b   : > { %s2385_s27 = sand.u32 1, %s4005_s0  }
 0x95c   : > { %s2386_s20 = scalar_lea.sflag [#allocation5], %s2385_s27 }
 0x95d   : > { %3258 = dma.done.wait (!%p3053_p12), %s2386_s20, 1280  }
 0x95e   : > { %3260 = vsyncadd (!%p3053_p12), %s2386_s20, 4294966016  ;;  %s4006_s27 = sld [smem:[#allocation12_spill]]  ;;  %s4007_s8 = sld [smem:[#allocation10_spill]] }
 0x95f   : > { %s4008_s26 = sld [smem:[#allocation13_spill]]  ;;  %s4009_s2 = smov %s3267_s25 }
 0x964   : > { %p35_p5 = scmp.ge.s32.totalorder %s4006_s27, 4   ;;  %s4010_s25 = smov %s4007_s8 }
 0x966   :  { %37 = sbr.rel (!%p35_p5) target bundleno = 21 (0x15), region = 179 }
 0x96d   :  { %2408 = vsyncpa [#allocation3], 1 }
 0x96e   :  { %2410 = vsyncpa [#allocation3 + $0x1], 1 }
 0x96f   :  { %2411 = vsyncpa [#allocation5], 1 }
 0x970   :  { %2413 = vsyncpa [#allocation5 + $0x1], 1 }

// kernel: mp_tfwa_forward.7
= control target key start
LH: loop header
LB: loop body
LE: loop exit
PB: predicated region body
PF: predicated region fallthrough
CT: control target
= control target key end

     0   :  { %s4105_s0 = inlined_call_operand.vmem [shape: bf16[2,24,64], index: 0, kind: input, shape index: {}]   ;;  %s4106_s1 = inlined_call_operand.vmem [shape: bf16[64,64], index: 1, kind: input, shape index: {}]   ;;  %s4107_s2 = inlined_call_operand.vmem [shape: bf16[64,64], index: 2, kind: input, shape index: {}]   ;;  %s4108_s3 = inlined_call_operand.vmem [shape: bf16[64,64], index: 3, kind: input, shape index: {}]   ;;  %s4109_s4 = inlined_call_operand.vmem [shape: f32[1,64], index: 4, kind: input, shape index: {}]   ;;  %s4110_s5 = inlined_call_operand.vmem [shape: f32[1,64], index: 5, kind: input, shape index: {}]   ;;  %s4111_s6 = inlined_call_operand.vmem [shape: f32[1,64], index: 6, kind: input, shape index: {}]   ;;  %s4112_s7 = inlined_call_operand.vmem [shape: f32[24,24], index: 7, kind: input, shape index: {}]   ;;  %s4113_s8 = inlined_call_operand.vmem [shape: f32[24,24], index: 8, kind: input, shape index: {}]   ;;  %s4114_s9 = inlined_call_operand.vmem [shape: f32[24,24], index: 9, kind: input, shape index: {}]   ;;  %s4115_s10 = inlined_call_operand.vmem [shape: f32[1,24], index: 10, kind: input, shape index: {}]   ;;  %s4116_s11 = inlined_call_operand.vmem [shape: f32[1,24], index: 11, kind: input, shape index: {}]   ;;  %s4117_s12 = inlined_call_operand.vmem [shape: f32[1,24], index: 12, kind: input, shape index: {}]   ;;  %s4118_s13 = inlined_call_operand.vmem [shape: f32[64,10], index: 13, kind: input, shape index: {}]   ;;  %s4119_s14 = inlined_call_operand.vmem [shape: f32[1,10], index: 14, kind: input, shape index: {}]   ;;  %s4120_s15 = inlined_call_operand.vmem [shape: f32[64,10], index: 15, kind: input, shape index: {}]   ;;  %s4121_s16 = inlined_call_operand.vmem [shape: f32[1,10], index: 16, kind: input, shape index: {}]   ;;  %s4122_s17 = inlined_call_operand.hbm [shape: f32[2,24,64], index: 17, kind: output, shape index: {0}]   ;;  %s4123_s18 = inlined_call_operand.vmem [shape: f32[2,64,24], index: 18, kind: output, shape index: {1}]   ;;  %s4124_s19 = inlined_call_operand.hbm [shape: f32[2,24,24], index: 19, kind: output, shape index: {2}]   ;;  %s4125_s20 = inlined_call_operand.hbm [shape: f32[2,64,64], index: 20, kind: output, shape index: {3}]   ;;  %s4126_s21 = inlined_call_operand.vmem [shape: f32[2,10,10], index: 21, kind: output, shape index: {4}]  }
   0x1   :  { %4144 = sst [smem:[#allocation15_spill]] %s4105_s0 }
   0x2   :  { %4145 = sst [smem:[#allocation16_spill]] %s4106_s1 }
   0x3   :  { %4146 = sst [smem:[#allocation17_spill]] %s4107_s2 }
   0x4   :  { %4147 = sst [smem:[#allocation18_spill]] %s4108_s3 }
   0x5   :  { %4148 = sst [smem:[#allocation19_spill]] %s4109_s4 }
   0x6   :  { %4149 = sst [smem:[#allocation20_spill]] %s4110_s5 }
   0x7   :  { %4150 = sst [smem:[#allocation21_spill]] %s4111_s6 }
   0x8   :  { %4151 = sst [smem:[#allocation22_spill]] %s4112_s7 }
   0x9   :  { %4152 = sst [smem:[#allocation23_spill]] %s4113_s8 }
   0xa   :  { %4153 = sst [smem:[#allocation24_spill]] %s4114_s9 }
   0xb   :  { %4154 = sst [smem:[#allocation25_spill]] %s4115_s10 }
   0xc   :  { %4155 = sst [smem:[#allocation26_spill]] %s4116_s11 }
   0xd   :  { %4156 = sst [smem:[#allocation27_spill]] %s4122_s17 }
   0xe   :  { %4157 = sst [smem:[#allocation28_spill]] %s4124_s19 }
   0xf   :  { %4158 = sst [smem:[#allocation29_spill]] %s4125_s20 }
  0x10   :  { %4159 = sst [smem:[#allocation30_spill]] %s4126_s21 }
  0x11   :  { %27 = vsyncpa [#allocation3], 0 }
  0x12   :  { %29 = vsyncpa [#allocation3 + $0x1], 0 }
  0x13   :  { %30 = vsyncpa [#allocation5], 0 }
  0x14   :  { %32 = vsyncpa [#allocation5 + $0x1], 0  ;;  %s3527_s2 = smov 0   ;;  %s3529_s25 = smov 0  }
  0x15   :  { %s3531_s26 = smov 0   ;;  %s3533_s27 = smov 0  }
  0x16 LB: > { %4160 = sst [smem:[#allocation9_spill]] %s3395_s2  ;;  %s3548_s3 = sadd.s32 4294967295, %s3407_s27   ;;  %s3407_s27 = sphi %s3533_s27, %s4191_s27   ;;  %s3403_s26 = sphi %s3531_s26, %s4193_s26   ;;  %s3399_s25 = sphi %s3529_s25, %s4195_s25   ;;  %s3395_s2 = sphi %s3527_s2, %s4194_s2  }
  0x17   : > { %4161 = sst [smem:[#allocation10_spill]] %s3403_s26  ;;  %s4130_s28 = sadd.s32 4294967294, %s3407_s27  }
  0x18   : > { %4162 = sst [smem:[#allocation11_spill]] %s3407_s27  ;;  %s3552_s29 = sadd.s32 1, %s3407_s27  }
  0x19   : > { %4163 = sst [smem:[#allocation12_spill]] %s3552_s29  ;;  %s407_s0 = sadd.s32 1, %s3403_s26 }
  0x1a   : > { %s404_s4 = ssub.s32 %s3407_s27, %s3552_s29  ;;  %p417_p0 = scmp.ne.s32.totalorder %s3403_s26, %s3399_s25 }
  0x1b   : > { %p405_p1 = scmp.eq.s32.totalorder %s404_s4, 0  ;;  %p418_p2 = scmp.eq.s32.totalorder %s3548_s3, 1 }
  0x1c   : > { %p423_p3 = scmp.ne.s32.totalorder %s3399_s25, %s3395_s2  ;;  %p424_p4 = scmp.eq.s32.totalorder %s4130_s28, 1 }
  0x1d   : > { %s3565_s30 = scalar_select %p405_p1, %s3403_s26, %s407_s0  }
  0x1e   : > { %p3567_p5 = por %p418_p2, %p417_p0  ;;  %p3571_p6 = por %p424_p4, %p423_p3 }
  0x1f   : > { %4164 = sst [smem:[#allocation13_spill]] %s3565_s30  ;;  %p2610_p7 = scmp.ge.s32.totalorder %s3407_s27, 1 }
  0x20   : > { %s4166_s22 = scalar_select %p3571_p6, 1, 0 }
  0x21   : > { %p602_p8 = scmp.lt.s32.totalorder %s3407_s27, 3 }
  0x22   : > { %4167 = sst [smem:[#allocation14_spill]] %s4166_s22 }
  0x23   : > { %p603_p9 = pnand %p2610_p7, %p602_p8 }
  0x24   : > { %s4168_s24 = sld [smem:[#allocation16_spill]] (!%p603_p9)  ;;  %p682_p10 = scmp.lt.s32.totalorder (!%p603_p9), %s3548_s3, 1  ;;  %vm748_vm0 = vcmask (!%p603_p9), 523264   ;;  %v3409_v11 = vmov (!%p603_p9), 0.0|0.0   ;;  %vm3410_vm1 = vmmov (!%p603_p9), 0   ;;  %v3411_v12 = vmov (!%p603_p9), 0.0  }
  0x25   : > { %606 = sbr.rel (%p603_p9) target bundleno = 2420 (0x974), region = 88  ;;  %s4169_s1 = sld [smem:[#allocation17_spill]] (!%p603_p9)  ;;  %vm3079_vm2 = vmpackc.low (!%p603_p9), %vm748_vm0, %vm748_vm0  ;;  %vm1078_vm3 = vcmask (!%p603_p9), 195584  }
  0x26   : > { %s4170_s21 = sld [smem:[#allocation15_spill]] (!%p603_p9)  ;;  %s4171_s2 = sld [smem:[#allocation19_spill]] (!%p603_p9)  ;;  %vm3776_vm4 = vmpackc.low (!%p603_p9), %vm1078_vm3, %vm1078_vm3 }
  0x27   : > { %s4173_s4 = sld [smem:[#allocation18_spill]] (!%p603_p9)  ;;  %s4174_s6 = sld [smem:[#allocation21_spill]] (!%p603_p9) }
  0x28   : > { %s4175_s7 = sld [smem:[#allocation22_spill]] (!%p603_p9)  ;;  %s4176_s8 = sld [smem:[#allocation23_spill]] (!%p603_p9) }
  0x29   : > { %s4177_s9 = sld [smem:[#allocation24_spill]] (!%p603_p9)  ;;  %s4178_s10 = sld [smem:[#allocation25_spill]] (!%p603_p9) }
  0x2a   : > { %v3226_v0 = vld [vmem:[%s4168_s24] sm:$0xff] (!%p603_p9)   ;;  %v3227_v1 = vld [vmem:[%s4168_s24 + $0x8] sm:$0xff] (!%p603_p9)   ;;  %v3228_v2 = vld [vmem:[%s4168_s24 + $0x10] sm:$0xff] (!%p603_p9)   ;;  %s4179_s11 = sld [smem:[#allocation26_spill]] (!%p603_p9)  ;;  %s2372_s23 = sand.u32 (!%p603_p9), 1, %s3548_s3  }
  0x2b   : > { %2842 = vmatprep.subr.bf16.mxu0 (!%p603_p9), %v3226_v0  ;;  %v3230_v3 = vld [vmem:[%s4169_s1] sm:$0xff] (!%p603_p9)   ;;  %v3233_v4 = vld [vmem:[%s4169_s1 + $0x8] sm:$0xff] (!%p603_p9)   ;;  %v3229_v5 = vld [vmem:[%s4168_s24 + $0x18] sm:$0xff] (!%p603_p9)   ;;  %s4182_s19 = sld [smem:[#allocation28_spill]] (!%p603_p9) }
  0x2c   : > { %s3585_s28 = scalar_select %p682_p10, %s3548_s3, 1  ;;  %2843 = vmatpush3.bf16.msra.mxu0 %v3226_v0  ;;  %2854 = vmatprep.subr.bf16.mxu1 %v3230_v3  ;;  %v3234_v7 = vld [vmem:[%s4169_s1 + $0x10] sm:$0xff]   ;;  %v3235_v9 = vld [vmem:[%s4169_s1 + $0x18] sm:$0xff]   ;;  %v2617_v14 = vld [vmem:[%s4171_s2] ss:$0 sm:$0xff] }
  0x2d   : > { %2844 = vmatprep.subr.bf16.mxu0 %v3227_v1  ;;  %2855 = vmatpush3.bf16.msra.mxu1 %v3230_v3  ;;  %v3236_v30 = vld [vmem:[%s4173_s4] sm:$0xff]   ;;  %v3237_v31 = vld [vmem:[%s4173_s4 + $0x8] sm:$0xff]   ;;  %v3238_v32 = vld [vmem:[%s4173_s4 + $0x10] sm:$0xff]  }
  0x2e   : > { %s3169_s22 = smul.u32 12, %s3585_s28  ;;  %2856 = vmatprep.subr.bf16.mxu1 %v3233_v4  ;;  %v3239_v33 = vld [vmem:[%s4173_s4 + $0x18] sm:$0xff]   ;;  %v2633_v0 = vld [vmem:[%s4174_s6] ss:$0 sm:$0xff] }
  0x30   : > { %s686_s20 = scalar_lea.vmem %s4170_s21, %s3169_s22  ;;  %2845 = vmatpush3.bf16.msra.mxu0 %v3227_v1  ;;  %s4172_s22 = sld [smem:[#allocation20_spill]] }
  0x31   : > { %v3603_v6 = vld [vmem:[%s686_s20] sm:$0xff]   ;;  %2846 = vmatprep.subr.bf16.mxu0 %v3228_v2  ;;  %v3612_v8 = vld [vmem:[%s686_s20 + $0x8] sm:$0xf]  ;;  %2857 = vmatpush3.bf16.msra.mxu1 %v3233_v4  ;;  %s3689_s20 = sand.u32 1, %s3399_s25  }
  0x32   : > { %2850 = vmatprep.mubr.msk.bf16.mxu0 %vm748_vm0, %v3603_v6  ;;  %2862 = vmatprep.mubr.msk.bf16.mxu1 %vm748_vm0, %v3603_v6  ;;  %v2619_v10 = vcombine.low %v3612_v8, %v3612_v8  ;;  %s3168_s21 = smul.u32 24, %s3689_s20  ;;  %s2611_s17 = sshll.u32 %s3689_s20, 6 }
  0x33   : > { %2858 = vmatprep.subr.bf16.mxu1 %v3234_v7 }
  0x34   : > { %2847 = vmatpush3.bf16.msra.mxu0 %v3228_v2  ;;  %s3704_s26 = scalar_lea.vmem [#allocation4], %s3168_s21  ;;  %s3750_s27 = scalar_lea.vmem [#allocation2], %s3168_s21 }
  0x35   : > { %2848 = vmatprep.subr.bf16.mxu0 %v3229_v5  ;;  %2859 = vmatpush3.bf16.msra.mxu1 %v3234_v7  ;;  %v1236_v7 = vld [vmem:[%s4175_s7] sm:$0xff]  ;;  %s2415_s2 = sshll.u32 %s3704_s26, 4  ;;  %s3975_s2 = int_to_ptr.vmem [resolvable:$true] %s2415_s2 }
  0x36   : > { %2860 = vmatprep.subr.bf16.mxu1 %v3235_v9  ;;  %v2626_v25 = vld [vmem:[%s4172_s22] ss:$0 sm:$0xff]  ;;  %s3853_s22 = scalar_lea.vmem [#allocation6], %s2611_s17  ;;  %s2717_s17 = sshll.u32 %s3585_s28, 6 }
  0x37   : > { %s691_s30 = scalar_lea.vmem %s4123_s18, %s2717_s17  ;;  %s2396_s17 = sshll.u32 %s3750_s27, 4  ;;  %s3973_s17 = int_to_ptr.vmem [resolvable:$true] %s2396_s17 }
  0x38   : > { %2849 = vmatpush3.bf16.msra.mxu0 %v3229_v5  ;;  %s2431_s21 = sshll.u32 %s3853_s22, 4  ;;  %s3978_s21 = int_to_ptr.vmem [resolvable:$true] %s2431_s21 }
  0x39   : > { %2861 = vmatpush3.bf16.msra.mxu1 %v3235_v9  ;;  %2866 = vmatprep.subr.bf16.mxu0 %v3236_v30  ;;  %v1237_v9 = vld [vmem:[%s4175_s7 + $0x8] sm:$0xff] }
  0x3a   : > { %3077 = vmatprep.subr.bf16.mxu1 %v3409_v11 }
  0x3b   : > { %2851 = vmatmul.mubr.msk.bf16.vlgmr.msra.gmra.mrb[0].mxu0 %vm748_vm0, %v2619_v10 }
  0x3c   : > { %2874 = vmatprep.mubr.msk.bf16.mxu0 %vm748_vm0, %v3603_v6  ;;  %2863 = vmatmul.mubr.msk.bf16.vlgmr.msra.gmra.mrb[0].mxu1 %vm748_vm0, %v2619_v10 }
  0x3d   : > { %2884 = vmatprep.mubr.msk.f32.mxu1 %vm3410_vm1, %v3411_v12  ;;  %2867 = vmatpush3.bf16.msra.mxu0 %v3236_v30  ;;  %v1377_v30 = vld [vmem:[%s4176_s8 + $0x10] sm:$0xff] }
  0x3e   : > { %2868 = vmatprep.subr.bf16.mxu0 %v3237_v31 }
  0x41   : > { %2869 = vmatpush3.bf16.msra.mxu0 %v3237_v31 }
  0x42   : > { %2870 = vmatprep.subr.bf16.mxu0 %v3238_v32 }
  0x45   : > { %2871 = vmatpush3.bf16.msra.mxu0 %v3238_v32 }
  0x46   : > { %2872 = vmatprep.subr.bf16.mxu0 %v3239_v33 }
  0x49   : > { %2873 = vmatpush3.bf16.msra.mxu0 %v3239_v33  ;;  %v1492_v33 = vld [vmem:[%s4177_s9 + $0x10] sm:$0xff] }
  0x4a   : > { %3081 = vmatprep.subr.bf16.mxu0 %v3409_v11 }
  0x4c   : > { %2875 = vmatmul.mubr.msk.bf16.vlgmr.msra.gmra.mrb[4].mxu0 %vm748_vm0, %v2619_v10  ;;  %v1375_v10 = vld [vmem:[%s4176_s8] sm:$0xff] }
  0x4d   : > { %2899 = vmatprep.mubr.msk.f32.mxu0 %vm3410_vm1, %v3411_v12 }
 0x10e   : > { %v2852_v13 = vpop.f32.mrb[0].mxu0 }
 0x10f   : > { %v789_v15 = vpop.f32.mrb[1].mxu0  ;;  %v2864_v20 = vpop.f32.mrb[0].mxu1  ;;  %v798_v26 = vadd.f32 %v2852_v13, %v2617_v14  ;;  %v3084_v13 = vpack.c.bf16 %v1237_v9, %v1236_v7 }
 0x110   : > { %v2853_v16 = vpop.f32.mrb[2].mxu0  ;;  %v790_v18 = vadd.f32 %v2617_v14, %v789_v15  ;;  %v876_v21 = vpop.f32.mrb[1].mxu1  ;;  %v885_v29 = vadd.f32 %v2864_v20, %v2626_v25 }
 0x111   : > { %v792_v17 = vpop.f32.mrb[3].mxu0  ;;  %v2865_v23 = vpop.f32.mrb[2].mxu1  ;;  %v877_v27 = vadd.f32 %v2626_v25, %v876_v21  ;;  %v1201_v16 = vunpack.c.l.bf16 %v3603_v6 }
 0x112   : > { %v793_v19 = vadd.f32 %v2617_v14, %v792_v17  ;;  %v879_v24 = vpop.f32.mrb[3].mxu1  ;;  %v1376_v14 = vld [vmem:[%s4176_s8 + $0x8] sm:$0xff]  ;;  %v1202_v17 = vunpack.c.h.bf16 %v3603_v6  ;;  %v1238_v6 = vld [vmem:[%s4175_s7 + $0x10] sm:$0xff] }
 0x113   : > { %v880_v28 = vadd.f32 %v2626_v25, %v879_v24  ;;  %v3088_v15 = vpack.c.bf16 %v1376_v14, %v1375_v10  ;;  %v1491_v24 = vld [vmem:[%s4177_s9 + $0x8] sm:$0xff] }
 0x114   : > { %v3078_v22 = vpack.c.bf16 %v793_v19, %v790_v18  ;;  %v1203_v18 = vunpack.c.l.bf16 %v3612_v8  ;;  %v1490_v8 = vld [vmem:[%s4177_s9] sm:$0xff] }
 0x116   : > { %3080 = vmatpush3.bf16.xpose.msk.msra.mxu1 %vm3079_vm2, %v3078_v22 }
 0x117   : > { %2882 = vmatprep.subr.mxu1 %v3411_v12 }
 0x11e   : > { %2883 = vmatpush3.xpose.msk.msra.mxu1 %vm748_vm0, %v798_v26 }
 0x11f   : > { %3164 = vmatprep.subr.bf16.mxu1 %v3409_v11  ;;  %v2876_v61 = vpop.f32.mrb[4].mxu0 }
 0x120   : > { %v963_v62 = vpop.f32.mrb[5].mxu0  ;;  %v972_v5 = vadd.f32 %v2876_v61, %v2633_v0 }
 0x121   : > { %2885 = vmatmul.mubr.msk.f32.vlgmr.msra.gmra.mrb[4].mxu1 %vm748_vm0, %v877_v27  ;;  %v2877_v63 = vpop.f32.mrb[6].mxu0  ;;  %v964_v2 = vadd.f32 %v2633_v0, %v963_v62 }
 0x122   : > { %2887 = vmatprep.mubr.msk.f32.mxu1 %vm3410_vm1, %v3411_v12  ;;  %v966_v1 = vpop.f32.mrb[7].mxu0 }
 0x123   : > { %v967_v3 = vadd.f32 %v2633_v0, %v966_v1 }
 0x125   : > { %2888 = vmatmul.mubr.msk.f32.gmra.mrb[6].mxu1 %vm748_vm0, %v880_v28  ;;  %v3082_v4 = vpack.c.bf16 %v967_v3, %v964_v2 }
 0x126   : > { %2890 = vmatprep.mubr.msk.f32.mxu1 %vm3410_vm1, %v3411_v12 }
 0x127   : > { %3166 = vmatpush3.bf16.msra.mxu1 %v3082_v4  ;;  %3083 = vmatpush3.bf16.msra.mxu0 %v3082_v4 }
 0x128   : > { %3165 = vmatprep.subr.mxu1 %v3411_v12  ;;  %2897 = vmatprep.subr.mxu0 %v3411_v12 }
 0x129   : > { %2891 = vmatmul.mubr.msk.f32.gmra.mrb[8].mxu1 %vm748_vm0, %v885_v29  ;;  %v3092_v29 = vpack.c.bf16 %v1491_v24, %v1490_v8 }
 0x12a   : > { %2905 = vmatprep.mubr.msk.f32.mxu1 %vm3410_vm1, %v3411_v12 }
 0x12b   : > { %3167 = vmatpush3.msra.mxu1 %v972_v5  ;;  %2898 = vmatpush3.msra.mxu0 %v972_v5 }
 0x12c   : > { %3085 = vmatprep.subr.bf16.mxu1 %v3084_v13  ;;  %3089 = vmatprep.subr.bf16.mxu0 %v3088_v15 }
 0x1f4   : > { %v1061_v34 = vpop.f32.mrb[4].mxu1 }
 0x1f5   : > { %v2886_v35 = vpop.f32.mrb[5].mxu1  ;;  %v1075_v43 = vmul.f32 0.125, %v1061_v34 }
 0x1f7   : > { %v1079_v45 = vsel %vm1078_vm3, %v1075_v43, -inf }
 0x1f8   : > { %v1066_v36 = vpop.f32.mrb[6].mxu1 }
 0x1f9   : > { %v1076_v37 = vmul.f32 0.125, %v1066_v36  ;;  %v2889_v38 = vpop.f32.mrb[7].mxu1 }
 0x1fb   : > { %v1082_v39 = vsel %vm1078_vm3, %v1076_v37, -inf }
 0x1fc   : > { %1083 = vmax.xlane.f32.xlu1 %v1082_v39  ;;  %v1071_v40 = vpop.f32.mrb[8].mxu1 }
 0x1fd   : > { %v1077_v41 = vmul.f32 0.125, %v1071_v40  ;;  %v2892_v42 = vpop.f32.mrb[9].mxu1 }
 0x1ff   : > { %v1085_v44 = vsel %vm1078_vm3, %v1077_v41, -inf }
 0x200   : > { %1086 = vmax.xlane.f32.xlu0 %v1085_v44 }
 0x204   : > { %1080 = vmax.xlane.f32.xlu0 %v1079_v45 }
 0x289   : > { %v1084_v46 = vpop.xlane.xlu1 %1083 }
 0x28a   : > { %v1089_v47 = vsub.f32 %v1076_v37, %v1084_v46  ;;  %v2649_v46 = vld [vmem:[%s4178_s10] ss:$0 sm:$0xff] }
 0x28c   : > { %v1093_v50 = vmul.f32 1.442695, %v1089_v47  ;;  %v3771_v47 = vld [vmem:[%s4179_s11] ss:$0 sm:$0xff] }
 0x28d   : > { %v1087_v48 = vpop.xlane.xlu0 %1086 }
 0x28e   : > { %v1090_v49 = vsub.f32 %v1077_v41, %v1087_v48 }
 0x290   : > { %v1095_v51 = vmul.f32 1.442695, %v1090_v49 }
 0x291   : > { %v1081_v52 = vpop.xlane.xlu0 %1080 }
 0x292   : > { %3241 = vpow2.f32 %v1095_v51  ;;  %v1088_v53 = vsub.f32 %v1075_v43, %v1081_v52 }
 0x293   : > { %3243 = vpow2.f32 %v1093_v50 }
 0x294   : > { %v1091_v54 = vmul.f32 1.442695, %v1088_v53 }
 0x296   : > { %3245 = vpow2.f32 %v1091_v54 }
 0x29c   : > { %v3242_v55 = vpop.eup %3241 }
 0x29d   : > { %v1103_v56 = vsel %vm1078_vm3, %v3242_v55, 0.0  ;;  %v3244_v57 = vpop.eup %3243 }
 0x29e   : > { %1104 = vadd.xlane.f32.xlu1 %v1103_v56  ;;  %v1100_v59 = vsel %vm1078_vm3, %v3244_v57, 0.0 }
 0x2a0   : > { %v3246_v58 = vpop.eup %3245 }
 0x2a1   : > { %v1097_v60 = vsel %vm1078_vm3, %v3246_v58, 0.0 }
 0x2a2   : > { %1101 = vadd.xlane.f32.xlu1 %v1100_v59  ;;  %1098 = vadd.xlane.f32.xlu0 %v1097_v60 }
 0x2cf   : > { %1204 = vxpose.xlu0.b32.start [1/3] (short) (narrow) %v1201_v16, 64 }
 0x2d3   : > { %1205 = vxpose.xlu0.b32.cont [2/3] (short) (narrow) %v1202_v17, 64  ;;  %v2667_v17 = vld [vmem:[%s4117_s12] ss:$0 sm:$0xff] }
 0x2d7   : > { %1206 = vxpose.xlu0.b32.end [3/3] (short) (narrow) %v1203_v18, 64 }
 0x32b   : > { %v1105_v19 = vpop.xlane.xlu1 %1104 }
 0x32c   : > { %3247 = vrcp.f32 %v1105_v19 }
 0x32f   : > { %v1102_v20 = vpop.xlane.xlu1 %1101  ;;  %v1099_v21 = vpop.xlane.xlu0 %1098 }
 0x330   : > { %3249 = vrcp.f32 %v1102_v20 }
 0x331   : > { %3251 = vrcp.f32 %v1099_v21 }
 0x336   : > { %v3248_v22 = vpop.eup %3247 }
 0x337   : > { %v1111_v23 = vmul.f32 %v3248_v22, %v3242_v55 }
 0x339   : > { %2906 = vmatmul.mubr.msk.f32.vlgmr.msra.gmra.mrb[10].mxu1 %vm1078_vm3, %v1111_v23  ;;  %2353 = vst.msk [vmem:[%s3704_s26 + $0x10] sm:$0xff] %vm1078_vm3, %v1111_v23 }
 0x33a   : > { %v3250_v25 = vpop.eup %3249  ;;  %3087 = vmatpush3.bf16.msra.mxu1 %v3084_v13 }
 0x33b   : > { %v3252_v26 = vpop.eup %3251  ;;  %v1110_v27 = vmul.f32 %v3250_v25, %v3244_v57  ;;  %2912 = vmatprep.subr.mxu1 %v1238_v6 }
 0x33c   : > { %v1109_v28 = vmul.f32 %v3252_v26, %v3246_v58 }
 0x33d   : > { %2352 = vst.msk [vmem:[%s3704_s26 + $0x8] sm:$0xff] %vm1078_vm3, %v1110_v27 }
 0x33e   : > { %2900 = vmatmul.mubr.msk.f32.vlgmr.msra.gmra.mrb[8].mxu0 %vm1078_vm3, %v1109_v28  ;;  %2913 = vmatpush3.msra.mxu1 %v1238_v6  ;;  %2351 = vst.msk [vmem:[%s3704_s26] sm:$0xff] %vm1078_vm3, %v1109_v28  ;;  %s3285_s26 = scalar_lea.vmem %s3975_s2, 384 }
 0x33f   : > { %2902 = vmatprep.mubr.msk.f32.mxu0 %vm3410_vm1, %v3411_v12  ;;  %3091 = vmatpush3.bf16.msra.mxu0 %v3088_v15  ;;  %p3286_p11 = scmp.ne.s32.totalorder %s3975_s2, %s3285_s26 }
 0x340   : > { %2930 = vmatprep.subr.mxu0 %v1377_v30  ;;  %3093 = vmatprep.subr.bf16.mxu1 %v3092_v29 }
 0x341   : > { %p3287_p12 = pnand %p3286_p11, %p3567_p5 }
 0x342   : > { %2903 = vmatmul.mubr.msk.f32.gmra.mrb[10].mxu0 %vm1078_vm3, %v1110_v27 }
 0x343   : > { %2931 = vmatpush3.msra.mxu0 %v1377_v30  ;;  %p3288_p13 = pneg %p3287_p12 }
 0x34f   : > { %v1220_v31 = vpop.trf.xlu0 }
 0x350   : > { %2914 = vmatprep.mubr.msk.f32.mxu1 %vm1078_vm3, %v1220_v31  ;;  %2932 = vmatprep.mubr.msk.f32.mxu0 %vm1078_vm3, %v1220_v31 }
 0x353   : > { %v1221_v32 = vpop.trf.xlu0 }
 0x354   : > { %2915 = vmatmul.mubr.msk.f32.vlgmr.msra.gmra.mrb[12].mxu1 %vm1078_vm3, %v1221_v32  ;;  %2933 = vmatmul.mubr.msk.f32.vlgmr.msra.gmra.mrb[12].mxu0 %vm1078_vm3, %v1221_v32 }
 0x355   : > { %3095 = vmatpush3.bf16.msra.mxu1 %v3092_v29 }
 0x356   : > { %2948 = vmatprep.subr.mxu1 %v1492_v33 }
 0x357   : > { %v1222_v34 = vpop.trf.xlu0 }
 0x358   : > { %2917 = vmatprep.mubr.msk.f32.mxu1 %vm1078_vm3, %v1222_v34  ;;  %2935 = vmatprep.mubr.msk.f32.mxu0 %vm1078_vm3, %v1222_v34 }
 0x359   : > { %2949 = vmatpush3.msra.mxu1 %v1492_v33 }
 0x35b   : > { %v1223_v35 = vpop.trf.xlu0 }
 0x35c   : > { %2918 = vmatmul.mubr.msk.f32.gmra.mrb[14].mxu1 %vm1078_vm3, %v1223_v35  ;;  %2936 = vmatmul.mubr.msk.f32.gmra.mrb[14].mxu0 %vm1078_vm3, %v1223_v35 }
 0x35f   : > { %v1224_v36 = vpop.trf.xlu0 }
 0x360   : > { %2920 = vmatprep.mubr.msk.f32.mxu1 %vm1078_vm3, %v1224_v36  ;;  %2938 = vmatprep.mubr.msk.f32.mxu0 %vm1078_vm3, %v1224_v36 }
 0x363   : > { %v1225_v37 = vpop.trf.xlu0 }
 0x364   : > { %2921 = vmatmul.mubr.msk.f32.gmra.mrb[16].mxu1 %vm1078_vm3, %v1225_v37  ;;  %2939 = vmatmul.mubr.msk.f32.gmra.mrb[16].mxu0 %vm1078_vm3, %v1225_v37 }
 0x367   : > { %v1226_v38 = vpop.trf.xlu0 }
 0x368   : > { %2923 = vmatprep.mubr.msk.f32.mxu1 %vm1078_vm3, %v1226_v38  ;;  %2941 = vmatprep.mubr.msk.f32.mxu0 %vm1078_vm3, %v1226_v38 }
 0x36b   : > { %v1227_v39 = vpop.trf.xlu0 }
 0x36c   : > { %2924 = vmatmul.mubr.msk.f32.gmra.mrb[18].mxu1 %vm1078_vm3, %v1227_v39  ;;  %2942 = vmatmul.mubr.msk.f32.gmra.mrb[18].mxu0 %vm1078_vm3, %v1227_v39 }
 0x36d   : > { %2950 = vmatprep.mubr.msk.f32.mxu1 %vm1078_vm3, %v1220_v31 }
 0x370   : > { %2951 = vmatmul.mubr.msk.f32.vlgmr.msra.gmra.mrb[20].mxu1 %vm1078_vm3, %v1221_v32 }
 0x371   : > { %2953 = vmatprep.mubr.msk.f32.mxu1 %vm1078_vm3, %v1222_v34 }
 0x374   : > { %2954 = vmatmul.mubr.msk.f32.gmra.mrb[22].mxu1 %vm1078_vm3, %v1223_v35 }
 0x375   : > { %2956 = vmatprep.mubr.msk.f32.mxu1 %vm1078_vm3, %v1224_v36 }
 0x378   : > { %2957 = vmatmul.mubr.msk.f32.gmra.mrb[24].mxu1 %vm1078_vm3, %v1225_v37 }
 0x379   : > { %2959 = vmatprep.mubr.msk.f32.mxu1 %vm1078_vm3, %v1226_v38 }
 0x37c   : > { %2960 = vmatmul.mubr.msk.f32.gmra.mrb[26].mxu1 %vm1078_vm3, %v1227_v39 }
 0x40c   : > { %v3746_v40 = vpop.f32.mrb[10].mxu1 }
 0x40d   : > { %2342 = vst.msk [vmem:[%s3750_s27 + $0x10] sm:$0xff] %vm748_vm0, %v3746_v40  ;;  %v2907_v41 = vpop.f32.mrb[11].mxu1 }
 0x411   : > { %v3755_v42 = vpop.f32.mrb[8].mxu0 }
 0x412   : > { %2340 = vst.msk [vmem:[%s3750_s27] sm:$0xff] %vm748_vm0, %v3755_v42  ;;  %v2901_v43 = vpop.f32.mrb[9].mxu0 }
 0x415   : > { %v3760_v44 = vpop.f32.mrb[10].mxu0 }
 0x416   : > { %2341 = vst.msk [vmem:[%s3750_s27 + $0x8] sm:$0xff] %vm748_vm0, %v3760_v44  ;;  %v2904_v45 = vpop.f32.mrb[11].mxu0  ;;  %s3988_s27 = scalar_lea.sflag [#allocation5], %s2372_s23 }
 0x427   : > { %v2916_v48 = vpop.f32.mrb[12].mxu1  ;;  %v2934_v49 = vpop.f32.mrb[12].mxu0 }
 0x428   : > { %v1342_v50 = vadd.f32 %v2916_v48, %v2649_v46  ;;  %v1336_v51 = vpop.f32.mrb[13].mxu1  ;;  %v1451_v52 = vpop.f32.mrb[13].mxu0  ;;  %v1457_v26 = vadd.f32 %v2934_v49, %v3771_v47 }
 0x429   : > { %v1337_v53 = vadd.f32 %v2649_v46, %v1336_v51  ;;  %v1452_v54 = vadd.f32 %v3771_v47, %v1451_v52 }
 0x42b   : > { %v3096_v56 = vpack.c.bf16 %v1342_v50, %v1337_v53  ;;  %2978 = vmatprep.mubr.msk.f32.mxu0 %vm1078_vm3, %v1452_v54 }
 0x42d   : > { %3098 = vmatprep.subr.msk.bf16.mxu0 %vm3776_vm4, %v3096_v56 }
 0x42e   : > { %3101 = vmatpush3.bf16.xpose.msk.msra.mxu0 %vm3776_vm4, %v3096_v56 }
 0x42f   : > { %v2919_v57 = vpop.f32.mrb[14].mxu1  ;;  %v2937_v58 = vpop.f32.mrb[14].mxu0 }
 0x430   : > { %v1352_v59 = vadd.f32 %v2919_v57, %v2649_v46  ;;  %v1346_v60 = vpop.f32.mrb[15].mxu1  ;;  %v1461_v61 = vpop.f32.mrb[15].mxu0  ;;  %v1467_v33 = vadd.f32 %v2937_v58, %v3771_v47 }
 0x431   : > { %v1347_v62 = vadd.f32 %v2649_v46, %v1346_v60  ;;  %v1462_v29 = vadd.f32 %v3771_v47, %v1461_v61 }
 0x433   : > { %v3102_v63 = vpack.c.bf16 %v1352_v59, %v1347_v62 }
 0x435   : > { %3104 = vmatprep.subr.msk.bf16.mxu0 %vm3776_vm4, %v3102_v63 }
 0x436   : > { %3107 = vmatpush3.bf16.xpose.msk.msra.mxu0 %vm3776_vm4, %v3102_v63 }
 0x437   : > { %v2922_v0 = vpop.f32.mrb[16].mxu1  ;;  %v2940_v1 = vpop.f32.mrb[16].mxu0 }
 0x438   : > { %v1362_v2 = vadd.f32 %v2922_v0, %v2649_v46  ;;  %v1356_v3 = vpop.f32.mrb[17].mxu1  ;;  %v1471_v4 = vpop.f32.mrb[17].mxu0  ;;  %v1477_v41 = vadd.f32 %v2940_v1, %v3771_v47 }
 0x439   : > { %v1357_v5 = vadd.f32 %v2649_v46, %v1356_v3  ;;  %v1472_v36 = vadd.f32 %v3771_v47, %v1471_v4 }
 0x43b   : > { %v3108_v7 = vpack.c.bf16 %v1362_v2, %v1357_v5 }
 0x43d   : > { %3110 = vmatprep.subr.msk.bf16.mxu0 %vm3776_vm4, %v3108_v7 }
 0x43e   : > { %3113 = vmatpush3.bf16.xpose.msk.msra.mxu0 %vm3776_vm4, %v3108_v7 }
 0x43f   : > { %v2925_v9 = vpop.f32.mrb[18].mxu1  ;;  %v2943_v10 = vpop.f32.mrb[18].mxu0 }
 0x440   : > { %v1372_v13 = vadd.f32 %v2925_v9, %v2649_v46  ;;  %v1366_v14 = vpop.f32.mrb[19].mxu1  ;;  %v1481_v15 = vpop.f32.mrb[19].mxu0 }
 0x441   : > { %v1367_v16 = vadd.f32 %v2649_v46, %v1366_v14  ;;  %v1482_v45 = vadd.f32 %v3771_v47, %v1481_v15  ;;  %v1487_v46 = vadd.f32 %v2943_v10, %v3771_v47 }
 0x443   : > { %v3114_v18 = vpack.c.bf16 %v1372_v13, %v1367_v16  ;;  %v2952_v19 = vpop.f32.mrb[20].mxu1 }
 0x444   : > { %v1572_v20 = vadd.f32 %v2952_v19, %v2667_v17  ;;  %v1566_v21 = vpop.f32.mrb[21].mxu1 }
 0x445   : > { %v1567_v22 = vadd.f32 %v2667_v17, %v1566_v21  ;;  %3116 = vmatprep.subr.msk.bf16.mxu0 %vm3776_vm4, %v3114_v18 }
 0x446   : > { %3119 = vmatpush3.bf16.xpose.msk.msra.mxu0 %vm3776_vm4, %v3114_v18 }
 0x447   : > { %v3120_v23 = vpack.c.bf16 %v1572_v20, %v1567_v22  ;;  %v2955_v6 = vpop.f32.mrb[22].mxu1  ;;  %3148 = vmatprep.subr.bf16.mxu0 %v3409_v11 }
 0x448   : > { %v1582_v8 = vadd.f32 %v2955_v6, %v2667_v17  ;;  %v1576_v24 = vpop.f32.mrb[23].mxu1 }
 0x449   : > { %v1577_v25 = vadd.f32 %v2667_v17, %v1576_v24  ;;  %3121 = vmatprep.subr.bf16.mxu1 %v3120_v23 }
 0x44a   : > { %3123 = vmatpush3.bf16.msra.mxu1 %v3120_v23 }
 0x44b   : > { %v3124_v27 = vpack.c.bf16 %v1582_v8, %v1577_v25  ;;  %v2958_v28 = vpop.f32.mrb[24].mxu1 }
 0x44c   : > { %v1592_v30 = vadd.f32 %v2958_v28, %v2667_v17  ;;  %v1586_v31 = vpop.f32.mrb[25].mxu1 }
 0x44d   : > { %v1587_v32 = vadd.f32 %v2667_v17, %v1586_v31  ;;  %2979 = vmatmul.mubr.msk.f32.vlgmr.msra.gmra.mrb[20].mxu0 %vm1078_vm3, %v1457_v26  ;;  %3125 = vmatprep.subr.bf16.mxu1 %v3124_v27 }
 0x44e   : > { %2981 = vmatprep.mubr.msk.f32.mxu0 %vm1078_vm3, %v1462_v29  ;;  %3127 = vmatpush3.bf16.msra.mxu1 %v3124_v27 }
 0x44f   : > { %v3128_v34 = vpack.c.bf16 %v1592_v30, %v1587_v32  ;;  %v2961_v35 = vpop.f32.mrb[26].mxu1 }
 0x450   : > { %v1602_v37 = vadd.f32 %v2961_v35, %v2667_v17  ;;  %v1596_v38 = vpop.f32.mrb[27].mxu1 }
 0x451   : > { %v1597_v39 = vadd.f32 %v2667_v17, %v1596_v38  ;;  %2982 = vmatmul.mubr.msk.f32.gmra.mrb[22].mxu0 %vm1078_vm3, %v1467_v33  ;;  %3129 = vmatprep.subr.bf16.mxu1 %v3128_v34 }
 0x452   : > { %2984 = vmatprep.mubr.msk.f32.mxu0 %vm1078_vm3, %v1472_v36  ;;  %3131 = vmatpush3.bf16.msra.mxu1 %v3128_v34 }
 0x453   : > { %v3132_v43 = vpack.c.bf16 %v1602_v37, %v1597_v39 }
 0x455   : > { %2985 = vmatmul.mubr.msk.f32.gmra.mrb[24].mxu0 %vm1078_vm3, %v1477_v41  ;;  %3133 = vmatprep.subr.bf16.mxu1 %v3132_v43 }
 0x456   : > { %2987 = vmatprep.mubr.msk.f32.mxu0 %vm1078_vm3, %v1482_v45  ;;  %3135 = vmatpush3.bf16.msra.mxu1 %v3132_v43 }
 0x457   : > { %3136 = vmatprep.subr.bf16.mxu1 %v3409_v11 }
 0x459   : > { %2988 = vmatmul.mubr.msk.f32.gmra.mrb[26].mxu0 %vm1078_vm3, %v1487_v46 }
 0x45a   : > { %3059 = vmatprep.mubr.msk.f32.mxu0 %vm3410_vm1, %v3411_v12 }
 0x520   : > { %v2980_v48 = vpop.f32.mrb[20].mxu0 }
 0x521   : > { %v1759_v49 = vmul.f32 0.20412415, %v2980_v48  ;;  %v1719_v50 = vpop.f32.mrb[21].mxu0 }
 0x522   : > { %v1758_v51 = vmul.f32 0.20412415, %v1719_v50 }
 0x523   : > { %v1769_v52 = vsel %vm748_vm0, %v1759_v49, -inf }
 0x524   : > { %1770 = vmax.xlane.f32.xlu1 %v1769_v52  ;;  %v2983_v53 = vpop.f32.mrb[22].mxu0  ;;  %v1766_v56 = vsel %vm748_vm0, %v1758_v51, -inf }
 0x525   : > { %v1729_v54 = vpop.f32.mrb[23].mxu0  ;;  %v1761_v55 = vmul.f32 0.20412415, %v2983_v53 }
 0x526   : > { %v1760_v58 = vmul.f32 0.20412415, %v1729_v54 }
 0x527   : > { %v1775_v59 = vsel %vm748_vm0, %v1761_v55, -inf }
 0x528   : > { %1767 = vmax.xlane.f32.xlu1 %v1766_v56  ;;  %v2986_v47 = vpop.f32.mrb[24].mxu0  ;;  %v1772_v63 = vsel %vm748_vm0, %v1760_v58, -inf }
 0x529   : > { %v1739_v57 = vpop.f32.mrb[25].mxu0  ;;  %v1763_v62 = vmul.f32 0.20412415, %v2986_v47 }
 0x52a   : > { %v1762_v0 = vmul.f32 0.20412415, %v1739_v57 }
 0x52b   : > { %v1781_v1 = vsel %vm748_vm0, %v1763_v62, -inf }
 0x52c   : > { %1776 = vmax.xlane.f32.xlu1 %v1775_v59  ;;  %v2989_v60 = vpop.f32.mrb[26].mxu0  ;;  %v1778_v3 = vsel %vm748_vm0, %v1762_v0, -inf  ;;  %v1984_v59 = vld [vmem:[%s4118_s13 + $0x8] sm:$0xff] }
 0x52d   : > { %v1749_v61 = vpop.f32.mrb[27].mxu0  ;;  %v1765_v4 = vmul.f32 0.20412415, %v2989_v60 }
 0x52e   : > { %v1764_v2 = vmul.f32 0.20412415, %v1749_v61 }
 0x52f   : > { %v1787_v7 = vsel %vm748_vm0, %v1765_v4, -inf }
 0x530   : > { %1773 = vmax.xlane.f32.xlu1 %v1772_v63  ;;  %v1784_v5 = vsel %vm748_vm0, %v1764_v2, -inf  ;;  %v1985_v63 = vld [vmem:[%s4118_s13 + $0x10] sm:$0xff] }
 0x534   : > { %1782 = vmax.xlane.f32.xlu1 %v1781_v1 }
 0x538   : > { %1779 = vmax.xlane.f32.xlu1 %v1778_v3 }
 0x53c   : > { %1785 = vmax.xlane.f32.xlu1 %v1784_v5  ;;  %v1987_v5 = vld [vmem:[%s4118_s13 + $0x20] sm:$0xff] }
 0x540   : > { %1788 = vmax.xlane.f32.xlu1 %v1787_v7  ;;  %v1988_v7 = vld [vmem:[%s4118_s13 + $0x28] sm:$0xff] }
 0x5b1   : > { %v1771_v9 = vpop.xlane.xlu1 %1770 }
 0x5b2   : > { %v1791_v10 = vsub.f32 %v1759_v49, %v1771_v9 }
 0x5b4   : > { %v1800_v13 = vmul.f32 1.442695, %v1791_v10 }
 0x5b5   : > { %v1768_v14 = vpop.xlane.xlu1 %1767 }
 0x5b6   : > { %3253 = vpow2.f32 %v1800_v13  ;;  %v1790_v15 = vsub.f32 %v1758_v51, %v1768_v14 }
 0x5b8   : > { %v1798_v16 = vmul.f32 1.442695, %v1790_v15  ;;  %v3143_v15 = vpack.c.bf16 %v1988_v7, %v1987_v5 }
 0x5b9   : > { %v1777_v17 = vpop.xlane.xlu1 %1776 }
 0x5ba   : > { %3255 = vpow2.f32 %v1798_v16  ;;  %v1793_v18 = vsub.f32 %v1761_v55, %v1777_v17  ;;  %v1989_v16 = vld [vmem:[%s4118_s13 + $0x30] sm:$0xff]  ;;  %v1990_v17 = vld [vmem:[%s4118_s13 + $0x38] sm:$0xff] }
 0x5bc   : > { %v1804_v19 = vmul.f32 1.442695, %v1793_v18 }
 0x5bd   : > { %v1774_v20 = vpop.xlane.xlu1 %1773 }
 0x5be   : > { %3257 = vpow2.f32 %v1804_v19  ;;  %v1792_v21 = vsub.f32 %v1760_v58, %v1774_v20  ;;  %v1983_v58 = vld [vmem:[%s4118_s13] sm:$0xff]  ;;  %v3146_v19 = vpack.c.bf16 %v1990_v17, %v1989_v16 }
 0x5c0   : > { %v3254_v22 = vpop.eup %3253  ;;  %v1802_v23 = vmul.f32 1.442695, %v1792_v21 }
 0x5c1   : > { %v1783_v6 = vpop.xlane.xlu1 %1782  ;;  %v1817_v8 = vsel %vm748_vm0, %v3254_v22, 0.0 }
 0x5c2   : > { %3259 = vpow2.f32 %v1802_v23  ;;  %1818 = vadd.xlane.f32.xlu1 %v1817_v8  ;;  %v1795_v25 = vsub.f32 %v1763_v62, %v1783_v6  ;;  %v3137_v62 = vpack.c.bf16 %v1984_v59, %v1983_v58 }
 0x5c4   : > { %v3256_v24 = vpop.eup %3255  ;;  %v1808_v30 = vmul.f32 1.442695, %v1795_v25 }
 0x5c5   : > { %v1780_v26 = vpop.xlane.xlu1 %1779  ;;  %v1814_v27 = vsel %vm748_vm0, %v3256_v24, 0.0 }
 0x5c6   : > { %v1794_v28 = vsub.f32 %v1762_v0, %v1780_v26  ;;  %1815 = vadd.xlane.f32.xlu1 %v1814_v27  ;;  %v1986_v0 = vld [vmem:[%s4118_s13 + $0x18] sm:$0xff]  ;;  %v2087_v26 = vld [vmem:[%s4120_s15] sm:$0xff]  ;;  %v2089_v27 = vld [vmem:[%s4120_s15 + $0x10] sm:$0xff] }
 0x5c8   : > { %v3258_v29 = vpop.eup %3257  ;;  %v1806_v31 = vmul.f32 1.442695, %v1794_v28 }
 0x5c9   : > { %v1786_v32 = vpop.xlane.xlu1 %1785  ;;  %v1823_v33 = vsel %vm748_vm0, %v3258_v29, 0.0 }
 0x5ca   : > { %3261 = vpow2.f32 %v1806_v31  ;;  %v1796_v34 = vsub.f32 %v1764_v2, %v1786_v32  ;;  %1824 = vadd.xlane.f32.xlu1 %v1823_v33  ;;  %v2093_v32 = vld [vmem:[%s4120_s15 + $0x30] sm:$0xff]  ;;  %v2094_v33 = vld [vmem:[%s4120_s15 + $0x38] sm:$0xff] }
 0x5cb   : > { %3263 = vpow2.f32 %v1808_v30  ;;  %v2092_v30 = vld [vmem:[%s4120_s15 + $0x28] sm:$0xff] }
 0x5cc   : > { %v3260_v35 = vpop.eup %3259  ;;  %v1810_v36 = vmul.f32 1.442695, %v1796_v34  ;;  %v3158_v34 = vpack.c.bf16 %v2094_v33, %v2093_v32 }
 0x5cd   : > { %v1789_v37 = vpop.xlane.xlu1 %1788  ;;  %v1820_v38 = vsel %vm748_vm0, %v3260_v35, 0.0 }
 0x5ce   : > { %3265 = vpow2.f32 %v1810_v36  ;;  %v1797_v39 = vsub.f32 %v1765_v4, %v1789_v37  ;;  %1821 = vadd.xlane.f32.xlu1 %v1820_v38  ;;  %v3140_v4 = vpack.c.bf16 %v1986_v0, %v1985_v63 }
 0x5d0   : > { %v1812_v41 = vmul.f32 1.442695, %v1797_v39 }
 0x5d2   : > { %3267 = vpow2.f32 %v1812_v41 }
 0x5d4   : > { %v3830_v43 = vpop.eup %3261 }
 0x5d5   : > { %v1826_v45 = vsel %vm748_vm0, %v3830_v43, 0.0  ;;  %v3834_v46 = vpop.eup %3263 }
 0x5d6   : > { %1827 = vadd.xlane.f32.xlu1 %v1826_v45  ;;  %v1829_v49 = vsel %vm748_vm0, %v3834_v46, 0.0  ;;  %v2700_v45 = vld [vmem:[%s4119_s14] ss:$0 sm:$0xff] }
 0x5d8   : > { %v3836_v48 = vpop.eup %3265 }
 0x5d9   : > { %v1832_v50 = vsel %vm748_vm0, %v3836_v48, 0.0 }
 0x5da   : > { %1830 = vadd.xlane.f32.xlu1 %v1829_v49  ;;  %1833 = vadd.xlane.f32.xlu0 %v1832_v50 }
 0x5dc   : > { %v3842_v51 = vpop.eup %3267 }
 0x5dd   : > { %v1835_v52 = vsel %vm748_vm0, %v3842_v51, 0.0 }
 0x5de   : > { %1836 = vadd.xlane.f32.xlu1 %v1835_v52 }
 0x64f   : > { %v1819_v53 = vpop.xlane.xlu1 %1818 }
 0x650   : > { %3269 = vrcp.f32 %v1819_v53 }
 0x653   : > { %v1816_v54 = vpop.xlane.xlu1 %1815 }
 0x654   : > { %3271 = vrcp.f32 %v1816_v54 }
 0x657   : > { %v1825_v55 = vpop.xlane.xlu1 %1824 }
 0x658   : > { %3273 = vrcp.f32 %v1825_v55 }
 0x65a   : > { %v3270_v56 = vpop.eup %3269 }
 0x65b   : > { %v1847_v47 = vmul.f32 %v3270_v56, %v3254_v22  ;;  %v1822_v57 = vpop.xlane.xlu1 %1821 }
 0x65c   : > { %3275 = vrcp.f32 %v1822_v57 }
 0x65d   : > { %2355 = vst.msk [vmem:[%s3853_s22 + $0x8] sm:$0xff] %vm748_vm0, %v1847_v47 }
 0x65e   : > { %v3272_v60 = vpop.eup %3271 }
 0x65f   : > { %v1846_v61 = vmul.f32 %v3272_v60, %v3256_v24 }
 0x661   : > { %3006 = vmatprep.mubr.msk.f32.mxu1 %vm748_vm0, %v1846_v61  ;;  %2354 = vst.msk [vmem:[%s3853_s22] sm:$0xff] %vm748_vm0, %v1846_v61  ;;  %v2704_v61 = vld [vmem:[%s4121_s16] ss:$0 sm:$0xff] }
 0x662   : > { %v3274_v1 = vpop.eup %3273  ;;  %3007 = vmatmul.mubr.msk.f32.vlgmr.msra.gmra.mrb[28].mxu1 %vm748_vm0, %v1847_v47 }
 0x663   : > { %v1828_v2 = vpop.xlane.xlu1 %1827  ;;  %v1849_v3 = vmul.f32 %v3274_v1, %v3258_v29  ;;  %3138 = vmatpush3.bf16.msra.mxu1 %v3137_v62  ;;  %v2091_v29 = vld [vmem:[%s4120_s15 + $0x20] sm:$0xff] }
 0x664   : > { %3277 = vrcp.f32 %v1828_v2  ;;  %3139 = vmatprep.subr.bf16.mxu1 %v3409_v11  ;;  %v3155_v31 = vpack.c.bf16 %v2092_v30, %v2091_v29 }
 0x665   : > { %2357 = vst.msk [vmem:[%s3853_s22 + $0x18] sm:$0xff] %vm748_vm0, %v1849_v3 }
 0x666   : > { %v3276_v9 = vpop.eup %3275 }
 0x667   : > { %v1834_v10 = vpop.xlane.xlu0 %1833  ;;  %v1831_v13 = vpop.xlane.xlu1 %1830  ;;  %v1848_v14 = vmul.f32 %v3276_v9, %v3260_v35  ;;  %3141 = vmatpush3.bf16.msra.mxu1 %v3140_v4 }
 0x668   : > { %3279 = vrcp.f32 %v1834_v10  ;;  %3142 = vmatprep.subr.bf16.mxu1 %v3409_v11 }
 0x669   : > { %3281 = vrcp.f32 %v1831_v13  ;;  %3009 = vmatprep.mubr.msk.f32.mxu1 %vm748_vm0, %v1848_v14  ;;  %2356 = vst.msk [vmem:[%s3853_s22 + $0x10] sm:$0xff] %vm748_vm0, %v1848_v14 }
 0x66a   : > { %3010 = vmatmul.mubr.msk.f32.gmra.mrb[30].mxu1 %vm748_vm0, %v1849_v3 }
 0x66b   : > { %v1837_v18 = vpop.xlane.xlu1 %1836  ;;  %3144 = vmatpush3.bf16.msra.mxu1 %v3143_v15 }
 0x66c   : > { %3283 = vrcp.f32 %v1837_v18  ;;  %3145 = vmatprep.subr.bf16.mxu1 %v3409_v11 }
 0x66e   : > { %v3278_v20 = vpop.eup %3277 }
 0x66f   : > { %v1850_v21 = vmul.f32 %v3278_v20, %v3830_v43  ;;  %3147 = vmatpush3.bf16.msra.mxu1 %v3146_v19 }
 0x671   : > { %3012 = vmatprep.mubr.msk.f32.mxu1 %vm748_vm0, %v1850_v21  ;;  %2358 = vst.msk [vmem:[%s3853_s22 + $0x20] sm:$0xff] %vm748_vm0, %v1850_v21 }
 0x672   : > { %v3280_v22 = vpop.eup %3279 }
 0x673   : > { %v3282_v23 = vpop.eup %3281  ;;  %v1852_v6 = vmul.f32 %v3280_v22, %v3836_v48 }
 0x674   : > { %v1851_v8 = vmul.f32 %v3282_v23, %v3834_v46 }
 0x675   : > { %2360 = vst.msk [vmem:[%s3853_s22 + $0x30] sm:$0xff] %vm748_vm0, %v1852_v6 }
 0x676   : > { %v3284_v24 = vpop.eup %3283  ;;  %3013 = vmatmul.mubr.msk.f32.gmra.mrb[32].mxu1 %vm748_vm0, %v1851_v8  ;;  %2359 = vst.msk [vmem:[%s3853_s22 + $0x28] sm:$0xff] %vm748_vm0, %v1851_v8 }
 0x677   : > { %3015 = vmatprep.mubr.msk.f32.mxu1 %vm748_vm0, %v1852_v6  ;;  %v1853_v25 = vmul.f32 %v3284_v24, %v3842_v51 }
 0x679   : > { %2361 = vst.msk [vmem:[%s3853_s22 + $0x38] sm:$0xff] %vm748_vm0, %v1853_v25  ;;  %s3412_s22 = smov [#allocation4]  }
 0x67a   : > { %3016 = vmatmul.mubr.msk.f32.gmra.mrb[34].mxu1 %vm748_vm0, %v1853_v25  ;;  %s3289_s4 = sshll.u32 %s3412_s22, 4  ;;  %s3290_s4 = int_to_ptr.vmem [resolvable:$false] %s3289_s4 }
 0x67b   : > { %3034 = vmatprep.mubr.msk.f32.mxu1 %vm3410_vm1, %v3411_v12  ;;  %s3291_s6 = scalar_lea.vmem %s3290_s4, 768  ;;  %p3292_p0 = scmp.lt.s32.totalorder %s3975_s2, %s3290_s4 }
 0x67c   : > { %p3293_p1 = scmp.lt.s32.totalorder %s3291_s6, %s3285_s26 }
 0x67e   : > { %3035 = vmatmul.mubr.msk.f32.vlgmr.msra.gmra.mrb[36].mxu1 %vm748_vm0, %v3755_v42  ;;  %v2088_v42 = vld [vmem:[%s4120_s15 + $0x8] sm:$0xff]  ;;  %p3294_p2 = por %p3293_p1, %p3292_p0 }
 0x67f   : > { %3037 = vmatprep.mubr.msk.f32.mxu1 %vm3410_vm1, %v3411_v12  ;;  %v3149_v28 = vpack.c.bf16 %v2088_v42, %v2087_v26 }
 0x680   : > { %p3295_p3 = pnand %p3294_p2, %p3288_p13 }
 0x681   : > { %3150 = vmatpush3.bf16.msra.mxu0 %v3149_v28 }
 0x682   : > { %3038 = vmatmul.mubr.msk.f32.gmra.mrb[38].mxu1 %vm748_vm0, %v3760_v44  ;;  %v2090_v44 = vld [vmem:[%s4120_s15 + $0x18] sm:$0xff]  ;;  %3151 = vmatprep.subr.bf16.mxu0 %v3409_v11 }
 0x683   : > { %3040 = vmatprep.mubr.msk.f32.mxu1 %vm3410_vm1, %v3411_v12 }
 0x686   : > { %3041 = vmatmul.mubr.msk.f32.gmra.mrb[40].mxu1 %vm748_vm0, %v3746_v40  ;;  %v3152_v40 = vpack.c.bf16 %v2090_v44, %v2089_v27 }
 0x688   : > { %3153 = vmatpush3.bf16.msra.mxu0 %v3152_v40 }
 0x689   : > { %3154 = vmatprep.subr.bf16.mxu0 %v3409_v11 }
 0x68c   : > { %3156 = vmatpush3.bf16.msra.mxu0 %v3155_v31 }
 0x68d   : > { %3157 = vmatprep.subr.bf16.mxu0 %v3409_v11 }
 0x690   : > { %3159 = vmatpush3.bf16.msra.mxu0 %v3158_v34 }
 0x735   : > { %v3008_v35 = vpop.f32.mrb[28].mxu1 }
 0x736   : > { %2344 = vst.msk [vmem:[%s691_s30 + $0x8] sm:$0xff] %vm1078_vm3, %v3008_v35  ;;  %v1944_v36 = vpop.f32.mrb[29].mxu1 }
 0x737   : > { %2343 = vst.msk [vmem:[%s691_s30] sm:$0xff] %vm1078_vm3, %v1944_v36  ;;  %2102 = vxpose.xlu1.b32.start [1/8] (short) (narrow) %v1944_v36, 24 }
 0x73b   : > { %2103 = vxpose.xlu1.b32.cont [2/8] (short) (narrow) %v3008_v35, 24 }
 0x73d   : > { %v3011_v37 = vpop.f32.mrb[30].mxu1 }
 0x73e   : > { %2346 = vst.msk [vmem:[%s691_s30 + $0x18] sm:$0xff] %vm1078_vm3, %v3011_v37  ;;  %v1954_v38 = vpop.f32.mrb[31].mxu1 }
 0x73f   : > { %2345 = vst.msk [vmem:[%s691_s30 + $0x10] sm:$0xff] %vm1078_vm3, %v1954_v38  ;;  %2104 = vxpose.xlu1.b32.cont [3/8] (short) (narrow) %v1954_v38, 24 }
 0x743   : > { %2105 = vxpose.xlu1.b32.cont [4/8] (short) (narrow) %v3011_v37, 24 }
 0x749   : > { %v3014_v11 = vpop.f32.mrb[32].mxu1 }
 0x74a   : > { %2348 = vst.msk [vmem:[%s691_s30 + $0x28] sm:$0xff] %vm1078_vm3, %v3014_v11  ;;  %v1964_v39 = vpop.f32.mrb[33].mxu1 }
 0x74b   : > { %2347 = vst.msk [vmem:[%s691_s30 + $0x20] sm:$0xff] %vm1078_vm3, %v1964_v39  ;;  %2106 = vxpose.xlu1.b32.cont [5/8] (short) (narrow) %v1964_v39, 24 }
 0x74d   : > { %v3017_v41 = vpop.f32.mrb[34].mxu1 }
 0x74e   : > { %2350 = vst.msk [vmem:[%s691_s30 + $0x38] sm:$0xff] %vm1078_vm3, %v3017_v41  ;;  %v1974_v43 = vpop.f32.mrb[35].mxu1 }
 0x74f   : > { %2349 = vst.msk [vmem:[%s691_s30 + $0x30] sm:$0xff] %vm1078_vm3, %v1974_v43  ;;  %2107 = vxpose.xlu1.b32.cont [6/8] (short) (narrow) %v3014_v11, 24  ;;  %s4143_s30 = smul.u32 384, %s3548_s3 }
 0x751   : > { %v2073_v46 = vpop.f32.mrb[36].mxu1  ;;  %s3986_s1 = scalar_lea.hbm %s4182_s19, %s4143_s30 }
 0x752   : > { %v2074_v48 = vadd.f32 %v2700_v45, %v2073_v46  ;;  %v3036_v49 = vpop.f32.mrb[37].mxu1 }
 0x753   : > { %2108 = vxpose.xlu1.b32.cont [7/8] (short) (narrow) %v1974_v43, 24 }
 0x754   : > { %2223 = vxpose.xlu0.b32.start [1/3] (short) (narrow) %v2074_v48, 16 }
 0x755   : > { %v2078_v50 = vpop.f32.mrb[38].mxu1 }
 0x756   : > { %v2079_v51 = vadd.f32 %v2700_v45, %v2078_v50  ;;  %v3039_v52 = vpop.f32.mrb[39].mxu1 }
 0x757   : > { %2109 = vxpose.xlu1.b32.end [8/8] (short) (narrow) %v3017_v41, 24 }
 0x758   : > { %2224 = vxpose.xlu0.b32.cont [2/3] (short) (narrow) %v2079_v51, 16 }
 0x759   : > { %v2083_v53 = vpop.f32.mrb[40].mxu1 }
 0x75a   : > { %v2084_v54 = vadd.f32 %v2700_v45, %v2083_v53  ;;  %v3042_v55 = vpop.f32.mrb[41].mxu1 }
 0x75c   : > { %2225 = vxpose.xlu0.b32.end [3/3] (short) (narrow) %v2084_v54, 16 }
 0x7bb   : > { %v2118_v56 = vpop.trf.xlu1 }
 0x7bc   : > { %3060 = vmatmul.mubr.msk.f32.vlgmr.msra.gmra.mrb[28].mxu0 %vm748_vm0, %v2118_v56 }
 0x7bd   : > { %3062 = vmatprep.mubr.msk.f32.mxu0 %vm3410_vm1, %v3411_v12 }
 0x7bf   : > { %v2119_v47 = vpop.trf.xlu1 }
 0x7c0   : > { %3063 = vmatmul.mubr.msk.f32.gmra.mrb[30].mxu0 %vm748_vm0, %v2119_v47 }
 0x7c1   : > { %3065 = vmatprep.mubr.msk.f32.mxu0 %vm3410_vm1, %v3411_v12 }
 0x7c3   : > { %v2120_v57 = vpop.trf.xlu1 }
 0x7c4   : > { %3066 = vmatmul.mubr.msk.f32.gmra.mrb[32].mxu0 %vm748_vm0, %v2120_v57 }
 0x7d4   : > { %v2239_v58 = vpop.trf.xlu0 }
 0x7d5   : > { %3074 = vmatprep.mubr.msk.f32.mxu1 %vm1078_vm3, %v2239_v58 }
 0x7d8   : > { %v2240_v5 = vpop.trf.xlu0 }
 0x88f   : > { %v2209_v59 = vpop.f32.mrb[28].mxu0 }
 0x890   : > { %v3061_v60 = vpop.f32.mrb[29].mxu0  ;;  %v2210_v63 = vadd.f32 %v2704_v61, %v2209_v59 }
 0x893   : > { %v2214_v62 = vpop.f32.mrb[30].mxu0 }
 0x894   : > { %v2215_v0 = vadd.f32 %v2704_v61, %v2214_v62  ;;  %v3064_v1 = vpop.f32.mrb[31].mxu0 }
 0x896   : > { %v3160_v12 = vpack.c.bf16 %v2215_v0, %v2210_v63 }
 0x897   : > { %v2219_v2 = vpop.f32.mrb[32].mxu0 }
 0x898   : > { %3161 = vmatprep.subr.bf16.mxu1 %v3160_v12  ;;  %v2220_v3 = vadd.f32 %v2704_v61, %v2219_v2  ;;  %v3067_v4 = vpop.f32.mrb[33].mxu0 }
 0x899   : > { %3163 = vmatpush3.bf16.msra.mxu1 %v3160_v12 }
 0x89a   : > { %3072 = vmatprep.subr.mxu1 %v2220_v3 }
 0x89d   : > { %3073 = vmatpush3.msra.mxu1 %v2220_v3 }
 0x89e   : > { %3075 = vmatmul.mubr.msk.f32.vlgmr.msra.gmra.mrb[42].mxu1 %vm1078_vm3, %v2240_v5 }
 0x89f   : > { %3298 = shalt.err (!%p3295_p3)
}
 0x8a0   : > { %s3299_s23 = scalar_lea.hbm %s3986_s1, 384  ;;  %s3303_s22 = scalar_lea.hbm %s4182_s19, 768 }
 0x8a1   : > { %p3300_p4 = scmp.ne.s32.totalorder %s3986_s1, %s3299_s23  ;;  %p3304_p9 = scmp.lt.u32.totalorder %s3986_s1, %s4182_s19 }
 0x8a2   : > { %p3305_p10 = scmp.lt.u32.totalorder %s3303_s22, %s3299_s23  ;;  %p3307_p12 = scmp.lt.u32.totalorder %s3299_s23, %s3986_s1 }
 0x8a3   : > { %p3301_p7 = pnand %p3300_p4, %p3567_p5 }
 0x8a4   : > { %p3306_p11 = por %p3305_p10, %p3304_p9 }
 0x8a5   : > { %p3302_p8 = pneg %p3301_p7 }
 0x8a6   : > { %p3308_p13 = por %p3307_p12, %p3306_p11 }
 0x8a8   : > { %p3309_p0 = pnand %p3308_p13, %p3302_p8 }
 0x8aa   : > { %3312 = shalt.err (!%p3309_p0)
}
 0x8ab   : > { %s3413_s6 = smov 128   ;;  %s3414_s30 = smov 8  }
 0x8ac   : > { %3173 = dma.vmem_to_hbm [thread:$0]  (%p3567_p5), %s3975_s2, 384, %s3986_s1, %s3988_s27, %s3413_s6, %s3413_s6, %s3414_s30  }
 0x8ad   : > { %s4183_s26 = smul.u32 384, %s3548_s3  ;;  %s4184_s29 = sld [smem:[#allocation27_spill]] }
 0x8ae   : > { %s2719_s4 = sshll.u32 %s3548_s3, 10  ;;  %s2363_s7 = scalar_lea.sflag [#allocation3], %s3689_s20 }
 0x8af   : > { %s3313_s8 = scalar_lea.vmem %s3973_s17, 384  ;;  %s3415_s9 = smov [#allocation2]  }
 0x8b0   : > { %p3314_p1 = scmp.ne.s32.totalorder %s3973_s17, %s3313_s8  ;;  %s3317_s10 = sshll.u32 %s3415_s9, 4  ;;  %s3318_s10 = int_to_ptr.vmem [resolvable:$false] %s3317_s10 }
 0x8b1   : > { %s3319_s11 = scalar_lea.vmem %s3318_s10, 768  ;;  %p3320_p4 = scmp.lt.s32.totalorder %s3973_s17, %s3318_s10 }
 0x8b2   : > { %p3315_p2 = pnand %p3314_p1, %p3567_p5  ;;  %p3321_p7 = scmp.lt.s32.totalorder %s3319_s11, %s3313_s8 }
 0x8b3   : > { %s4020_s22 = scalar_lea.hbm %s4184_s29, %s4183_s26 }
 0x8b4   : > { %p3316_p3 = pneg %p3315_p2  ;;  %p3322_p8 = por %p3321_p7, %p3320_p4 }
 0x8b6   : > { %p3323_p9 = pnand %p3322_p8, %p3316_p3 }
 0x8b8   : > { %3326 = shalt.err (!%p3323_p9)
}
 0x8b9   : > { %s3327_s1 = scalar_lea.hbm %s4020_s22, 384  ;;  %s3331_s9 = scalar_lea.hbm %s4184_s29, 768 }
 0x8ba   : > { %p3328_p10 = scmp.ne.s32.totalorder %s4020_s22, %s3327_s1  ;;  %p3332_p13 = scmp.lt.u32.totalorder %s4020_s22, %s4184_s29 }
 0x8bb   : > { %p3333_p0 = scmp.lt.u32.totalorder %s3331_s9, %s3327_s1  ;;  %p3335_p2 = scmp.lt.u32.totalorder %s3327_s1, %s4020_s22 }
 0x8bc   : > { %p3329_p11 = pnand %p3328_p10, %p3567_p5 }
 0x8bd   : > { %p3334_p1 = por %p3333_p0, %p3332_p13 }
 0x8be   : > { %p3330_p12 = pneg %p3329_p11 }
 0x8bf   : > { %p3336_p3 = por %p3335_p2, %p3334_p1 }
 0x8c1   : > { %p3337_p4 = pnand %p3336_p3, %p3330_p12 }
 0x8c3   : > { %3340 = shalt.err (!%p3337_p4)
}
 0x8c4   : > { %3172 = dma.vmem_to_hbm [thread:$0]  (%p3567_p5), %s3973_s17, 384, %s4020_s22, %s2363_s7, %s3413_s6, %s3413_s6, %s3414_s30  }
 0x8c5   : > { %s4185_s0 = sld [smem:[#allocation29_spill]]  ;;  %s3341_s2 = scalar_lea.vmem %s3978_s21, 1024 }
 0x8c6   : > { %p3342_p7 = scmp.ne.s32.totalorder %s3978_s21, %s3341_s2  ;;  %s3416_s20 = smov [#allocation6]  }
 0x8c7   : > { %s3345_s26 = sshll.u32 %s3416_s20, 4  ;;  %s3346_s26 = int_to_ptr.vmem [resolvable:$false] %s3345_s26 }
 0x8c8   : > { %p3343_p8 = pnand %p3342_p7, %p3567_p5  ;;  %s3347_s9 = scalar_lea.vmem %s3346_s26, 2048 }
 0x8c9   : > { %p3348_p10 = scmp.lt.s32.totalorder %s3978_s21, %s3346_s26  ;;  %p3349_p11 = scmp.lt.s32.totalorder %s3347_s9, %s3341_s2 }
 0x8ca   : > { %p3344_p9 = pneg %p3343_p8 }
 0x8cb   : > { %s4055_s1 = scalar_lea.hbm %s4185_s0, %s2719_s4  ;;  %p3350_p12 = por %p3349_p11, %p3348_p10 }
 0x8cd   : > { %p3351_p13 = pnand %p3350_p12, %p3344_p9 }
 0x8cf   : > { %3354 = shalt.err (!%p3351_p13)
}
 0x8d0   : > { %s3355_s7 = scalar_lea.hbm %s4055_s1, 1024  ;;  %s3359_s22 = scalar_lea.hbm %s4185_s0, 2048 }
 0x8d1   : > { %p3356_p0 = scmp.ne.s32.totalorder %s4055_s1, %s3355_s7  ;;  %p3360_p3 = scmp.lt.u32.totalorder %s4055_s1, %s4185_s0 }
 0x8d2   : > { %p3361_p4 = scmp.lt.u32.totalorder %s3359_s22, %s3355_s7  ;;  %p3363_p8 = scmp.lt.u32.totalorder %s3355_s7, %s4055_s1 }
 0x8d3   : > { %p3357_p1 = pnand %p3356_p0, %p3567_p5 }
 0x8d4   : > { %p3362_p7 = por %p3361_p4, %p3360_p3 }
 0x8d5   : > { %p3358_p2 = pneg %p3357_p1 }
 0x8d6   : > { %p3364_p9 = por %p3363_p8, %p3362_p7 }
 0x8d8   : > { %p3365_p10 = pnand %p3364_p9, %p3358_p2 }
 0x8da   : > { %3368 = shalt.err (!%p3365_p10)
}
 0x8db   : > { %3174 = dma.vmem_to_hbm [thread:$0]  (%p3567_p5), %s3978_s21, 1024, %s4055_s1, %s3988_s27, %s3413_s6, %s3413_s6, %s3414_s30   ;;  %vm2338_vm5 = vcmask 74752   ;;  %vm2336_vm6 = vcmask 80896  }
 0x8dc   : > { %s2718_s10 = sshll.u32 %s3585_s28, 4  ;;  %s4186_s2 = sld [smem:[#allocation30_spill]] }
 0x8e2   : > { %s696_s20 = scalar_lea.vmem %s4186_s2, %s2718_s10 }
 0x971   : > { %v3076_v7 = vpop.f32.mrb[42].mxu1 }
 0x972   : > { %2339 = vst.msk [vmem:[%s696_s20 + $0x8] sm:$0x3] %vm2338_vm5, %v3076_v7  ;;  %v2327_v9 = vpop.f32.mrb[43].mxu1 }
 0x973   : > { %2337 = vst.msk [vmem:[%s696_s20] sm:$0xff] %vm2336_vm6, %v2327_v9 }
 0x974 PF: > { %s4187_s5 = sld [smem:[#allocation11_spill]]  ;;  %s4188_s26 = sld [smem:[#allocation9_spill]] }
 0x97a   : > { %p3188_p11 = scmp.ge.s32.totalorder %s4187_s5, 2  ;;  %s2449_s7 = sand.u32 1, %s4188_s26  }
 0x97b   : > { %s2450_s21 = scalar_lea.sflag [#allocation3], %s2449_s7 }
 0x97c   : > { %p3179_p12 = pnand %p3188_p11, %p3571_p6 }
 0x97e   : > { %3386 = dma.done.wait (!%p3179_p12), %s2450_s21, 384  }
 0x97f   : > { %3388 = vsyncadd (!%p3179_p12), %s2450_s21, 4294966912  ;;  %s4190_s28 = sadd.s32 4294967294, %s4187_s5  }
 0x980   : > { %s2466_s27 = sand.u32 1, %s4190_s28  }
 0x981   : > { %s2467_s6 = scalar_lea.sflag [#allocation5], %s2466_s27 }
 0x982   : > { %3390 = dma.done.wait (!%p3179_p12), %s2467_s6, 1408  }
 0x983   : > { %3392 = vsyncadd (!%p3179_p12), %s2467_s6, 4294965888  ;;  %s4191_s27 = sld [smem:[#allocation12_spill]]  ;;  %s4192_s30 = sld [smem:[#allocation10_spill]] }
 0x984   : > { %s4193_s26 = sld [smem:[#allocation13_spill]]  ;;  %s4194_s2 = smov %s3399_s25 }
 0x989   : > { %p35_p5 = scmp.ge.s32.totalorder %s4191_s27, 4   ;;  %s4195_s25 = smov %s4192_s30 }
 0x98b   :  { %37 = sbr.rel (!%p35_p5) target bundleno = 22 (0x16), region = 179 }
 0x992   :  { %2489 = vsyncpa [#allocation3], 1 }
 0x993   :  { %2491 = vsyncpa [#allocation3 + $0x1], 1 }
 0x994   :  { %2492 = vsyncpa [#allocation5], 1 }
 0x995   :  { %2494 = vsyncpa [#allocation5 + $0x1], 1 }

</bundles_post_ra>
